<compile_context>
chip_gen: v6e
topology: v6e:2x2x1
jax: 0.10.0
libtpu: 0.0.40
codegen_flags: <defaults>
</compile_context>

<pallas_src>
import functools

import jax
import jax.numpy as jnp
from jax import lax
from jax.experimental import pallas as pl
from jax.experimental.pallas import tpu as pltpu


def _fused_lstm_fc_kernel(*refs, seq_len, batch, hidden, num_layers):
    """Full multi-layer LSTM recurrence + final Linear in one invocation.

    refs layout:
      [0]            x_flat_ref   (T*B, D0)   bf16  (time-major, batch padded)
      per layer l:   w_ih_ref     (4, D_l, H) bf16  (per-gate, transposed)
                     w_hh_ref     (4, H, H)   bf16  (per-gate, transposed)
                     bias_ref     (4, 1, H)   f32   (b_ih + b_hh)
      then           fc_w_ref     (H, O)      bf16
                     fc_b_ref     (1, O)      f32
      output         out_ref      (B, O)      f32
      scratch        gx0..gx3     (T*B, H)    f32   (layer-0 input projection)
    """
    T, B, L = seq_len, batch, num_layers

    x_ref = refs[0]
    layer_refs = []
    idx = 1
    for _ in range(L):
        layer_refs.append((refs[idx], refs[idx + 1], refs[idx + 2]))
        idx += 3
    fc_w_ref, fc_b_ref = refs[idx], refs[idx + 1]
    out_ref = refs[idx + 2]
    gx_refs = refs[idx + 3: idx + 7]

    # ---- Phase 1: layer-0 input projection for the whole sequence ---------
    # One big matmul per gate (no recurrence); bias folded in here so it is
    # off the serial critical path.
    w_ih0, _, b0 = layer_refs[0]
    x = x_ref[...]                                   # (T*B, D) bf16
    for g in range(4):
        gx_refs[g][...] = (
            jnp.dot(x, w_ih0[g], preferred_element_type=jnp.float32) + b0[g]
        )

    # Hoist the (tiny) per-layer bias rows for layers >= 1 out of the loop.
    biases = [tuple(layer_refs[l][2][g] for g in range(4)) for l in range(L)]

    # ---- Phase 2: serial recurrence over time, all layers fused -----------
    def step(t, carry):
        hs, cs = carry                               # tuples of (B, H) f32
        start = pl.multiple_of(t * B, 8)             # B is a multiple of 8
        new_hs, new_cs = [], []
        layer_in = None                              # bf16 input, layers >= 1
        for l in range(L):
            w_ih, w_hh, _ = layer_refs[l]
            h = hs[l]
            c = cs[l]
            h_b = h.astype(jnp.bfloat16)
            gates = []
            for g in range(4):
                g_h = jnp.dot(h_b, w_hh[g], preferred_element_type=jnp.float32)
                if l == 0:
                    g_x = gx_refs[g][pl.ds(start, B), :]
                else:
                    g_x = jnp.dot(layer_in, w_ih[g],
                                  preferred_element_type=jnp.float32) + biases[l][g]
                gates.append(g_x + g_h)
            i_g = jax.nn.sigmoid(gates[0])
            f_g = jax.nn.sigmoid(gates[1])
            g_g = jnp.tanh(gates[2])
            o_g = jax.nn.sigmoid(gates[3])
            c_new = f_g * c + i_g * g_g
            h_new = o_g * jnp.tanh(c_new)
            new_hs.append(h_new)
            new_cs.append(c_new)
            layer_in = h_new.astype(jnp.bfloat16)
        return tuple(new_hs), tuple(new_cs)

    zeros = tuple(jnp.zeros((B, hidden), jnp.float32) for _ in range(L))
    # Fully unroll short sequences (scheduler visibility); cap for long ones.
    unroll = True if T <= 16 else 8
    hs, _ = lax.fori_loop(0, T, step, (zeros, zeros), unroll=unroll)

    # ---- Phase 3: final Linear on the last timestep of the top layer ------
    h_last = hs[L - 1].astype(jnp.bfloat16)
    out_ref[...] = (
        jnp.dot(h_last, fc_w_ref[...], preferred_element_type=jnp.float32)
        + fc_b_ref[...]
    )


def _round_up(n, m):
    return ((n + m - 1) // m) * m


@jax.jit
def lstm_model_forward(x_btd, params):
    """Equivalent of LSTMModel.forward: x (B, T, input_dim) -> (B, output_dim)."""
    B, T, D = x_btd.shape
    H = params["lstm"][0]["w_hh"].shape[1]
    O = params["fc"]["w_t"].shape[1]
    L = len(params["lstm"])

    # Pad batch to a sublane multiple (>= 8) so the per-timestep (B, H) slabs
    # and dynamic time slices of the precomputed projection are 8-aligned.
    Bp = max(8, _round_up(B, 8))
    x = jnp.transpose(x_btd, (1, 0, 2))                       # (T, B, D)
    if Bp != B:
        x = jnp.pad(x, ((0, 0), (0, Bp - B), (0, 0)))
    x_flat = x.reshape(T * Bp, D).astype(jnp.bfloat16)        # (T*Bp, D)

    inputs = [x_flat]
    in_specs = [pl.BlockSpec(x_flat.shape, lambda i: (0, 0))]
    for lp in params["lstm"]:
        for arr in (lp["w_ih"], lp["w_hh"], lp["bias"]):
            inputs.append(arr)
            in_specs.append(pl.BlockSpec(arr.shape, lambda i: (0, 0, 0)))
    for arr in (params["fc"]["w_t"], params["fc"]["b"]):
        inputs.append(arr)
        in_specs.append(pl.BlockSpec(arr.shape, lambda i: (0, 0)))

    kernel = functools.partial(
        _fused_lstm_fc_kernel, seq_len=T, batch=Bp, hidden=H, num_layers=L)

    out_padded = pl.pallas_call(
        kernel,
        out_shape=jax.ShapeDtypeStruct((Bp, O), jnp.float32),
        grid_spec=pltpu.PrefetchScalarGridSpec(
            num_scalar_prefetch=0,
            grid=(1,),
            in_specs=in_specs,
            out_specs=pl.BlockSpec((Bp, O), lambda i: (0, 0)),
            scratch_shapes=[pltpu.VMEM((T * Bp, H), jnp.float32)
                            for _ in range(4)],
        ),
        compiler_params=pltpu.CompilerParams(
            dimension_semantics=("arbitrary",)),
    )(*inputs)
    return out_padded[:B]


def init_params(key, input_dim, hidden_dim, layer_dim, output_dim):
    """PyTorch-style init U(-1/sqrt(H), 1/sqrt(H)), stored in kernel layout:
       w_ih: (4, D_l, H) bf16, w_hh: (4, H, H) bf16, bias: (4, 1, H) f32,
       gate order [i, f, g, o]; fc: w_t (H, O) bf16, b (1, O) f32."""
    H = hidden_dim
    k = 1.0 / (hidden_dim ** 0.5)
    params = {"lstm": [], "fc": None}
    for layer in range(layer_dim):
        in_d = input_dim if layer == 0 else hidden_dim
        key, k1, k2, k3, k4 = jax.random.split(key, 5)
        w_ih = jax.random.uniform(k1, (4 * H, in_d), jnp.float32, -k, k)
        w_hh = jax.random.uniform(k2, (4 * H, H), jnp.float32, -k, k)
        b_ih = jax.random.uniform(k3, (4 * H,), jnp.float32, -k, k)
        b_hh = jax.random.uniform(k4, (4 * H,), jnp.float32, -k, k)
        params["lstm"].append({
            # (4H, D) -> (4, H, D) -> (4, D, H): per-gate transposed weights
            "w_ih": jnp.transpose(w_ih.reshape(4, H, in_d), (0, 2, 1)
                                  ).astype(jnp.bfloat16),
            "w_hh": jnp.transpose(w_hh.reshape(4, H, H), (0, 2, 1)
                                  ).astype(jnp.bfloat16),
            "bias": (b_ih + b_hh).reshape(4, 1, H).astype(jnp.float32),
        })
    key, k1, k2 = jax.random.split(key, 3)
    w_fc = jax.random.uniform(k1, (output_dim, H), jnp.float32, -k, k)
    b_fc = jax.random.uniform(k2, (output_dim,), jnp.float32, -k, k)
    params["fc"] = {"w_t": w_fc.T.astype(jnp.bfloat16),
                    "b": b_fc[None, :].astype(jnp.float32)}
    return params


if __name__ == "__main__":
    B, T = 2, 8
    input_dim, hidden_dim, layer_dim, output_dim = 16, 32, 2, 3

    key = jax.random.PRNGKey(0)
    key, xk = jax.random.split(key)
    x = jax.random.normal(xk, (B, T, input_dim), jnp.float32)

    params = init_params(key, input_dim, hidden_dim, layer_dim, output_dim)

    out = lstm_model_forward(x, params)
    jax.block_until_ready(out)
    assert out.shape == (B, output_dim)
    assert bool(jnp.all(jnp.isfinite(out)))
    print("KERNEL_OK")
</pallas_src>

<mosaic_0001>
module attributes {stable_mosaic.version = 11 : i64} {
  func.func @_fused_lstm_fc_kernel(%arg0: i32, %arg1: memref<64x16xbf16, #tpu.memory_space<vmem>>, %arg2: memref<4x16x32xbf16, #tpu.memory_space<vmem>>, %arg3: memref<4x32x32xbf16, #tpu.memory_space<vmem>>, %arg4: memref<4x1x32xf32, #tpu.memory_space<vmem>>, %arg5: memref<4x32x32xbf16, #tpu.memory_space<vmem>>, %arg6: memref<4x32x32xbf16, #tpu.memory_space<vmem>>, %arg7: memref<4x1x32xf32, #tpu.memory_space<vmem>>, %arg8: memref<32x3xbf16, #tpu.memory_space<vmem>>, %arg9: memref<1x3xf32, #tpu.memory_space<vmem>>, %arg10: memref<8x3xf32, #tpu.memory_space<vmem>>, %arg11: memref<64x32xf32, #tpu.memory_space<vmem>>, %arg12: memref<64x32xf32, #tpu.memory_space<vmem>>, %arg13: memref<64x32xf32, #tpu.memory_space<vmem>>, %arg14: memref<64x32xf32, #tpu.memory_space<vmem>>) attributes {dimension_semantics = [#tpu.dimension_semantics<arbitrary>], iteration_bounds = array<i64: 1>, scalar_prefetch = 0 : i64, scratch_operands = 4 : i64, tpu.core_type = #tpu.core_type<tc>, window_params = [{pipeline_mode = #tpu.pipeline_mode<synchronous>, transform_indices = @transform_0, window_bounds = array<i64: 64, 16>}, {pipeline_mode = #tpu.pipeline_mode<synchronous>, transform_indices = @transform_1, window_bounds = array<i64: 4, 16, 32>}, {pipeline_mode = #tpu.pipeline_mode<synchronous>, transform_indices = @transform_2, window_bounds = array<i64: 4, 32, 32>}, {pipeline_mode = #tpu.pipeline_mode<synchronous>, transform_indices = @transform_3, window_bounds = array<i64: 4, 1, 32>}, {pipeline_mode = #tpu.pipeline_mode<synchronous>, transform_indices = @transform_4, window_bounds = array<i64: 4, 32, 32>}, {pipeline_mode = #tpu.pipeline_mode<synchronous>, transform_indices = @transform_5, window_bounds = array<i64: 4, 32, 32>}, {pipeline_mode = #tpu.pipeline_mode<synchronous>, transform_indices = @transform_6, window_bounds = array<i64: 4, 1, 32>}, {pipeline_mode = #tpu.pipeline_mode<synchronous>, transform_indices = @transform_7, window_bounds = array<i64: 32, 3>}, {pipeline_mode = #tpu.pipeline_mode<synchronous>, transform_indices = @transform_8, window_bounds = array<i64: 1, 3>}, {pipeline_mode = #tpu.pipeline_mode<synchronous>, transform_indices = @transform_9, window_bounds = array<i64: 8, 3>}]} {
    %c0 = arith.constant 0 : index
    %c0_0 = arith.constant 0 : index
    %0 = vector.load %arg1[%c0, %c0_0] : memref<64x16xbf16, #tpu.memory_space<vmem>>, vector<64x16xbf16>
    %c0_1 = arith.constant 0 : index
    %c0_2 = arith.constant 0 : index
    %c0_3 = arith.constant 0 : index
    %1 = vector.load %arg2[%c0_1, %c0_2, %c0_3] : memref<4x16x32xbf16, #tpu.memory_space<vmem>>, vector<1x16x32xbf16>
    %2 = vector.shape_cast %1 : vector<1x16x32xbf16> to vector<16x32xbf16>
    %cst = arith.constant dense<0.000000e+00> : vector<64x32xf32>
    %3 = tpu.matmul %0, %2, %cst {dimension_numbers = #tpu.dot_dimension_numbers<[1], [0], [0], [1], [0, 0, 1, 1], [], []>} : vector<64x16xbf16>, vector<16x32xbf16>, vector<64x32xf32> -> vector<64x32xf32>
    %c0_4 = arith.constant 0 : index
    %c0_5 = arith.constant 0 : index
    %c0_6 = arith.constant 0 : index
    %4 = vector.load %arg4[%c0_4, %c0_5, %c0_6] : memref<4x1x32xf32, #tpu.memory_space<vmem>>, vector<1x1x32xf32>
    %5 = vector.shape_cast %4 : vector<1x1x32xf32> to vector<1x32xf32>
    %6 = vector.broadcast %5 : vector<1x32xf32> to vector<64x32xf32>
    %7 = arith.addf %3, %6 : vector<64x32xf32>
    %c0_7 = arith.constant 0 : index
    %c0_8 = arith.constant 0 : index
    %8 = vector.load %arg11[%c0_7, %c0_8] : memref<64x32xf32, #tpu.memory_space<vmem>>, vector<64x32xf32>
    tpu.vector_store %arg11[%c0_7, %c0_8], %7 {strides = array<i32>} : memref<64x32xf32, #tpu.memory_space<vmem>>, vector<64x32xf32>,
    %c1 = arith.constant 1 : index
    %c0_9 = arith.constant 0 : index
    %c0_10 = arith.constant 0 : index
    %9 = vector.load %arg2[%c1, %c0_9, %c0_10] : memref<4x16x32xbf16, #tpu.memory_space<vmem>>, vector<1x16x32xbf16>
    %10 = vector.shape_cast %9 : vector<1x16x32xbf16> to vector<16x32xbf16>
    %cst_11 = arith.constant dense<0.000000e+00> : vector<64x32xf32>
    %11 = tpu.matmul %0, %10, %cst_11 {dimension_numbers = #tpu.dot_dimension_numbers<[1], [0], [0], [1], [0, 0, 1, 1], [], []>} : vector<64x16xbf16>, vector<16x32xbf16>, vector<64x32xf32> -> vector<64x32xf32>
    %c1_12 = arith.constant 1 : index
    %c0_13 = arith.constant 0 : index
    %c0_14 = arith.constant 0 : index
    %12 = vector.load %arg4[%c1_12, %c0_13, %c0_14] : memref<4x1x32xf32, #tpu.memory_space<vmem>>, vector<1x1x32xf32>
    %13 = vector.shape_cast %12 : vector<1x1x32xf32> to vector<1x32xf32>
    %14 = vector.broadcast %13 : vector<1x32xf32> to vector<64x32xf32>
    %15 = arith.addf %11, %14 : vector<64x32xf32>
    %c0_15 = arith.constant 0 : index
    %c0_16 = arith.constant 0 : index
    %16 = vector.load %arg12[%c0_15, %c0_16] : memref<64x32xf32, #tpu.memory_space<vmem>>, vector<64x32xf32>
    tpu.vector_store %arg12[%c0_15, %c0_16], %15 {strides = array<i32>} : memref<64x32xf32, #tpu.memory_space<vmem>>, vector<64x32xf32>,
    %c2 = arith.constant 2 : index
    %c0_17 = arith.constant 0 : index
    %c0_18 = arith.constant 0 : index
    %17 = vector.load %arg2[%c2, %c0_17, %c0_18] : memref<4x16x32xbf16, #tpu.memory_space<vmem>>, vector<1x16x32xbf16>
    %18 = vector.shape_cast %17 : vector<1x16x32xbf16> to vector<16x32xbf16>
    %cst_19 = arith.constant dense<0.000000e+00> : vector<64x32xf32>
    %19 = tpu.matmul %0, %18, %cst_19 {dimension_numbers = #tpu.dot_dimension_numbers<[1], [0], [0], [1], [0, 0, 1, 1], [], []>} : vector<64x16xbf16>, vector<16x32xbf16>, vector<64x32xf32> -> vector<64x32xf32>
    %c2_20 = arith.constant 2 : index
    %c0_21 = arith.constant 0 : index
    %c0_22 = arith.constant 0 : index
    %20 = vector.load %arg4[%c2_20, %c0_21, %c0_22] : memref<4x1x32xf32, #tpu.memory_space<vmem>>, vector<1x1x32xf32>
    %21 = vector.shape_cast %20 : vector<1x1x32xf32> to vector<1x32xf32>
    %22 = vector.broadcast %21 : vector<1x32xf32> to vector<64x32xf32>
    %23 = arith.addf %19, %22 : vector<64x32xf32>
    %c0_23 = arith.constant 0 : index
    %c0_24 = arith.constant 0 : index
    %24 = vector.load %arg13[%c0_23, %c0_24] : memref<64x32xf32, #tpu.memory_space<vmem>>, vector<64x32xf32>
    tpu.vector_store %arg13[%c0_23, %c0_24], %23 {strides = array<i32>} : memref<64x32xf32, #tpu.memory_space<vmem>>, vector<64x32xf32>,
    %c3 = arith.constant 3 : index
    %c0_25 = arith.constant 0 : index
    %c0_26 = arith.constant 0 : index
    %25 = vector.load %arg2[%c3, %c0_25, %c0_26] : memref<4x16x32xbf16, #tpu.memory_space<vmem>>, vector<1x16x32xbf16>
    %26 = vector.shape_cast %25 : vector<1x16x32xbf16> to vector<16x32xbf16>
    %cst_27 = arith.constant dense<0.000000e+00> : vector<64x32xf32>
    %27 = tpu.matmul %0, %26, %cst_27 {dimension_numbers = #tpu.dot_dimension_numbers<[1], [0], [0], [1], [0, 0, 1, 1], [], []>} : vector<64x16xbf16>, vector<16x32xbf16>, vector<64x32xf32> -> vector<64x32xf32>
    %c3_28 = arith.constant 3 : index
    %c0_29 = arith.constant 0 : index
    %c0_30 = arith.constant 0 : index
    %28 = vector.load %arg4[%c3_28, %c0_29, %c0_30] : memref<4x1x32xf32, #tpu.memory_space<vmem>>, vector<1x1x32xf32>
    %29 = vector.shape_cast %28 : vector<1x1x32xf32> to vector<1x32xf32>
    %30 = vector.broadcast %29 : vector<1x32xf32> to vector<64x32xf32>
    %31 = arith.addf %27, %30 : vector<64x32xf32>
    %c0_31 = arith.constant 0 : index
    %c0_32 = arith.constant 0 : index
    %32 = vector.load %arg14[%c0_31, %c0_32] : memref<64x32xf32, #tpu.memory_space<vmem>>, vector<64x32xf32>
    tpu.vector_store %arg14[%c0_31, %c0_32], %31 {strides = array<i32>} : memref<64x32xf32, #tpu.memory_space<vmem>>, vector<64x32xf32>,
    %c0_33 = arith.constant 0 : index
    %c0_34 = arith.constant 0 : index
    %c0_35 = arith.constant 0 : index
    %33 = vector.load %arg7[%c0_33, %c0_34, %c0_35] : memref<4x1x32xf32, #tpu.memory_space<vmem>>, vector<1x1x32xf32>
    %34 = vector.shape_cast %33 : vector<1x1x32xf32> to vector<1x32xf32>
    %c1_36 = arith.constant 1 : index
    %c0_37 = arith.constant 0 : index
    %c0_38 = arith.constant 0 : index
    %35 = vector.load %arg7[%c1_36, %c0_37, %c0_38] : memref<4x1x32xf32, #tpu.memory_space<vmem>>, vector<1x1x32xf32>
    %36 = vector.shape_cast %35 : vector<1x1x32xf32> to vector<1x32xf32>
    %c2_39 = arith.constant 2 : index
    %c0_40 = arith.constant 0 : index
    %c0_41 = arith.constant 0 : index
    %37 = vector.load %arg7[%c2_39, %c0_40, %c0_41] : memref<4x1x32xf32, #tpu.memory_space<vmem>>, vector<1x1x32xf32>
    %38 = vector.shape_cast %37 : vector<1x1x32xf32> to vector<1x32xf32>
    %c3_42 = arith.constant 3 : index
    %c0_43 = arith.constant 0 : index
    %c0_44 = arith.constant 0 : index
    %39 = vector.load %arg7[%c3_42, %c0_43, %c0_44] : memref<4x1x32xf32, #tpu.memory_space<vmem>>, vector<1x1x32xf32>
    %40 = vector.shape_cast %39 : vector<1x1x32xf32> to vector<1x32xf32>
    %cst_45 = arith.constant 0.000000e+00 : f32
    %41 = vector.broadcast %cst_45 : f32 to vector<8x32xf32>
    %cst_46 = arith.constant 0.000000e+00 : f32
    %42 = vector.broadcast %cst_46 : f32 to vector<8x32xf32>
    %c0_i32 = arith.constant 0 : i32
    %c8_i32 = arith.constant 8 : i32
    %43 = arith.muli %c0_i32, %c8_i32 : i32
    %44 = tpu.assume_multiple %43, 8 : i32
    %45 = arith.truncf %41 : vector<8x32xf32> to vector<8x32xbf16>
    %c0_47 = arith.constant 0 : index
    %c0_48 = arith.constant 0 : index
    %c0_49 = arith.constant 0 : index
    %46 = vector.load %arg3[%c0_47, %c0_48, %c0_49] : memref<4x32x32xbf16, #tpu.memory_space<vmem>>, vector<1x32x32xbf16>
    %47 = vector.shape_cast %46 : vector<1x32x32xbf16> to vector<32x32xbf16>
    %cst_50 = arith.constant dense<0.000000e+00> : vector<8x32xf32>
    %48 = tpu.matmul %45, %47, %cst_50 {dimension_numbers = #tpu.dot_dimension_numbers<[1], [0], [0], [1], [0, 0, 1, 1], [], []>} : vector<8x32xbf16>, vector<32x32xbf16>, vector<8x32xf32> -> vector<8x32xf32>
    %49 = arith.index_cast %44 : i32 to index
    %c0_51 = arith.constant 0 : index
    %50 = vector.load %arg11[%49, %c0_51] : memref<64x32xf32, #tpu.memory_space<vmem>>, vector<8x32xf32>
    %51 = arith.addf %50, %48 : vector<8x32xf32>
    %c1_52 = arith.constant 1 : index
    %c0_53 = arith.constant 0 : index
    %c0_54 = arith.constant 0 : index
    %52 = vector.load %arg3[%c1_52, %c0_53, %c0_54] : memref<4x32x32xbf16, #tpu.memory_space<vmem>>, vector<1x32x32xbf16>
    %53 = vector.shape_cast %52 : vector<1x32x32xbf16> to vector<32x32xbf16>
    %cst_55 = arith.constant dense<0.000000e+00> : vector<8x32xf32>
    %54 = tpu.matmul %45, %53, %cst_55 {dimension_numbers = #tpu.dot_dimension_numbers<[1], [0], [0], [1], [0, 0, 1, 1], [], []>} : vector<8x32xbf16>, vector<32x32xbf16>, vector<8x32xf32> -> vector<8x32xf32>
    %55 = arith.index_cast %44 : i32 to index
    %c0_56 = arith.constant 0 : index
    %56 = vector.load %arg12[%55, %c0_56] : memref<64x32xf32, #tpu.memory_space<vmem>>, vector<8x32xf32>
    %57 = arith.addf %56, %54 : vector<8x32xf32>
    %c2_57 = arith.constant 2 : index
    %c0_58 = arith.constant 0 : index
    %c0_59 = arith.constant 0 : index
    %58 = vector.load %arg3[%c2_57, %c0_58, %c0_59] : memref<4x32x32xbf16, #tpu.memory_space<vmem>>, vector<1x32x32xbf16>
    %59 = vector.shape_cast %58 : vector<1x32x32xbf16> to vector<32x32xbf16>
    %cst_60 = arith.constant dense<0.000000e+00> : vector<8x32xf32>
    %60 = tpu.matmul %45, %59, %cst_60 {dimension_numbers = #tpu.dot_dimension_numbers<[1], [0], [0], [1], [0, 0, 1, 1], [], []>} : vector<8x32xbf16>, vector<32x32xbf16>, vector<8x32xf32> -> vector<8x32xf32>
    %61 = arith.index_cast %44 : i32 to index
    %c0_61 = arith.constant 0 : index
    %62 = vector.load %arg13[%61, %c0_61] : memref<64x32xf32, #tpu.memory_space<vmem>>, vector<8x32xf32>
    %63 = arith.addf %62, %60 : vector<8x32xf32>
    %c3_62 = arith.constant 3 : index
    %c0_63 = arith.constant 0 : index
    %c0_64 = arith.constant 0 : index
    %64 = vector.load %arg3[%c3_62, %c0_63, %c0_64] : memref<4x32x32xbf16, #tpu.memory_space<vmem>>, vector<1x32x32xbf16>
    %65 = vector.shape_cast %64 : vector<1x32x32xbf16> to vector<32x32xbf16>
    %cst_65 = arith.constant dense<0.000000e+00> : vector<8x32xf32>
    %66 = tpu.matmul %45, %65, %cst_65 {dimension_numbers = #tpu.dot_dimension_numbers<[1], [0], [0], [1], [0, 0, 1, 1], [], []>} : vector<8x32xbf16>, vector<32x32xbf16>, vector<8x32xf32> -> vector<8x32xf32>
    %67 = arith.index_cast %44 : i32 to index
    %c0_66 = arith.constant 0 : index
    %68 = vector.load %arg14[%67, %c0_66] : memref<64x32xf32, #tpu.memory_space<vmem>>, vector<8x32xf32>
    %69 = arith.addf %68, %66 : vector<8x32xf32>
    %70 = arith.negf %51 : vector<8x32xf32>
    %71 = math.exp %70 : vector<8x32xf32>
    %cst_67 = arith.constant 1.000000e+00 : f32
    %72 = vector.broadcast %cst_67 : f32 to vector<8x32xf32>
    %73 = arith.addf %72, %71 : vector<8x32xf32>
    %74 = arith.divf %72, %73 : vector<8x32xf32>
    %75 = arith.negf %57 : vector<8x32xf32>
    %76 = math.exp %75 : vector<8x32xf32>
    %cst_68 = arith.constant 1.000000e+00 : f32
    %77 = vector.broadcast %cst_68 : f32 to vector<8x32xf32>
    %78 = arith.addf %77, %76 : vector<8x32xf32>
    %79 = arith.divf %77, %78 : vector<8x32xf32>
    %80 = math.tanh %63 : vector<8x32xf32>
    %81 = arith.negf %69 : vector<8x32xf32>
    %82 = math.exp %81 : vector<8x32xf32>
    %cst_69 = arith.constant 1.000000e+00 : f32
    %83 = vector.broadcast %cst_69 : f32 to vector<8x32xf32>
    %84 = arith.addf %83, %82 : vector<8x32xf32>
    %85 = arith.divf %83, %84 : vector<8x32xf32>
    %86 = arith.mulf %79, %41 : vector<8x32xf32>
    %87 = arith.mulf %74, %80 : vector<8x32xf32>
    %88 = arith.addf %86, %87 : vector<8x32xf32>
    %89 = math.tanh %88 : vector<8x32xf32>
    %90 = arith.mulf %85, %89 : vector<8x32xf32>
    %91 = arith.truncf %90 : vector<8x32xf32> to vector<8x32xbf16>
    %92 = arith.truncf %42 : vector<8x32xf32> to vector<8x32xbf16>
    %c0_70 = arith.constant 0 : index
    %c0_71 = arith.constant 0 : index
    %c0_72 = arith.constant 0 : index
    %93 = vector.load %arg6[%c0_70, %c0_71, %c0_72] : memref<4x32x32xbf16, #tpu.memory_space<vmem>>, vector<1x32x32xbf16>
    %94 = vector.shape_cast %93 : vector<1x32x32xbf16> to vector<32x32xbf16>
    %cst_73 = arith.constant dense<0.000000e+00> : vector<8x32xf32>
    %95 = tpu.matmul %92, %94, %cst_73 {dimension_numbers = #tpu.dot_dimension_numbers<[1], [0], [0], [1], [0, 0, 1, 1], [], []>} : vector<8x32xbf16>, vector<32x32xbf16>, vector<8x32xf32> -> vector<8x32xf32>
    %c0_74 = arith.constant 0 : index
    %c0_75 = arith.constant 0 : index
    %c0_76 = arith.constant 0 : index
    %96 = vector.load %arg5[%c0_74, %c0_75, %c0_76] : memref<4x32x32xbf16, #tpu.memory_space<vmem>>, vector<1x32x32xbf16>
    %97 = vector.shape_cast %96 : vector<1x32x32xbf16> to vector<32x32xbf16>
    %cst_77 = arith.constant dense<0.000000e+00> : vector<8x32xf32>
    %98 = tpu.matmul %91, %97, %cst_77 {dimension_numbers = #tpu.dot_dimension_numbers<[1], [0], [0], [1], [0, 0, 1, 1], [], []>} : vector<8x32xbf16>, vector<32x32xbf16>, vector<8x32xf32> -> vector<8x32xf32>
    %99 = vector.broadcast %34 : vector<1x32xf32> to vector<8x32xf32>
    %100 = arith.addf %98, %99 : vector<8x32xf32>
    %101 = arith.addf %100, %95 : vector<8x32xf32>
    %c1_78 = arith.constant 1 : index
    %c0_79 = arith.constant 0 : index
    %c0_80 = arith.constant 0 : index
    %102 = vector.load %arg6[%c1_78, %c0_79, %c0_80] : memref<4x32x32xbf16, #tpu.memory_space<vmem>>, vector<1x32x32xbf16>
    %103 = vector.shape_cast %102 : vector<1x32x32xbf16> to vector<32x32xbf16>
    %cst_81 = arith.constant dense<0.000000e+00> : vector<8x32xf32>
    %104 = tpu.matmul %92, %103, %cst_81 {dimension_numbers = #tpu.dot_dimension_numbers<[1], [0], [0], [1], [0, 0, 1, 1], [], []>} : vector<8x32xbf16>, vector<32x32xbf16>, vector<8x32xf32> -> vector<8x32xf32>
    %c1_82 = arith.constant 1 : index
    %c0_83 = arith.constant 0 : index
    %c0_84 = arith.constant 0 : index
    %105 = vector.load %arg5[%c1_82, %c0_83, %c0_84] : memref<4x32x32xbf16, #tpu.memory_space<vmem>>, vector<1x32x32xbf16>
    %106 = vector.shape_cast %105 : vector<1x32x32xbf16> to vector<32x32xbf16>
    %cst_85 = arith.constant dense<0.000000e+00> : vector<8x32xf32>
    %107 = tpu.matmul %91, %106, %cst_85 {dimension_numbers = #tpu.dot_dimension_numbers<[1], [0], [0], [1], [0, 0, 1, 1], [], []>} : vector<8x32xbf16>, vector<32x32xbf16>, vector<8x32xf32> -> vector<8x32xf32>
    %108 = vector.broadcast %36 : vector<1x32xf32> to vector<8x32xf32>
    %109 = arith.addf %107, %108 : vector<8x32xf32>
    %110 = arith.addf %109, %104 : vector<8x32xf32>
    %c2_86 = arith.constant 2 : index
    %c0_87 = arith.constant 0 : index
    %c0_88 = arith.constant 0 : index
    %111 = vector.load %arg6[%c2_86, %c0_87, %c0_88] : memref<4x32x32xbf16, #tpu.memory_space<vmem>>, vector<1x32x32xbf16>
    %112 = vector.shape_cast %111 : vector<1x32x32xbf16> to vector<32x32xbf16>
    %cst_89 = arith.constant dense<0.000000e+00> : vector<8x32xf32>
    %113 = tpu.matmul %92, %112, %cst_89 {dimension_numbers = #tpu.dot_dimension_numbers<[1], [0], [0], [1], [0, 0, 1, 1], [], []>} : vector<8x32xbf16>, vector<32x32xbf16>, vector<8x32xf32> -> vector<8x32xf32>
    %c2_90 = arith.constant 2 : index
    %c0_91 = arith.constant 0 : index
    %c0_92 = arith.constant 0 : index
    %114 = vector.load %arg5[%c2_90, %c0_91, %c0_92] : memref<4x32x32xbf16, #tpu.memory_space<vmem>>, vector<1x32x32xbf16>
    %115 = vector.shape_cast %114 : vector<1x32x32xbf16> to vector<32x32xbf16>
    %cst_93 = arith.constant dense<0.000000e+00> : vector<8x32xf32>
    %116 = tpu.matmul %91, %115, %cst_93 {dimension_numbers = #tpu.dot_dimension_numbers<[1], [0], [0], [1], [0, 0, 1, 1], [], []>} : vector<8x32xbf16>, vector<32x32xbf16>, vector<8x32xf32> -> vector<8x32xf32>
    %117 = vector.broadcast %38 : vector<1x32xf32> to vector<8x32xf32>
    %118 = arith.addf %116, %117 : vector<8x32xf32>
    %119 = arith.addf %118, %113 : vector<8x32xf32>
    %c3_94 = arith.constant 3 : index
    %c0_95 = arith.constant 0 : index
    %c0_96 = arith.constant 0 : index
    %120 = vector.load %arg6[%c3_94, %c0_95, %c0_96] : memref<4x32x32xbf16, #tpu.memory_space<vmem>>, vector<1x32x32xbf16>
    %121 = vector.shape_cast %120 : vector<1x32x32xbf16> to vector<32x32xbf16>
    %cst_97 = arith.constant dense<0.000000e+00> : vector<8x32xf32>
    %122 = tpu.matmul %92, %121, %cst_97 {dimension_numbers = #tpu.dot_dimension_numbers<[1], [0], [0], [1], [0, 0, 1, 1], [], []>} : vector<8x32xbf16>, vector<32x32xbf16>, vector<8x32xf32> -> vector<8x32xf32>
    %c3_98 = arith.constant 3 : index
    %c0_99 = arith.constant 0 : index
    %c0_100 = arith.constant 0 : index
    %123 = vector.load %arg5[%c3_98, %c0_99, %c0_100] : memref<4x32x32xbf16, #tpu.memory_space<vmem>>, vector<1x32x32xbf16>
    %124 = vector.shape_cast %123 : vector<1x32x32xbf16> to vector<32x32xbf16>
    %cst_101 = arith.constant dense<0.000000e+00> : vector<8x32xf32>
    %125 = tpu.matmul %91, %124, %cst_101 {dimension_numbers = #tpu.dot_dimension_numbers<[1], [0], [0], [1], [0, 0, 1, 1], [], []>} : vector<8x32xbf16>, vector<32x32xbf16>, vector<8x32xf32> -> vector<8x32xf32>
    %126 = vector.broadcast %40 : vector<1x32xf32> to vector<8x32xf32>
    %127 = arith.addf %125, %126 : vector<8x32xf32>
    %128 = arith.addf %127, %122 : vector<8x32xf32>
    %129 = arith.negf %101 : vector<8x32xf32>
    %130 = math.exp %129 : vector<8x32xf32>
    %cst_102 = arith.constant 1.000000e+00 : f32
    %131 = vector.broadcast %cst_102 : f32 to vector<8x32xf32>
    %132 = arith.addf %131, %130 : vector<8x32xf32>
    %133 = arith.divf %131, %132 : vector<8x32xf32>
    %134 = arith.negf %110 : vector<8x32xf32>
    %135 = math.exp %134 : vector<8x32xf32>
    %cst_103 = arith.constant 1.000000e+00 : f32
    %136 = vector.broadcast %cst_103 : f32 to vector<8x32xf32>
    %137 = arith.addf %136, %135 : vector<8x32xf32>
    %138 = arith.divf %136, %137 : vector<8x32xf32>
    %139 = math.tanh %119 : vector<8x32xf32>
    %140 = arith.negf %128 : vector<8x32xf32>
    %141 = math.exp %140 : vector<8x32xf32>
    %cst_104 = arith.constant 1.000000e+00 : f32
    %142 = vector.broadcast %cst_104 : f32 to vector<8x32xf32>
    %143 = arith.addf %142, %141 : vector<8x32xf32>
    %144 = arith.divf %142, %143 : vector<8x32xf32>
    %145 = arith.mulf %138, %42 : vector<8x32xf32>
    %146 = arith.mulf %133, %139 : vector<8x32xf32>
    %147 = arith.addf %145, %146 : vector<8x32xf32>
    %148 = math.tanh %147 : vector<8x32xf32>
    %149 = arith.mulf %144, %148 : vector<8x32xf32>
    %c1_i32 = arith.constant 1 : i32
    %c8_i32_105 = arith.constant 8 : i32
    %150 = arith.muli %c1_i32, %c8_i32_105 : i32
    %151 = tpu.assume_multiple %150, 8 : i32
    %152 = arith.truncf %90 : vector<8x32xf32> to vector<8x32xbf16>
    %c0_106 = arith.constant 0 : index
    %c0_107 = arith.constant 0 : index
    %c0_108 = arith.constant 0 : index
    %153 = vector.load %arg3[%c0_106, %c0_107, %c0_108] : memref<4x32x32xbf16, #tpu.memory_space<vmem>>, vector<1x32x32xbf16>
    %154 = vector.shape_cast %153 : vector<1x32x32xbf16> to vector<32x32xbf16>
    %cst_109 = arith.constant dense<0.000000e+00> : vector<8x32xf32>
    %155 = tpu.matmul %152, %154, %cst_109 {dimension_numbers = #tpu.dot_dimension_numbers<[1], [0], [0], [1], [0, 0, 1, 1], [], []>} : vector<8x32xbf16>, vector<32x32xbf16>, vector<8x32xf32> -> vector<8x32xf32>
    %156 = arith.index_cast %151 : i32 to index
    %c0_110 = arith.constant 0 : index
    %157 = vector.load %arg11[%156, %c0_110] : memref<64x32xf32, #tpu.memory_space<vmem>>, vector<8x32xf32>
    %158 = arith.addf %157, %155 : vector<8x32xf32>
    %c1_111 = arith.constant 1 : index
    %c0_112 = arith.constant 0 : index
    %c0_113 = arith.constant 0 : index
    %159 = vector.load %arg3[%c1_111, %c0_112, %c0_113] : memref<4x32x32xbf16, #tpu.memory_space<vmem>>, vector<1x32x32xbf16>
    %160 = vector.shape_cast %159 : vector<1x32x32xbf16> to vector<32x32xbf16>
    %cst_114 = arith.constant dense<0.000000e+00> : vector<8x32xf32>
    %161 = tpu.matmul %152, %160, %cst_114 {dimension_numbers = #tpu.dot_dimension_numbers<[1], [0], [0], [1], [0, 0, 1, 1], [], []>} : vector<8x32xbf16>, vector<32x32xbf16>, vector<8x32xf32> -> vector<8x32xf32>
    %162 = arith.index_cast %151 : i32 to index
    %c0_115 = arith.constant 0 : index
    %163 = vector.load %arg12[%162, %c0_115] : memref<64x32xf32, #tpu.memory_space<vmem>>, vector<8x32xf32>
    %164 = arith.addf %163, %161 : vector<8x32xf32>
    %c2_116 = arith.constant 2 : index
    %c0_117 = arith.constant 0 : index
    %c0_118 = arith.constant 0 : index
    %165 = vector.load %arg3[%c2_116, %c0_117, %c0_118] : memref<4x32x32xbf16, #tpu.memory_space<vmem>>, vector<1x32x32xbf16>
    %166 = vector.shape_cast %165 : vector<1x32x32xbf16> to vector<32x32xbf16>
    %cst_119 = arith.constant dense<0.000000e+00> : vector<8x32xf32>
    %167 = tpu.matmul %152, %166, %cst_119 {dimension_numbers = #tpu.dot_dimension_numbers<[1], [0], [0], [1], [0, 0, 1, 1], [], []>} : vector<8x32xbf16>, vector<32x32xbf16>, vector<8x32xf32> -> vector<8x32xf32>
    %168 = arith.index_cast %151 : i32 to index
    %c0_120 = arith.constant 0 : index
    %169 = vector.load %arg13[%168, %c0_120] : memref<64x32xf32, #tpu.memory_space<vmem>>, vector<8x32xf32>
    %170 = arith.addf %169, %167 : vector<8x32xf32>
    %c3_121 = arith.constant 3 : index
    %c0_122 = arith.constant 0 : index
    %c0_123 = arith.constant 0 : index
    %171 = vector.load %arg3[%c3_121, %c0_122, %c0_123] : memref<4x32x32xbf16, #tpu.memory_space<vmem>>, vector<1x32x32xbf16>
    %172 = vector.shape_cast %171 : vector<1x32x32xbf16> to vector<32x32xbf16>
    %cst_124 = arith.constant dense<0.000000e+00> : vector<8x32xf32>
    %173 = tpu.matmul %152, %172, %cst_124 {dimension_numbers = #tpu.dot_dimension_numbers<[1], [0], [0], [1], [0, 0, 1, 1], [], []>} : vector<8x32xbf16>, vector<32x32xbf16>, vector<8x32xf32> -> vector<8x32xf32>
    %174 = arith.index_cast %151 : i32 to index
    %c0_125 = arith.constant 0 : index
    %175 = vector.load %arg14[%174, %c0_125] : memref<64x32xf32, #tpu.memory_space<vmem>>, vector<8x32xf32>
    %176 = arith.addf %175, %173 : vector<8x32xf32>
    %177 = arith.negf %158 : vector<8x32xf32>
    %178 = math.exp %177 : vector<8x32xf32>
    %cst_126 = arith.constant 1.000000e+00 : f32
    %179 = vector.broadcast %cst_126 : f32 to vector<8x32xf32>
    %180 = arith.addf %179, %178 : vector<8x32xf32>
    %181 = arith.divf %179, %180 : vector<8x32xf32>
    %182 = arith.negf %164 : vector<8x32xf32>
    %183 = math.exp %182 : vector<8x32xf32>
    %cst_127 = arith.constant 1.000000e+00 : f32
    %184 = vector.broadcast %cst_127 : f32 to vector<8x32xf32>
    %185 = arith.addf %184, %183 : vector<8x32xf32>
    %186 = arith.divf %184, %185 : vector<8x32xf32>
    %187 = math.tanh %170 : vector<8x32xf32>
    %188 = arith.negf %176 : vector<8x32xf32>
    %189 = math.exp %188 : vector<8x32xf32>
    %cst_128 = arith.constant 1.000000e+00 : f32
    %190 = vector.broadcast %cst_128 : f32 to vector<8x32xf32>
    %191 = arith.addf %190, %189 : vector<8x32xf32>
    %192 = arith.divf %190, %191 : vector<8x32xf32>
    %193 = arith.mulf %186, %88 : vector<8x32xf32>
    %194 = arith.mulf %181, %187 : vector<8x32xf32>
    %195 = arith.addf %193, %194 : vector<8x32xf32>
    %196 = math.tanh %195 : vector<8x32xf32>
    %197 = arith.mulf %192, %196 : vector<8x32xf32>
    %198 = arith.truncf %197 : vector<8x32xf32> to vector<8x32xbf16>
    %199 = arith.truncf %149 : vector<8x32xf32> to vector<8x32xbf16>
    %c0_129 = arith.constant 0 : index
    %c0_130 = arith.constant 0 : index
    %c0_131 = arith.constant 0 : index
    %200 = vector.load %arg6[%c0_129, %c0_130, %c0_131] : memref<4x32x32xbf16, #tpu.memory_space<vmem>>, vector<1x32x32xbf16>
    %201 = vector.shape_cast %200 : vector<1x32x32xbf16> to vector<32x32xbf16>
    %cst_132 = arith.constant dense<0.000000e+00> : vector<8x32xf32>
    %202 = tpu.matmul %199, %201, %cst_132 {dimension_numbers = #tpu.dot_dimension_numbers<[1], [0], [0], [1], [0, 0, 1, 1], [], []>} : vector<8x32xbf16>, vector<32x32xbf16>, vector<8x32xf32> -> vector<8x32xf32>
    %c0_133 = arith.constant 0 : index
    %c0_134 = arith.constant 0 : index
    %c0_135 = arith.constant 0 : index
    %203 = vector.load %arg5[%c0_133, %c0_134, %c0_135] : memref<4x32x32xbf16, #tpu.memory_space<vmem>>, vector<1x32x32xbf16>
    %204 = vector.shape_cast %203 : vector<1x32x32xbf16> to vector<32x32xbf16>
    %cst_136 = arith.constant dense<0.000000e+00> : vector<8x32xf32>
    %205 = tpu.matmul %198, %204, %cst_136 {dimension_numbers = #tpu.dot_dimension_numbers<[1], [0], [0], [1], [0, 0, 1, 1], [], []>} : vector<8x32xbf16>, vector<32x32xbf16>, vector<8x32xf32> -> vector<8x32xf32>
    %206 = vector.broadcast %34 : vector<1x32xf32> to vector<8x32xf32>
    %207 = arith.addf %205, %206 : vector<8x32xf32>
    %208 = arith.addf %207, %202 : vector<8x32xf32>
    %c1_137 = arith.constant 1 : index
    %c0_138 = arith.constant 0 : index
    %c0_139 = arith.constant 0 : index
    %209 = vector.load %arg6[%c1_137, %c0_138, %c0_139] : memref<4x32x32xbf16, #tpu.memory_space<vmem>>, vector<1x32x32xbf16>
    %210 = vector.shape_cast %209 : vector<1x32x32xbf16> to vector<32x32xbf16>
    %cst_140 = arith.constant dense<0.000000e+00> : vector<8x32xf32>
    %211 = tpu.matmul %199, %210, %cst_140 {dimension_numbers = #tpu.dot_dimension_numbers<[1], [0], [0], [1], [0, 0, 1, 1], [], []>} : vector<8x32xbf16>, vector<32x32xbf16>, vector<8x32xf32> -> vector<8x32xf32>
    %c1_141 = arith.constant 1 : index
    %c0_142 = arith.constant 0 : index
    %c0_143 = arith.constant 0 : index
    %212 = vector.load %arg5[%c1_141, %c0_142, %c0_143] : memref<4x32x32xbf16, #tpu.memory_space<vmem>>, vector<1x32x32xbf16>
    %213 = vector.shape_cast %212 : vector<1x32x32xbf16> to vector<32x32xbf16>
    %cst_144 = arith.constant dense<0.000000e+00> : vector<8x32xf32>
    %214 = tpu.matmul %198, %213, %cst_144 {dimension_numbers = #tpu.dot_dimension_numbers<[1], [0], [0], [1], [0, 0, 1, 1], [], []>} : vector<8x32xbf16>, vector<32x32xbf16>, vector<8x32xf32> -> vector<8x32xf32>
    %215 = vector.broadcast %36 : vector<1x32xf32> to vector<8x32xf32>
    %216 = arith.addf %214, %215 : vector<8x32xf32>
    %217 = arith.addf %216, %211 : vector<8x32xf32>
    %c2_145 = arith.constant 2 : index
    %c0_146 = arith.constant 0 : index
    %c0_147 = arith.constant 0 : index
    %218 = vector.load %arg6[%c2_145, %c0_146, %c0_147] : memref<4x32x32xbf16, #tpu.memory_space<vmem>>, vector<1x32x32xbf16>
    %219 = vector.shape_cast %218 : vector<1x32x32xbf16> to vector<32x32xbf16>
    %cst_148 = arith.constant dense<0.000000e+00> : vector<8x32xf32>
    %220 = tpu.matmul %199, %219, %cst_148 {dimension_numbers = #tpu.dot_dimension_numbers<[1], [0], [0], [1], [0, 0, 1, 1], [], []>} : vector<8x32xbf16>, vector<32x32xbf16>, vector<8x32xf32> -> vector<8x32xf32>
    %c2_149 = arith.constant 2 : index
    %c0_150 = arith.constant 0 : index
    %c0_151 = arith.constant 0 : index
    %221 = vector.load %arg5[%c2_149, %c0_150, %c0_151] : memref<4x32x32xbf16, #tpu.memory_space<vmem>>, vector<1x32x32xbf16>
    %222 = vector.shape_cast %221 : vector<1x32x32xbf16> to vector<32x32xbf16>
    %cst_152 = arith.constant dense<0.000000e+00> : vector<8x32xf32>
    %223 = tpu.matmul %198, %222, %cst_152 {dimension_numbers = #tpu.dot_dimension_numbers<[1], [0], [0], [1], [0, 0, 1, 1], [], []>} : vector<8x32xbf16>, vector<32x32xbf16>, vector<8x32xf32> -> vector<8x32xf32>
    %224 = vector.broadcast %38 : vector<1x32xf32> to vector<8x32xf32>
    %225 = arith.addf %223, %224 : vector<8x32xf32>
    %226 = arith.addf %225, %220 : vector<8x32xf32>
    %c3_153 = arith.constant 3 : index
    %c0_154 = arith.constant 0 : index
    %c0_155 = arith.constant 0 : index
    %227 = vector.load %arg6[%c3_153, %c0_154, %c0_155] : memref<4x32x32xbf16, #tpu.memory_space<vmem>>, vector<1x32x32xbf16>
    %228 = vector.shape_cast %227 : vector<1x32x32xbf16> to vector<32x32xbf16>
    %cst_156 = arith.constant dense<0.000000e+00> : vector<8x32xf32>
    %229 = tpu.matmul %199, %228, %cst_156 {dimension_numbers = #tpu.dot_dimension_numbers<[1], [0], [0], [1], [0, 0, 1, 1], [], []>} : vector<8x32xbf16>, vector<32x32xbf16>, vector<8x32xf32> -> vector<8x32xf32>
    %c3_157 = arith.constant 3 : index
    %c0_158 = arith.constant 0 : index
    %c0_159 = arith.constant 0 : index
    %230 = vector.load %arg5[%c3_157, %c0_158, %c0_159] : memref<4x32x32xbf16, #tpu.memory_space<vmem>>, vector<1x32x32xbf16>
    %231 = vector.shape_cast %230 : vector<1x32x32xbf16> to vector<32x32xbf16>
    %cst_160 = arith.constant dense<0.000000e+00> : vector<8x32xf32>
    %232 = tpu.matmul %198, %231, %cst_160 {dimension_numbers = #tpu.dot_dimension_numbers<[1], [0], [0], [1], [0, 0, 1, 1], [], []>} : vector<8x32xbf16>, vector<32x32xbf16>, vector<8x32xf32> -> vector<8x32xf32>
    %233 = vector.broadcast %40 : vector<1x32xf32> to vector<8x32xf32>
    %234 = arith.addf %232, %233 : vector<8x32xf32>
    %235 = arith.addf %234, %229 : vector<8x32xf32>
    %236 = arith.negf %208 : vector<8x32xf32>
    %237 = math.exp %236 : vector<8x32xf32>
    %cst_161 = arith.constant 1.000000e+00 : f32
    %238 = vector.broadcast %cst_161 : f32 to vector<8x32xf32>
    %239 = arith.addf %238, %237 : vector<8x32xf32>
    %240 = arith.divf %238, %239 : vector<8x32xf32>
    %241 = arith.negf %217 : vector<8x32xf32>
    %242 = math.exp %241 : vector<8x32xf32>
    %cst_162 = arith.constant 1.000000e+00 : f32
    %243 = vector.broadcast %cst_162 : f32 to vector<8x32xf32>
    %244 = arith.addf %243, %242 : vector<8x32xf32>
    %245 = arith.divf %243, %244 : vector<8x32xf32>
    %246 = math.tanh %226 : vector<8x32xf32>
    %247 = arith.negf %235 : vector<8x32xf32>
    %248 = math.exp %247 : vector<8x32xf32>
    %cst_163 = arith.constant 1.000000e+00 : f32
    %249 = vector.broadcast %cst_163 : f32 to vector<8x32xf32>
    %250 = arith.addf %249, %248 : vector<8x32xf32>
    %251 = arith.divf %249, %250 : vector<8x32xf32>
    %252 = arith.mulf %245, %147 : vector<8x32xf32>
    %253 = arith.mulf %240, %246 : vector<8x32xf32>
    %254 = arith.addf %252, %253 : vector<8x32xf32>
    %255 = math.tanh %254 : vector<8x32xf32>
    %256 = arith.mulf %251, %255 : vector<8x32xf32>
    %c2_i32 = arith.constant 2 : i32
    %c8_i32_164 = arith.constant 8 : i32
    %257 = arith.muli %c2_i32, %c8_i32_164 : i32
    %258 = tpu.assume_multiple %257, 8 : i32
    %259 = arith.truncf %197 : vector<8x32xf32> to vector<8x32xbf16>
    %c0_165 = arith.constant 0 : index
    %c0_166 = arith.constant 0 : index
    %c0_167 = arith.constant 0 : index
    %260 = vector.load %arg3[%c0_165, %c0_166, %c0_167] : memref<4x32x32xbf16, #tpu.memory_space<vmem>>, vector<1x32x32xbf16>
    %261 = vector.shape_cast %260 : vector<1x32x32xbf16> to vector<32x32xbf16>
    %cst_168 = arith.constant dense<0.000000e+00> : vector<8x32xf32>
    %262 = tpu.matmul %259, %261, %cst_168 {dimension_numbers = #tpu.dot_dimension_numbers<[1], [0], [0], [1], [0, 0, 1, 1], [], []>} : vector<8x32xbf16>, vector<32x32xbf16>, vector<8x32xf32> -> vector<8x32xf32>
    %263 = arith.index_cast %258 : i32 to index
    %c0_169 = arith.constant 0 : index
    %264 = vector.load %arg11[%263, %c0_169] : memref<64x32xf32, #tpu.memory_space<vmem>>, vector<8x32xf32>
    %265 = arith.addf %264, %262 : vector<8x32xf32>
    %c1_170 = arith.constant 1 : index
    %c0_171 = arith.constant 0 : index
    %c0_172 = arith.constant 0 : index
    %266 = vector.load %arg3[%c1_170, %c0_171, %c0_172] : memref<4x32x32xbf16, #tpu.memory_space<vmem>>, vector<1x32x32xbf16>
    %267 = vector.shape_cast %266 : vector<1x32x32xbf16> to vector<32x32xbf16>
    %cst_173 = arith.constant dense<0.000000e+00> : vector<8x32xf32>
    %268 = tpu.matmul %259, %267, %cst_173 {dimension_numbers = #tpu.dot_dimension_numbers<[1], [0], [0], [1], [0, 0, 1, 1], [], []>} : vector<8x32xbf16>, vector<32x32xbf16>, vector<8x32xf32> -> vector<8x32xf32>
    %269 = arith.index_cast %258 : i32 to index
    %c0_174 = arith.constant 0 : index
    %270 = vector.load %arg12[%269, %c0_174] : memref<64x32xf32, #tpu.memory_space<vmem>>, vector<8x32xf32>
    %271 = arith.addf %270, %268 : vector<8x32xf32>
    %c2_175 = arith.constant 2 : index
    %c0_176 = arith.constant 0 : index
    %c0_177 = arith.constant 0 : index
    %272 = vector.load %arg3[%c2_175, %c0_176, %c0_177] : memref<4x32x32xbf16, #tpu.memory_space<vmem>>, vector<1x32x32xbf16>
    %273 = vector.shape_cast %272 : vector<1x32x32xbf16> to vector<32x32xbf16>
    %cst_178 = arith.constant dense<0.000000e+00> : vector<8x32xf32>
    %274 = tpu.matmul %259, %273, %cst_178 {dimension_numbers = #tpu.dot_dimension_numbers<[1], [0], [0], [1], [0, 0, 1, 1], [], []>} : vector<8x32xbf16>, vector<32x32xbf16>, vector<8x32xf32> -> vector<8x32xf32>
    %275 = arith.index_cast %258 : i32 to index
    %c0_179 = arith.constant 0 : index
    %276 = vector.load %arg13[%275, %c0_179] : memref<64x32xf32, #tpu.memory_space<vmem>>, vector<8x32xf32>
    %277 = arith.addf %276, %274 : vector<8x32xf32>
    %c3_180 = arith.constant 3 : index
    %c0_181 = arith.constant 0 : index
    %c0_182 = arith.constant 0 : index
    %278 = vector.load %arg3[%c3_180, %c0_181, %c0_182] : memref<4x32x32xbf16, #tpu.memory_space<vmem>>, vector<1x32x32xbf16>
    %279 = vector.shape_cast %278 : vector<1x32x32xbf16> to vector<32x32xbf16>
    %cst_183 = arith.constant dense<0.000000e+00> : vector<8x32xf32>
    %280 = tpu.matmul %259, %279, %cst_183 {dimension_numbers = #tpu.dot_dimension_numbers<[1], [0], [0], [1], [0, 0, 1, 1], [], []>} : vector<8x32xbf16>, vector<32x32xbf16>, vector<8x32xf32> -> vector<8x32xf32>
    %281 = arith.index_cast %258 : i32 to index
    %c0_184 = arith.constant 0 : index
    %282 = vector.load %arg14[%281, %c0_184] : memref<64x32xf32, #tpu.memory_space<vmem>>, vector<8x32xf32>
    %283 = arith.addf %282, %280 : vector<8x32xf32>
    %284 = arith.negf %265 : vector<8x32xf32>
    %285 = math.exp %284 : vector<8x32xf32>
    %cst_185 = arith.constant 1.000000e+00 : f32
    %286 = vector.broadcast %cst_185 : f32 to vector<8x32xf32>
    %287 = arith.addf %286, %285 : vector<8x32xf32>
    %288 = arith.divf %286, %287 : vector<8x32xf32>
    %289 = arith.negf %271 : vector<8x32xf32>
    %290 = math.exp %289 : vector<8x32xf32>
    %cst_186 = arith.constant 1.000000e+00 : f32
    %291 = vector.broadcast %cst_186 : f32 to vector<8x32xf32>
    %292 = arith.addf %291, %290 : vector<8x32xf32>
    %293 = arith.divf %291, %292 : vector<8x32xf32>
    %294 = math.tanh %277 : vector<8x32xf32>
    %295 = arith.negf %283 : vector<8x32xf32>
    %296 = math.exp %295 : vector<8x32xf32>
    %cst_187 = arith.constant 1.000000e+00 : f32
    %297 = vector.broadcast %cst_187 : f32 to vector<8x32xf32>
    %298 = arith.addf %297, %296 : vector<8x32xf32>
    %299 = arith.divf %297, %298 : vector<8x32xf32>
    %300 = arith.mulf %293, %195 : vector<8x32xf32>
    %301 = arith.mulf %288, %294 : vector<8x32xf32>
    %302 = arith.addf %300, %301 : vector<8x32xf32>
    %303 = math.tanh %302 : vector<8x32xf32>
    %304 = arith.mulf %299, %303 : vector<8x32xf32>
    %305 = arith.truncf %304 : vector<8x32xf32> to vector<8x32xbf16>
    %306 = arith.truncf %256 : vector<8x32xf32> to vector<8x32xbf16>
    %c0_188 = arith.constant 0 : index
    %c0_189 = arith.constant 0 : index
    %c0_190 = arith.constant 0 : index
    %307 = vector.load %arg6[%c0_188, %c0_189, %c0_190] : memref<4x32x32xbf16, #tpu.memory_space<vmem>>, vector<1x32x32xbf16>
    %308 = vector.shape_cast %307 : vector<1x32x32xbf16> to vector<32x32xbf16>
    %cst_191 = arith.constant dense<0.000000e+00> : vector<8x32xf32>
    %309 = tpu.matmul %306, %308, %cst_191 {dimension_numbers = #tpu.dot_dimension_numbers<[1], [0], [0], [1], [0, 0, 1, 1], [], []>} : vector<8x32xbf16>, vector<32x32xbf16>, vector<8x32xf32> -> vector<8x32xf32>
    %c0_192 = arith.constant 0 : index
    %c0_193 = arith.constant 0 : index
    %c0_194 = arith.constant 0 : index
    %310 = vector.load %arg5[%c0_192, %c0_193, %c0_194] : memref<4x32x32xbf16, #tpu.memory_space<vmem>>, vector<1x32x32xbf16>
    %311 = vector.shape_cast %310 : vector<1x32x32xbf16> to vector<32x32xbf16>
    %cst_195 = arith.constant dense<0.000000e+00> : vector<8x32xf32>
    %312 = tpu.matmul %305, %311, %cst_195 {dimension_numbers = #tpu.dot_dimension_numbers<[1], [0], [0], [1], [0, 0, 1, 1], [], []>} : vector<8x32xbf16>, vector<32x32xbf16>, vector<8x32xf32> -> vector<8x32xf32>
    %313 = vector.broadcast %34 : vector<1x32xf32> to vector<8x32xf32>
    %314 = arith.addf %312, %313 : vector<8x32xf32>
    %315 = arith.addf %314, %309 : vector<8x32xf32>
    %c1_196 = arith.constant 1 : index
    %c0_197 = arith.constant 0 : index
    %c0_198 = arith.constant 0 : index
    %316 = vector.load %arg6[%c1_196, %c0_197, %c0_198] : memref<4x32x32xbf16, #tpu.memory_space<vmem>>, vector<1x32x32xbf16>
    %317 = vector.shape_cast %316 : vector<1x32x32xbf16> to vector<32x32xbf16>
    %cst_199 = arith.constant dense<0.000000e+00> : vector<8x32xf32>
    %318 = tpu.matmul %306, %317, %cst_199 {dimension_numbers = #tpu.dot_dimension_numbers<[1], [0], [0], [1], [0, 0, 1, 1], [], []>} : vector<8x32xbf16>, vector<32x32xbf16>, vector<8x32xf32> -> vector<8x32xf32>
    %c1_200 = arith.constant 1 : index
    %c0_201 = arith.constant 0 : index
    %c0_202 = arith.constant 0 : index
    %319 = vector.load %arg5[%c1_200, %c0_201, %c0_202] : memref<4x32x32xbf16, #tpu.memory_space<vmem>>, vector<1x32x32xbf16>
    %320 = vector.shape_cast %319 : vector<1x32x32xbf16> to vector<32x32xbf16>
    %cst_203 = arith.constant dense<0.000000e+00> : vector<8x32xf32>
    %321 = tpu.matmul %305, %320, %cst_203 {dimension_numbers = #tpu.dot_dimension_numbers<[1], [0], [0], [1], [0, 0, 1, 1], [], []>} : vector<8x32xbf16>, vector<32x32xbf16>, vector<8x32xf32> -> vector<8x32xf32>
    %322 = vector.broadcast %36 : vector<1x32xf32> to vector<8x32xf32>
    %323 = arith.addf %321, %322 : vector<8x32xf32>
    %324 = arith.addf %323, %318 : vector<8x32xf32>
    %c2_204 = arith.constant 2 : index
    %c0_205 = arith.constant 0 : index
    %c0_206 = arith.constant 0 : index
    %325 = vector.load %arg6[%c2_204, %c0_205, %c0_206] : memref<4x32x32xbf16, #tpu.memory_space<vmem>>, vector<1x32x32xbf16>
    %326 = vector.shape_cast %325 : vector<1x32x32xbf16> to vector<32x32xbf16>
    %cst_207 = arith.constant dense<0.000000e+00> : vector<8x32xf32>
    %327 = tpu.matmul %306, %326, %cst_207 {dimension_numbers = #tpu.dot_dimension_numbers<[1], [0], [0], [1], [0, 0, 1, 1], [], []>} : vector<8x32xbf16>, vector<32x32xbf16>, vector<8x32xf32> -> vector<8x32xf32>
    %c2_208 = arith.constant 2 : index
    %c0_209 = arith.constant 0 : index
    %c0_210 = arith.constant 0 : index
    %328 = vector.load %arg5[%c2_208, %c0_209, %c0_210] : memref<4x32x32xbf16, #tpu.memory_space<vmem>>, vector<1x32x32xbf16>
    %329 = vector.shape_cast %328 : vector<1x32x32xbf16> to vector<32x32xbf16>
    %cst_211 = arith.constant dense<0.000000e+00> : vector<8x32xf32>
    %330 = tpu.matmul %305, %329, %cst_211 {dimension_numbers = #tpu.dot_dimension_numbers<[1], [0], [0], [1], [0, 0, 1, 1], [], []>} : vector<8x32xbf16>, vector<32x32xbf16>, vector<8x32xf32> -> vector<8x32xf32>
    %331 = vector.broadcast %38 : vector<1x32xf32> to vector<8x32xf32>
    %332 = arith.addf %330, %331 : vector<8x32xf32>
    %333 = arith.addf %332, %327 : vector<8x32xf32>
    %c3_212 = arith.constant 3 : index
    %c0_213 = arith.constant 0 : index
    %c0_214 = arith.constant 0 : index
    %334 = vector.load %arg6[%c3_212, %c0_213, %c0_214] : memref<4x32x32xbf16, #tpu.memory_space<vmem>>, vector<1x32x32xbf16>
    %335 = vector.shape_cast %334 : vector<1x32x32xbf16> to vector<32x32xbf16>
    %cst_215 = arith.constant dense<0.000000e+00> : vector<8x32xf32>
    %336 = tpu.matmul %306, %335, %cst_215 {dimension_numbers = #tpu.dot_dimension_numbers<[1], [0], [0], [1], [0, 0, 1, 1], [], []>} : vector<8x32xbf16>, vector<32x32xbf16>, vector<8x32xf32> -> vector<8x32xf32>
    %c3_216 = arith.constant 3 : index
    %c0_217 = arith.constant 0 : index
    %c0_218 = arith.constant 0 : index
    %337 = vector.load %arg5[%c3_216, %c0_217, %c0_218] : memref<4x32x32xbf16, #tpu.memory_space<vmem>>, vector<1x32x32xbf16>
    %338 = vector.shape_cast %337 : vector<1x32x32xbf16> to vector<32x32xbf16>
    %cst_219 = arith.constant dense<0.000000e+00> : vector<8x32xf32>
    %339 = tpu.matmul %305, %338, %cst_219 {dimension_numbers = #tpu.dot_dimension_numbers<[1], [0], [0], [1], [0, 0, 1, 1], [], []>} : vector<8x32xbf16>, vector<32x32xbf16>, vector<8x32xf32> -> vector<8x32xf32>
    %340 = vector.broadcast %40 : vector<1x32xf32> to vector<8x32xf32>
    %341 = arith.addf %339, %340 : vector<8x32xf32>
    %342 = arith.addf %341, %336 : vector<8x32xf32>
    %343 = arith.negf %315 : vector<8x32xf32>
    %344 = math.exp %343 : vector<8x32xf32>
    %cst_220 = arith.constant 1.000000e+00 : f32
    %345 = vector.broadcast %cst_220 : f32 to vector<8x32xf32>
    %346 = arith.addf %345, %344 : vector<8x32xf32>
    %347 = arith.divf %345, %346 : vector<8x32xf32>
    %348 = arith.negf %324 : vector<8x32xf32>
    %349 = math.exp %348 : vector<8x32xf32>
    %cst_221 = arith.constant 1.000000e+00 : f32
    %350 = vector.broadcast %cst_221 : f32 to vector<8x32xf32>
    %351 = arith.addf %350, %349 : vector<8x32xf32>
    %352 = arith.divf %350, %351 : vector<8x32xf32>
    %353 = math.tanh %333 : vector<8x32xf32>
    %354 = arith.negf %342 : vector<8x32xf32>
    %355 = math.exp %354 : vector<8x32xf32>
    %cst_222 = arith.constant 1.000000e+00 : f32
    %356 = vector.broadcast %cst_222 : f32 to vector<8x32xf32>
    %357 = arith.addf %356, %355 : vector<8x32xf32>
    %358 = arith.divf %356, %357 : vector<8x32xf32>
    %359 = arith.mulf %352, %254 : vector<8x32xf32>
    %360 = arith.mulf %347, %353 : vector<8x32xf32>
    %361 = arith.addf %359, %360 : vector<8x32xf32>
    %362 = math.tanh %361 : vector<8x32xf32>
    %363 = arith.mulf %358, %362 : vector<8x32xf32>
    %c3_i32 = arith.constant 3 : i32
    %c8_i32_223 = arith.constant 8 : i32
    %364 = arith.muli %c3_i32, %c8_i32_223 : i32
    %365 = tpu.assume_multiple %364, 8 : i32
    %366 = arith.truncf %304 : vector<8x32xf32> to vector<8x32xbf16>
    %c0_224 = arith.constant 0 : index
    %c0_225 = arith.constant 0 : index
    %c0_226 = arith.constant 0 : index
    %367 = vector.load %arg3[%c0_224, %c0_225, %c0_226] : memref<4x32x32xbf16, #tpu.memory_space<vmem>>, vector<1x32x32xbf16>
    %368 = vector.shape_cast %367 : vector<1x32x32xbf16> to vector<32x32xbf16>
    %cst_227 = arith.constant dense<0.000000e+00> : vector<8x32xf32>
    %369 = tpu.matmul %366, %368, %cst_227 {dimension_numbers = #tpu.dot_dimension_numbers<[1], [0], [0], [1], [0, 0, 1, 1], [], []>} : vector<8x32xbf16>, vector<32x32xbf16>, vector<8x32xf32> -> vector<8x32xf32>
    %370 = arith.index_cast %365 : i32 to index
    %c0_228 = arith.constant 0 : index
    %371 = vector.load %arg11[%370, %c0_228] : memref<64x32xf32, #tpu.memory_space<vmem>>, vector<8x32xf32>
    %372 = arith.addf %371, %369 : vector<8x32xf32>
    %c1_229 = arith.constant 1 : index
    %c0_230 = arith.constant 0 : index
    %c0_231 = arith.constant 0 : index
    %373 = vector.load %arg3[%c1_229, %c0_230, %c0_231] : memref<4x32x32xbf16, #tpu.memory_space<vmem>>, vector<1x32x32xbf16>
    %374 = vector.shape_cast %373 : vector<1x32x32xbf16> to vector<32x32xbf16>
    %cst_232 = arith.constant dense<0.000000e+00> : vector<8x32xf32>
    %375 = tpu.matmul %366, %374, %cst_232 {dimension_numbers = #tpu.dot_dimension_numbers<[1], [0], [0], [1], [0, 0, 1, 1], [], []>} : vector<8x32xbf16>, vector<32x32xbf16>, vector<8x32xf32> -> vector<8x32xf32>
    %376 = arith.index_cast %365 : i32 to index
    %c0_233 = arith.constant 0 : index
    %377 = vector.load %arg12[%376, %c0_233] : memref<64x32xf32, #tpu.memory_space<vmem>>, vector<8x32xf32>
    %378 = arith.addf %377, %375 : vector<8x32xf32>
    %c2_234 = arith.constant 2 : index
    %c0_235 = arith.constant 0 : index
    %c0_236 = arith.constant 0 : index
    %379 = vector.load %arg3[%c2_234, %c0_235, %c0_236] : memref<4x32x32xbf16, #tpu.memory_space<vmem>>, vector<1x32x32xbf16>
    %380 = vector.shape_cast %379 : vector<1x32x32xbf16> to vector<32x32xbf16>
    %cst_237 = arith.constant dense<0.000000e+00> : vector<8x32xf32>
    %381 = tpu.matmul %366, %380, %cst_237 {dimension_numbers = #tpu.dot_dimension_numbers<[1], [0], [0], [1], [0, 0, 1, 1], [], []>} : vector<8x32xbf16>, vector<32x32xbf16>, vector<8x32xf32> -> vector<8x32xf32>
    %382 = arith.index_cast %365 : i32 to index
    %c0_238 = arith.constant 0 : index
    %383 = vector.load %arg13[%382, %c0_238] : memref<64x32xf32, #tpu.memory_space<vmem>>, vector<8x32xf32>
    %384 = arith.addf %383, %381 : vector<8x32xf32>
    %c3_239 = arith.constant 3 : index
    %c0_240 = arith.constant 0 : index
    %c0_241 = arith.constant 0 : index
    %385 = vector.load %arg3[%c3_239, %c0_240, %c0_241] : memref<4x32x32xbf16, #tpu.memory_space<vmem>>, vector<1x32x32xbf16>
    %386 = vector.shape_cast %385 : vector<1x32x32xbf16> to vector<32x32xbf16>
    %cst_242 = arith.constant dense<0.000000e+00> : vector<8x32xf32>
    %387 = tpu.matmul %366, %386, %cst_242 {dimension_numbers = #tpu.dot_dimension_numbers<[1], [0], [0], [1], [0, 0, 1, 1], [], []>} : vector<8x32xbf16>, vector<32x32xbf16>, vector<8x32xf32> -> vector<8x32xf32>
    %388 = arith.index_cast %365 : i32 to index
    %c0_243 = arith.constant 0 : index
    %389 = vector.load %arg14[%388, %c0_243] : memref<64x32xf32, #tpu.memory_space<vmem>>, vector<8x32xf32>
    %390 = arith.addf %389, %387 : vector<8x32xf32>
    %391 = arith.negf %372 : vector<8x32xf32>
    %392 = math.exp %391 : vector<8x32xf32>
    %cst_244 = arith.constant 1.000000e+00 : f32
    %393 = vector.broadcast %cst_244 : f32 to vector<8x32xf32>
    %394 = arith.addf %393, %392 : vector<8x32xf32>
    %395 = arith.divf %393, %394 : vector<8x32xf32>
    %396 = arith.negf %378 : vector<8x32xf32>
    %397 = math.exp %396 : vector<8x32xf32>
    %cst_245 = arith.constant 1.000000e+00 : f32
    %398 = vector.broadcast %cst_245 : f32 to vector<8x32xf32>
    %399 = arith.addf %398, %397 : vector<8x32xf32>
    %400 = arith.divf %398, %399 : vector<8x32xf32>
    %401 = math.tanh %384 : vector<8x32xf32>
    %402 = arith.negf %390 : vector<8x32xf32>
    %403 = math.exp %402 : vector<8x32xf32>
    %cst_246 = arith.constant 1.000000e+00 : f32
    %404 = vector.broadcast %cst_246 : f32 to vector<8x32xf32>
    %405 = arith.addf %404, %403 : vector<8x32xf32>
    %406 = arith.divf %404, %405 : vector<8x32xf32>
    %407 = arith.mulf %400, %302 : vector<8x32xf32>
    %408 = arith.mulf %395, %401 : vector<8x32xf32>
    %409 = arith.addf %407, %408 : vector<8x32xf32>
    %410 = math.tanh %409 : vector<8x32xf32>
    %411 = arith.mulf %406, %410 : vector<8x32xf32>
    %412 = arith.truncf %411 : vector<8x32xf32> to vector<8x32xbf16>
    %413 = arith.truncf %363 : vector<8x32xf32> to vector<8x32xbf16>
    %c0_247 = arith.constant 0 : index
    %c0_248 = arith.constant 0 : index
    %c0_249 = arith.constant 0 : index
    %414 = vector.load %arg6[%c0_247, %c0_248, %c0_249] : memref<4x32x32xbf16, #tpu.memory_space<vmem>>, vector<1x32x32xbf16>
    %415 = vector.shape_cast %414 : vector<1x32x32xbf16> to vector<32x32xbf16>
    %cst_250 = arith.constant dense<0.000000e+00> : vector<8x32xf32>
    %416 = tpu.matmul %413, %415, %cst_250 {dimension_numbers = #tpu.dot_dimension_numbers<[1], [0], [0], [1], [0, 0, 1, 1], [], []>} : vector<8x32xbf16>, vector<32x32xbf16>, vector<8x32xf32> -> vector<8x32xf32>
    %c0_251 = arith.constant 0 : index
    %c0_252 = arith.constant 0 : index
    %c0_253 = arith.constant 0 : index
    %417 = vector.load %arg5[%c0_251, %c0_252, %c0_253] : memref<4x32x32xbf16, #tpu.memory_space<vmem>>, vector<1x32x32xbf16>
    %418 = vector.shape_cast %417 : vector<1x32x32xbf16> to vector<32x32xbf16>
    %cst_254 = arith.constant dense<0.000000e+00> : vector<8x32xf32>
    %419 = tpu.matmul %412, %418, %cst_254 {dimension_numbers = #tpu.dot_dimension_numbers<[1], [0], [0], [1], [0, 0, 1, 1], [], []>} : vector<8x32xbf16>, vector<32x32xbf16>, vector<8x32xf32> -> vector<8x32xf32>
    %420 = vector.broadcast %34 : vector<1x32xf32> to vector<8x32xf32>
    %421 = arith.addf %419, %420 : vector<8x32xf32>
    %422 = arith.addf %421, %416 : vector<8x32xf32>
    %c1_255 = arith.constant 1 : index
    %c0_256 = arith.constant 0 : index
    %c0_257 = arith.constant 0 : index
    %423 = vector.load %arg6[%c1_255, %c0_256, %c0_257] : memref<4x32x32xbf16, #tpu.memory_space<vmem>>, vector<1x32x32xbf16>
    %424 = vector.shape_cast %423 : vector<1x32x32xbf16> to vector<32x32xbf16>
    %cst_258 = arith.constant dense<0.000000e+00> : vector<8x32xf32>
    %425 = tpu.matmul %413, %424, %cst_258 {dimension_numbers = #tpu.dot_dimension_numbers<[1], [0], [0], [1], [0, 0, 1, 1], [], []>} : vector<8x32xbf16>, vector<32x32xbf16>, vector<8x32xf32> -> vector<8x32xf32>
    %c1_259 = arith.constant 1 : index
    %c0_260 = arith.constant 0 : index
    %c0_261 = arith.constant 0 : index
    %426 = vector.load %arg5[%c1_259, %c0_260, %c0_261] : memref<4x32x32xbf16, #tpu.memory_space<vmem>>, vector<1x32x32xbf16>
    %427 = vector.shape_cast %426 : vector<1x32x32xbf16> to vector<32x32xbf16>
    %cst_262 = arith.constant dense<0.000000e+00> : vector<8x32xf32>
    %428 = tpu.matmul %412, %427, %cst_262 {dimension_numbers = #tpu.dot_dimension_numbers<[1], [0], [0], [1], [0, 0, 1, 1], [], []>} : vector<8x32xbf16>, vector<32x32xbf16>, vector<8x32xf32> -> vector<8x32xf32>
    %429 = vector.broadcast %36 : vector<1x32xf32> to vector<8x32xf32>
    %430 = arith.addf %428, %429 : vector<8x32xf32>
    %431 = arith.addf %430, %425 : vector<8x32xf32>
    %c2_263 = arith.constant 2 : index
    %c0_264 = arith.constant 0 : index
    %c0_265 = arith.constant 0 : index
    %432 = vector.load %arg6[%c2_263, %c0_264, %c0_265] : memref<4x32x32xbf16, #tpu.memory_space<vmem>>, vector<1x32x32xbf16>
    %433 = vector.shape_cast %432 : vector<1x32x32xbf16> to vector<32x32xbf16>
    %cst_266 = arith.constant dense<0.000000e+00> : vector<8x32xf32>
    %434 = tpu.matmul %413, %433, %cst_266 {dimension_numbers = #tpu.dot_dimension_numbers<[1], [0], [0], [1], [0, 0, 1, 1], [], []>} : vector<8x32xbf16>, vector<32x32xbf16>, vector<8x32xf32> -> vector<8x32xf32>
    %c2_267 = arith.constant 2 : index
    %c0_268 = arith.constant 0 : index
    %c0_269 = arith.constant 0 : index
    %435 = vector.load %arg5[%c2_267, %c0_268, %c0_269] : memref<4x32x32xbf16, #tpu.memory_space<vmem>>, vector<1x32x32xbf16>
    %436 = vector.shape_cast %435 : vector<1x32x32xbf16> to vector<32x32xbf16>
    %cst_270 = arith.constant dense<0.000000e+00> : vector<8x32xf32>
    %437 = tpu.matmul %412, %436, %cst_270 {dimension_numbers = #tpu.dot_dimension_numbers<[1], [0], [0], [1], [0, 0, 1, 1], [], []>} : vector<8x32xbf16>, vector<32x32xbf16>, vector<8x32xf32> -> vector<8x32xf32>
    %438 = vector.broadcast %38 : vector<1x32xf32> to vector<8x32xf32>
    %439 = arith.addf %437, %438 : vector<8x32xf32>
    %440 = arith.addf %439, %434 : vector<8x32xf32>
    %c3_271 = arith.constant 3 : index
    %c0_272 = arith.constant 0 : index
    %c0_273 = arith.constant 0 : index
    %441 = vector.load %arg6[%c3_271, %c0_272, %c0_273] : memref<4x32x32xbf16, #tpu.memory_space<vmem>>, vector<1x32x32xbf16>
    %442 = vector.shape_cast %441 : vector<1x32x32xbf16> to vector<32x32xbf16>
    %cst_274 = arith.constant dense<0.000000e+00> : vector<8x32xf32>
    %443 = tpu.matmul %413, %442, %cst_274 {dimension_numbers = #tpu.dot_dimension_numbers<[1], [0], [0], [1], [0, 0, 1, 1], [], []>} : vector<8x32xbf16>, vector<32x32xbf16>, vector<8x32xf32> -> vector<8x32xf32>
    %c3_275 = arith.constant 3 : index
    %c0_276 = arith.constant 0 : index
    %c0_277 = arith.constant 0 : index
    %444 = vector.load %arg5[%c3_275, %c0_276, %c0_277] : memref<4x32x32xbf16, #tpu.memory_space<vmem>>, vector<1x32x32xbf16>
    %445 = vector.shape_cast %444 : vector<1x32x32xbf16> to vector<32x32xbf16>
    %cst_278 = arith.constant dense<0.000000e+00> : vector<8x32xf32>
    %446 = tpu.matmul %412, %445, %cst_278 {dimension_numbers = #tpu.dot_dimension_numbers<[1], [0], [0], [1], [0, 0, 1, 1], [], []>} : vector<8x32xbf16>, vector<32x32xbf16>, vector<8x32xf32> -> vector<8x32xf32>
    %447 = vector.broadcast %40 : vector<1x32xf32> to vector<8x32xf32>
    %448 = arith.addf %446, %447 : vector<8x32xf32>
    %449 = arith.addf %448, %443 : vector<8x32xf32>
    %450 = arith.negf %422 : vector<8x32xf32>
    %451 = math.exp %450 : vector<8x32xf32>
    %cst_279 = arith.constant 1.000000e+00 : f32
    %452 = vector.broadcast %cst_279 : f32 to vector<8x32xf32>
    %453 = arith.addf %452, %451 : vector<8x32xf32>
    %454 = arith.divf %452, %453 : vector<8x32xf32>
    %455 = arith.negf %431 : vector<8x32xf32>
    %456 = math.exp %455 : vector<8x32xf32>
    %cst_280 = arith.constant 1.000000e+00 : f32
    %457 = vector.broadcast %cst_280 : f32 to vector<8x32xf32>
    %458 = arith.addf %457, %456 : vector<8x32xf32>
    %459 = arith.divf %457, %458 : vector<8x32xf32>
    %460 = math.tanh %440 : vector<8x32xf32>
    %461 = arith.negf %449 : vector<8x32xf32>
    %462 = math.exp %461 : vector<8x32xf32>
    %cst_281 = arith.constant 1.000000e+00 : f32
    %463 = vector.broadcast %cst_281 : f32 to vector<8x32xf32>
    %464 = arith.addf %463, %462 : vector<8x32xf32>
    %465 = arith.divf %463, %464 : vector<8x32xf32>
    %466 = arith.mulf %459, %361 : vector<8x32xf32>
    %467 = arith.mulf %454, %460 : vector<8x32xf32>
    %468 = arith.addf %466, %467 : vector<8x32xf32>
    %469 = math.tanh %468 : vector<8x32xf32>
    %470 = arith.mulf %465, %469 : vector<8x32xf32>
    %c4_i32 = arith.constant 4 : i32
    %c8_i32_282 = arith.constant 8 : i32
    %471 = arith.muli %c4_i32, %c8_i32_282 : i32
    %472 = tpu.assume_multiple %471, 8 : i32
    %473 = arith.truncf %411 : vector<8x32xf32> to vector<8x32xbf16>
    %c0_283 = arith.constant 0 : index
    %c0_284 = arith.constant 0 : index
    %c0_285 = arith.constant 0 : index
    %474 = vector.load %arg3[%c0_283, %c0_284, %c0_285] : memref<4x32x32xbf16, #tpu.memory_space<vmem>>, vector<1x32x32xbf16>
    %475 = vector.shape_cast %474 : vector<1x32x32xbf16> to vector<32x32xbf16>
    %cst_286 = arith.constant dense<0.000000e+00> : vector<8x32xf32>
    %476 = tpu.matmul %473, %475, %cst_286 {dimension_numbers = #tpu.dot_dimension_numbers<[1], [0], [0], [1], [0, 0, 1, 1], [], []>} : vector<8x32xbf16>, vector<32x32xbf16>, vector<8x32xf32> -> vector<8x32xf32>
    %477 = arith.index_cast %472 : i32 to index
    %c0_287 = arith.constant 0 : index
    %478 = vector.load %arg11[%477, %c0_287] : memref<64x32xf32, #tpu.memory_space<vmem>>, vector<8x32xf32>
    %479 = arith.addf %478, %476 : vector<8x32xf32>
    %c1_288 = arith.constant 1 : index
    %c0_289 = arith.constant 0 : index
    %c0_290 = arith.constant 0 : index
    %480 = vector.load %arg3[%c1_288, %c0_289, %c0_290] : memref<4x32x32xbf16, #tpu.memory_space<vmem>>, vector<1x32x32xbf16>
    %481 = vector.shape_cast %480 : vector<1x32x32xbf16> to vector<32x32xbf16>
    %cst_291 = arith.constant dense<0.000000e+00> : vector<8x32xf32>
    %482 = tpu.matmul %473, %481, %cst_291 {dimension_numbers = #tpu.dot_dimension_numbers<[1], [0], [0], [1], [0, 0, 1, 1], [], []>} : vector<8x32xbf16>, vector<32x32xbf16>, vector<8x32xf32> -> vector<8x32xf32>
    %483 = arith.index_cast %472 : i32 to index
    %c0_292 = arith.constant 0 : index
    %484 = vector.load %arg12[%483, %c0_292] : memref<64x32xf32, #tpu.memory_space<vmem>>, vector<8x32xf32>
    %485 = arith.addf %484, %482 : vector<8x32xf32>
    %c2_293 = arith.constant 2 : index
    %c0_294 = arith.constant 0 : index
    %c0_295 = arith.constant 0 : index
    %486 = vector.load %arg3[%c2_293, %c0_294, %c0_295] : memref<4x32x32xbf16, #tpu.memory_space<vmem>>, vector<1x32x32xbf16>
    %487 = vector.shape_cast %486 : vector<1x32x32xbf16> to vector<32x32xbf16>
    %cst_296 = arith.constant dense<0.000000e+00> : vector<8x32xf32>
    %488 = tpu.matmul %473, %487, %cst_296 {dimension_numbers = #tpu.dot_dimension_numbers<[1], [0], [0], [1], [0, 0, 1, 1], [], []>} : vector<8x32xbf16>, vector<32x32xbf16>, vector<8x32xf32> -> vector<8x32xf32>
    %489 = arith.index_cast %472 : i32 to index
    %c0_297 = arith.constant 0 : index
    %490 = vector.load %arg13[%489, %c0_297] : memref<64x32xf32, #tpu.memory_space<vmem>>, vector<8x32xf32>
    %491 = arith.addf %490, %488 : vector<8x32xf32>
    %c3_298 = arith.constant 3 : index
    %c0_299 = arith.constant 0 : index
    %c0_300 = arith.constant 0 : index
    %492 = vector.load %arg3[%c3_298, %c0_299, %c0_300] : memref<4x32x32xbf16, #tpu.memory_space<vmem>>, vector<1x32x32xbf16>
    %493 = vector.shape_cast %492 : vector<1x32x32xbf16> to vector<32x32xbf16>
    %cst_301 = arith.constant dense<0.000000e+00> : vector<8x32xf32>
    %494 = tpu.matmul %473, %493, %cst_301 {dimension_numbers = #tpu.dot_dimension_numbers<[1], [0], [0], [1], [0, 0, 1, 1], [], []>} : vector<8x32xbf16>, vector<32x32xbf16>, vector<8x32xf32> -> vector<8x32xf32>
    %495 = arith.index_cast %472 : i32 to index
    %c0_302 = arith.constant 0 : index
    %496 = vector.load %arg14[%495, %c0_302] : memref<64x32xf32, #tpu.memory_space<vmem>>, vector<8x32xf32>
    %497 = arith.addf %496, %494 : vector<8x32xf32>
    %498 = arith.negf %479 : vector<8x32xf32>
    %499 = math.exp %498 : vector<8x32xf32>
    %cst_303 = arith.constant 1.000000e+00 : f32
    %500 = vector.broadcast %cst_303 : f32 to vector<8x32xf32>
    %501 = arith.addf %500, %499 : vector<8x32xf32>
    %502 = arith.divf %500, %501 : vector<8x32xf32>
    %503 = arith.negf %485 : vector<8x32xf32>
    %504 = math.exp %503 : vector<8x32xf32>
    %cst_304 = arith.constant 1.000000e+00 : f32
    %505 = vector.broadcast %cst_304 : f32 to vector<8x32xf32>
    %506 = arith.addf %505, %504 : vector<8x32xf32>
    %507 = arith.divf %505, %506 : vector<8x32xf32>
    %508 = math.tanh %491 : vector<8x32xf32>
    %509 = arith.negf %497 : vector<8x32xf32>
    %510 = math.exp %509 : vector<8x32xf32>
    %cst_305 = arith.constant 1.000000e+00 : f32
    %511 = vector.broadcast %cst_305 : f32 to vector<8x32xf32>
    %512 = arith.addf %511, %510 : vector<8x32xf32>
    %513 = arith.divf %511, %512 : vector<8x32xf32>
    %514 = arith.mulf %507, %409 : vector<8x32xf32>
    %515 = arith.mulf %502, %508 : vector<8x32xf32>
    %516 = arith.addf %514, %515 : vector<8x32xf32>
    %517 = math.tanh %516 : vector<8x32xf32>
    %518 = arith.mulf %513, %517 : vector<8x32xf32>
    %519 = arith.truncf %518 : vector<8x32xf32> to vector<8x32xbf16>
    %520 = arith.truncf %470 : vector<8x32xf32> to vector<8x32xbf16>
    %c0_306 = arith.constant 0 : index
    %c0_307 = arith.constant 0 : index
    %c0_308 = arith.constant 0 : index
    %521 = vector.load %arg6[%c0_306, %c0_307, %c0_308] : memref<4x32x32xbf16, #tpu.memory_space<vmem>>, vector<1x32x32xbf16>
    %522 = vector.shape_cast %521 : vector<1x32x32xbf16> to vector<32x32xbf16>
    %cst_309 = arith.constant dense<0.000000e+00> : vector<8x32xf32>
    %523 = tpu.matmul %520, %522, %cst_309 {dimension_numbers = #tpu.dot_dimension_numbers<[1], [0], [0], [1], [0, 0, 1, 1], [], []>} : vector<8x32xbf16>, vector<32x32xbf16>, vector<8x32xf32> -> vector<8x32xf32>
    %c0_310 = arith.constant 0 : index
    %c0_311 = arith.constant 0 : index
    %c0_312 = arith.constant 0 : index
    %524 = vector.load %arg5[%c0_310, %c0_311, %c0_312] : memref<4x32x32xbf16, #tpu.memory_space<vmem>>, vector<1x32x32xbf16>
    %525 = vector.shape_cast %524 : vector<1x32x32xbf16> to vector<32x32xbf16>
    %cst_313 = arith.constant dense<0.000000e+00> : vector<8x32xf32>
    %526 = tpu.matmul %519, %525, %cst_313 {dimension_numbers = #tpu.dot_dimension_numbers<[1], [0], [0], [1], [0, 0, 1, 1], [], []>} : vector<8x32xbf16>, vector<32x32xbf16>, vector<8x32xf32> -> vector<8x32xf32>
    %527 = vector.broadcast %34 : vector<1x32xf32> to vector<8x32xf32>
    %528 = arith.addf %526, %527 : vector<8x32xf32>
    %529 = arith.addf %528, %523 : vector<8x32xf32>
    %c1_314 = arith.constant 1 : index
    %c0_315 = arith.constant 0 : index
    %c0_316 = arith.constant 0 : index
    %530 = vector.load %arg6[%c1_314, %c0_315, %c0_316] : memref<4x32x32xbf16, #tpu.memory_space<vmem>>, vector<1x32x32xbf16>
    %531 = vector.shape_cast %530 : vector<1x32x32xbf16> to vector<32x32xbf16>
    %cst_317 = arith.constant dense<0.000000e+00> : vector<8x32xf32>
    %532 = tpu.matmul %520, %531, %cst_317 {dimension_numbers = #tpu.dot_dimension_numbers<[1], [0], [0], [1], [0, 0, 1, 1], [], []>} : vector<8x32xbf16>, vector<32x32xbf16>, vector<8x32xf32> -> vector<8x32xf32>
    %c1_318 = arith.constant 1 : index
    %c0_319 = arith.constant 0 : index
    %c0_320 = arith.constant 0 : index
    %533 = vector.load %arg5[%c1_318, %c0_319, %c0_320] : memref<4x32x32xbf16, #tpu.memory_space<vmem>>, vector<1x32x32xbf16>
    %534 = vector.shape_cast %533 : vector<1x32x32xbf16> to vector<32x32xbf16>
    %cst_321 = arith.constant dense<0.000000e+00> : vector<8x32xf32>
    %535 = tpu.matmul %519, %534, %cst_321 {dimension_numbers = #tpu.dot_dimension_numbers<[1], [0], [0], [1], [0, 0, 1, 1], [], []>} : vector<8x32xbf16>, vector<32x32xbf16>, vector<8x32xf32> -> vector<8x32xf32>
    %536 = vector.broadcast %36 : vector<1x32xf32> to vector<8x32xf32>
    %537 = arith.addf %535, %536 : vector<8x32xf32>
    %538 = arith.addf %537, %532 : vector<8x32xf32>
    %c2_322 = arith.constant 2 : index
    %c0_323 = arith.constant 0 : index
    %c0_324 = arith.constant 0 : index
    %539 = vector.load %arg6[%c2_322, %c0_323, %c0_324] : memref<4x32x32xbf16, #tpu.memory_space<vmem>>, vector<1x32x32xbf16>
    %540 = vector.shape_cast %539 : vector<1x32x32xbf16> to vector<32x32xbf16>
    %cst_325 = arith.constant dense<0.000000e+00> : vector<8x32xf32>
    %541 = tpu.matmul %520, %540, %cst_325 {dimension_numbers = #tpu.dot_dimension_numbers<[1], [0], [0], [1], [0, 0, 1, 1], [], []>} : vector<8x32xbf16>, vector<32x32xbf16>, vector<8x32xf32> -> vector<8x32xf32>
    %c2_326 = arith.constant 2 : index
    %c0_327 = arith.constant 0 : index
    %c0_328 = arith.constant 0 : index
    %542 = vector.load %arg5[%c2_326, %c0_327, %c0_328] : memref<4x32x32xbf16, #tpu.memory_space<vmem>>, vector<1x32x32xbf16>
    %543 = vector.shape_cast %542 : vector<1x32x32xbf16> to vector<32x32xbf16>
    %cst_329 = arith.constant dense<0.000000e+00> : vector<8x32xf32>
    %544 = tpu.matmul %519, %543, %cst_329 {dimension_numbers = #tpu.dot_dimension_numbers<[1], [0], [0], [1], [0, 0, 1, 1], [], []>} : vector<8x32xbf16>, vector<32x32xbf16>, vector<8x32xf32> -> vector<8x32xf32>
    %545 = vector.broadcast %38 : vector<1x32xf32> to vector<8x32xf32>
    %546 = arith.addf %544, %545 : vector<8x32xf32>
    %547 = arith.addf %546, %541 : vector<8x32xf32>
    %c3_330 = arith.constant 3 : index
    %c0_331 = arith.constant 0 : index
    %c0_332 = arith.constant 0 : index
    %548 = vector.load %arg6[%c3_330, %c0_331, %c0_332] : memref<4x32x32xbf16, #tpu.memory_space<vmem>>, vector<1x32x32xbf16>
    %549 = vector.shape_cast %548 : vector<1x32x32xbf16> to vector<32x32xbf16>
    %cst_333 = arith.constant dense<0.000000e+00> : vector<8x32xf32>
    %550 = tpu.matmul %520, %549, %cst_333 {dimension_numbers = #tpu.dot_dimension_numbers<[1], [0], [0], [1], [0, 0, 1, 1], [], []>} : vector<8x32xbf16>, vector<32x32xbf16>, vector<8x32xf32> -> vector<8x32xf32>
    %c3_334 = arith.constant 3 : index
    %c0_335 = arith.constant 0 : index
    %c0_336 = arith.constant 0 : index
    %551 = vector.load %arg5[%c3_334, %c0_335, %c0_336] : memref<4x32x32xbf16, #tpu.memory_space<vmem>>, vector<1x32x32xbf16>
    %552 = vector.shape_cast %551 : vector<1x32x32xbf16> to vector<32x32xbf16>
    %cst_337 = arith.constant dense<0.000000e+00> : vector<8x32xf32>
    %553 = tpu.matmul %519, %552, %cst_337 {dimension_numbers = #tpu.dot_dimension_numbers<[1], [0], [0], [1], [0, 0, 1, 1], [], []>} : vector<8x32xbf16>, vector<32x32xbf16>, vector<8x32xf32> -> vector<8x32xf32>
    %554 = vector.broadcast %40 : vector<1x32xf32> to vector<8x32xf32>
    %555 = arith.addf %553, %554 : vector<8x32xf32>
    %556 = arith.addf %555, %550 : vector<8x32xf32>
    %557 = arith.negf %529 : vector<8x32xf32>
    %558 = math.exp %557 : vector<8x32xf32>
    %cst_338 = arith.constant 1.000000e+00 : f32
    %559 = vector.broadcast %cst_338 : f32 to vector<8x32xf32>
    %560 = arith.addf %559, %558 : vector<8x32xf32>
    %561 = arith.divf %559, %560 : vector<8x32xf32>
    %562 = arith.negf %538 : vector<8x32xf32>
    %563 = math.exp %562 : vector<8x32xf32>
    %cst_339 = arith.constant 1.000000e+00 : f32
    %564 = vector.broadcast %cst_339 : f32 to vector<8x32xf32>
    %565 = arith.addf %564, %563 : vector<8x32xf32>
    %566 = arith.divf %564, %565 : vector<8x32xf32>
    %567 = math.tanh %547 : vector<8x32xf32>
    %568 = arith.negf %556 : vector<8x32xf32>
    %569 = math.exp %568 : vector<8x32xf32>
    %cst_340 = arith.constant 1.000000e+00 : f32
    %570 = vector.broadcast %cst_340 : f32 to vector<8x32xf32>
    %571 = arith.addf %570, %569 : vector<8x32xf32>
    %572 = arith.divf %570, %571 : vector<8x32xf32>
    %573 = arith.mulf %566, %468 : vector<8x32xf32>
    %574 = arith.mulf %561, %567 : vector<8x32xf32>
    %575 = arith.addf %573, %574 : vector<8x32xf32>
    %576 = math.tanh %575 : vector<8x32xf32>
    %577 = arith.mulf %572, %576 : vector<8x32xf32>
    %c5_i32 = arith.constant 5 : i32
    %c8_i32_341 = arith.constant 8 : i32
    %578 = arith.muli %c5_i32, %c8_i32_341 : i32
    %579 = tpu.assume_multiple %578, 8 : i32
    %580 = arith.truncf %518 : vector<8x32xf32> to vector<8x32xbf16>
    %c0_342 = arith.constant 0 : index
    %c0_343 = arith.constant 0 : index
    %c0_344 = arith.constant 0 : index
    %581 = vector.load %arg3[%c0_342, %c0_343, %c0_344] : memref<4x32x32xbf16, #tpu.memory_space<vmem>>, vector<1x32x32xbf16>
    %582 = vector.shape_cast %581 : vector<1x32x32xbf16> to vector<32x32xbf16>
    %cst_345 = arith.constant dense<0.000000e+00> : vector<8x32xf32>
    %583 = tpu.matmul %580, %582, %cst_345 {dimension_numbers = #tpu.dot_dimension_numbers<[1], [0], [0], [1], [0, 0, 1, 1], [], []>} : vector<8x32xbf16>, vector<32x32xbf16>, vector<8x32xf32> -> vector<8x32xf32>
    %584 = arith.index_cast %579 : i32 to index
    %c0_346 = arith.constant 0 : index
    %585 = vector.load %arg11[%584, %c0_346] : memref<64x32xf32, #tpu.memory_space<vmem>>, vector<8x32xf32>
    %586 = arith.addf %585, %583 : vector<8x32xf32>
    %c1_347 = arith.constant 1 : index
    %c0_348 = arith.constant 0 : index
    %c0_349 = arith.constant 0 : index
    %587 = vector.load %arg3[%c1_347, %c0_348, %c0_349] : memref<4x32x32xbf16, #tpu.memory_space<vmem>>, vector<1x32x32xbf16>
    %588 = vector.shape_cast %587 : vector<1x32x32xbf16> to vector<32x32xbf16>
    %cst_350 = arith.constant dense<0.000000e+00> : vector<8x32xf32>
    %589 = tpu.matmul %580, %588, %cst_350 {dimension_numbers = #tpu.dot_dimension_numbers<[1], [0], [0], [1], [0, 0, 1, 1], [], []>} : vector<8x32xbf16>, vector<32x32xbf16>, vector<8x32xf32> -> vector<8x32xf32>
    %590 = arith.index_cast %579 : i32 to index
    %c0_351 = arith.constant 0 : index
    %591 = vector.load %arg12[%590, %c0_351] : memref<64x32xf32, #tpu.memory_space<vmem>>, vector<8x32xf32>
    %592 = arith.addf %591, %589 : vector<8x32xf32>
    %c2_352 = arith.constant 2 : index
    %c0_353 = arith.constant 0 : index
    %c0_354 = arith.constant 0 : index
    %593 = vector.load %arg3[%c2_352, %c0_353, %c0_354] : memref<4x32x32xbf16, #tpu.memory_space<vmem>>, vector<1x32x32xbf16>
    %594 = vector.shape_cast %593 : vector<1x32x32xbf16> to vector<32x32xbf16>
    %cst_355 = arith.constant dense<0.000000e+00> : vector<8x32xf32>
    %595 = tpu.matmul %580, %594, %cst_355 {dimension_numbers = #tpu.dot_dimension_numbers<[1], [0], [0], [1], [0, 0, 1, 1], [], []>} : vector<8x32xbf16>, vector<32x32xbf16>, vector<8x32xf32> -> vector<8x32xf32>
    %596 = arith.index_cast %579 : i32 to index
    %c0_356 = arith.constant 0 : index
    %597 = vector.load %arg13[%596, %c0_356] : memref<64x32xf32, #tpu.memory_space<vmem>>, vector<8x32xf32>
    %598 = arith.addf %597, %595 : vector<8x32xf32>
    %c3_357 = arith.constant 3 : index
    %c0_358 = arith.constant 0 : index
    %c0_359 = arith.constant 0 : index
    %599 = vector.load %arg3[%c3_357, %c0_358, %c0_359] : memref<4x32x32xbf16, #tpu.memory_space<vmem>>, vector<1x32x32xbf16>
    %600 = vector.shape_cast %599 : vector<1x32x32xbf16> to vector<32x32xbf16>
    %cst_360 = arith.constant dense<0.000000e+00> : vector<8x32xf32>
    %601 = tpu.matmul %580, %600, %cst_360 {dimension_numbers = #tpu.dot_dimension_numbers<[1], [0], [0], [1], [0, 0, 1, 1], [], []>} : vector<8x32xbf16>, vector<32x32xbf16>, vector<8x32xf32> -> vector<8x32xf32>
    %602 = arith.index_cast %579 : i32 to index
    %c0_361 = arith.constant 0 : index
    %603 = vector.load %arg14[%602, %c0_361] : memref<64x32xf32, #tpu.memory_space<vmem>>, vector<8x32xf32>
    %604 = arith.addf %603, %601 : vector<8x32xf32>
    %605 = arith.negf %586 : vector<8x32xf32>
    %606 = math.exp %605 : vector<8x32xf32>
    %cst_362 = arith.constant 1.000000e+00 : f32
    %607 = vector.broadcast %cst_362 : f32 to vector<8x32xf32>
    %608 = arith.addf %607, %606 : vector<8x32xf32>
    %609 = arith.divf %607, %608 : vector<8x32xf32>
    %610 = arith.negf %592 : vector<8x32xf32>
    %611 = math.exp %610 : vector<8x32xf32>
    %cst_363 = arith.constant 1.000000e+00 : f32
    %612 = vector.broadcast %cst_363 : f32 to vector<8x32xf32>
    %613 = arith.addf %612, %611 : vector<8x32xf32>
    %614 = arith.divf %612, %613 : vector<8x32xf32>
    %615 = math.tanh %598 : vector<8x32xf32>
    %616 = arith.negf %604 : vector<8x32xf32>
    %617 = math.exp %616 : vector<8x32xf32>
    %cst_364 = arith.constant 1.000000e+00 : f32
    %618 = vector.broadcast %cst_364 : f32 to vector<8x32xf32>
    %619 = arith.addf %618, %617 : vector<8x32xf32>
    %620 = arith.divf %618, %619 : vector<8x32xf32>
    %621 = arith.mulf %614, %516 : vector<8x32xf32>
    %622 = arith.mulf %609, %615 : vector<8x32xf32>
    %623 = arith.addf %621, %622 : vector<8x32xf32>
    %624 = math.tanh %623 : vector<8x32xf32>
    %625 = arith.mulf %620, %624 : vector<8x32xf32>
    %626 = arith.truncf %625 : vector<8x32xf32> to vector<8x32xbf16>
    %627 = arith.truncf %577 : vector<8x32xf32> to vector<8x32xbf16>
    %c0_365 = arith.constant 0 : index
    %c0_366 = arith.constant 0 : index
    %c0_367 = arith.constant 0 : index
    %628 = vector.load %arg6[%c0_365, %c0_366, %c0_367] : memref<4x32x32xbf16, #tpu.memory_space<vmem>>, vector<1x32x32xbf16>
    %629 = vector.shape_cast %628 : vector<1x32x32xbf16> to vector<32x32xbf16>
    %cst_368 = arith.constant dense<0.000000e+00> : vector<8x32xf32>
    %630 = tpu.matmul %627, %629, %cst_368 {dimension_numbers = #tpu.dot_dimension_numbers<[1], [0], [0], [1], [0, 0, 1, 1], [], []>} : vector<8x32xbf16>, vector<32x32xbf16>, vector<8x32xf32> -> vector<8x32xf32>
    %c0_369 = arith.constant 0 : index
    %c0_370 = arith.constant 0 : index
    %c0_371 = arith.constant 0 : index
    %631 = vector.load %arg5[%c0_369, %c0_370, %c0_371] : memref<4x32x32xbf16, #tpu.memory_space<vmem>>, vector<1x32x32xbf16>
    %632 = vector.shape_cast %631 : vector<1x32x32xbf16> to vector<32x32xbf16>
    %cst_372 = arith.constant dense<0.000000e+00> : vector<8x32xf32>
    %633 = tpu.matmul %626, %632, %cst_372 {dimension_numbers = #tpu.dot_dimension_numbers<[1], [0], [0], [1], [0, 0, 1, 1], [], []>} : vector<8x32xbf16>, vector<32x32xbf16>, vector<8x32xf32> -> vector<8x32xf32>
    %634 = vector.broadcast %34 : vector<1x32xf32> to vector<8x32xf32>
    %635 = arith.addf %633, %634 : vector<8x32xf32>
    %636 = arith.addf %635, %630 : vector<8x32xf32>
    %c1_373 = arith.constant 1 : index
    %c0_374 = arith.constant 0 : index
    %c0_375 = arith.constant 0 : index
    %637 = vector.load %arg6[%c1_373, %c0_374, %c0_375] : memref<4x32x32xbf16, #tpu.memory_space<vmem>>, vector<1x32x32xbf16>
    %638 = vector.shape_cast %637 : vector<1x32x32xbf16> to vector<32x32xbf16>
    %cst_376 = arith.constant dense<0.000000e+00> : vector<8x32xf32>
    %639 = tpu.matmul %627, %638, %cst_376 {dimension_numbers = #tpu.dot_dimension_numbers<[1], [0], [0], [1], [0, 0, 1, 1], [], []>} : vector<8x32xbf16>, vector<32x32xbf16>, vector<8x32xf32> -> vector<8x32xf32>
    %c1_377 = arith.constant 1 : index
    %c0_378 = arith.constant 0 : index
    %c0_379 = arith.constant 0 : index
    %640 = vector.load %arg5[%c1_377, %c0_378, %c0_379] : memref<4x32x32xbf16, #tpu.memory_space<vmem>>, vector<1x32x32xbf16>
    %641 = vector.shape_cast %640 : vector<1x32x32xbf16> to vector<32x32xbf16>
    %cst_380 = arith.constant dense<0.000000e+00> : vector<8x32xf32>
    %642 = tpu.matmul %626, %641, %cst_380 {dimension_numbers = #tpu.dot_dimension_numbers<[1], [0], [0], [1], [0, 0, 1, 1], [], []>} : vector<8x32xbf16>, vector<32x32xbf16>, vector<8x32xf32> -> vector<8x32xf32>
    %643 = vector.broadcast %36 : vector<1x32xf32> to vector<8x32xf32>
    %644 = arith.addf %642, %643 : vector<8x32xf32>
    %645 = arith.addf %644, %639 : vector<8x32xf32>
    %c2_381 = arith.constant 2 : index
    %c0_382 = arith.constant 0 : index
    %c0_383 = arith.constant 0 : index
    %646 = vector.load %arg6[%c2_381, %c0_382, %c0_383] : memref<4x32x32xbf16, #tpu.memory_space<vmem>>, vector<1x32x32xbf16>
    %647 = vector.shape_cast %646 : vector<1x32x32xbf16> to vector<32x32xbf16>
    %cst_384 = arith.constant dense<0.000000e+00> : vector<8x32xf32>
    %648 = tpu.matmul %627, %647, %cst_384 {dimension_numbers = #tpu.dot_dimension_numbers<[1], [0], [0], [1], [0, 0, 1, 1], [], []>} : vector<8x32xbf16>, vector<32x32xbf16>, vector<8x32xf32> -> vector<8x32xf32>
    %c2_385 = arith.constant 2 : index
    %c0_386 = arith.constant 0 : index
    %c0_387 = arith.constant 0 : index
    %649 = vector.load %arg5[%c2_385, %c0_386, %c0_387] : memref<4x32x32xbf16, #tpu.memory_space<vmem>>, vector<1x32x32xbf16>
    %650 = vector.shape_cast %649 : vector<1x32x32xbf16> to vector<32x32xbf16>
    %cst_388 = arith.constant dense<0.000000e+00> : vector<8x32xf32>
    %651 = tpu.matmul %626, %650, %cst_388 {dimension_numbers = #tpu.dot_dimension_numbers<[1], [0], [0], [1], [0, 0, 1, 1], [], []>} : vector<8x32xbf16>, vector<32x32xbf16>, vector<8x32xf32> -> vector<8x32xf32>
    %652 = vector.broadcast %38 : vector<1x32xf32> to vector<8x32xf32>
    %653 = arith.addf %651, %652 : vector<8x32xf32>
    %654 = arith.addf %653, %648 : vector<8x32xf32>
    %c3_389 = arith.constant 3 : index
    %c0_390 = arith.constant 0 : index
    %c0_391 = arith.constant 0 : index
    %655 = vector.load %arg6[%c3_389, %c0_390, %c0_391] : memref<4x32x32xbf16, #tpu.memory_space<vmem>>, vector<1x32x32xbf16>
    %656 = vector.shape_cast %655 : vector<1x32x32xbf16> to vector<32x32xbf16>
    %cst_392 = arith.constant dense<0.000000e+00> : vector<8x32xf32>
    %657 = tpu.matmul %627, %656, %cst_392 {dimension_numbers = #tpu.dot_dimension_numbers<[1], [0], [0], [1], [0, 0, 1, 1], [], []>} : vector<8x32xbf16>, vector<32x32xbf16>, vector<8x32xf32> -> vector<8x32xf32>
    %c3_393 = arith.constant 3 : index
    %c0_394 = arith.constant 0 : index
    %c0_395 = arith.constant 0 : index
    %658 = vector.load %arg5[%c3_393, %c0_394, %c0_395] : memref<4x32x32xbf16, #tpu.memory_space<vmem>>, vector<1x32x32xbf16>
    %659 = vector.shape_cast %658 : vector<1x32x32xbf16> to vector<32x32xbf16>
    %cst_396 = arith.constant dense<0.000000e+00> : vector<8x32xf32>
    %660 = tpu.matmul %626, %659, %cst_396 {dimension_numbers = #tpu.dot_dimension_numbers<[1], [0], [0], [1], [0, 0, 1, 1], [], []>} : vector<8x32xbf16>, vector<32x32xbf16>, vector<8x32xf32> -> vector<8x32xf32>
    %661 = vector.broadcast %40 : vector<1x32xf32> to vector<8x32xf32>
    %662 = arith.addf %660, %661 : vector<8x32xf32>
    %663 = arith.addf %662, %657 : vector<8x32xf32>
    %664 = arith.negf %636 : vector<8x32xf32>
    %665 = math.exp %664 : vector<8x32xf32>
    %cst_397 = arith.constant 1.000000e+00 : f32
    %666 = vector.broadcast %cst_397 : f32 to vector<8x32xf32>
    %667 = arith.addf %666, %665 : vector<8x32xf32>
    %668 = arith.divf %666, %667 : vector<8x32xf32>
    %669 = arith.negf %645 : vector<8x32xf32>
    %670 = math.exp %669 : vector<8x32xf32>
    %cst_398 = arith.constant 1.000000e+00 : f32
    %671 = vector.broadcast %cst_398 : f32 to vector<8x32xf32>
    %672 = arith.addf %671, %670 : vector<8x32xf32>
    %673 = arith.divf %671, %672 : vector<8x32xf32>
    %674 = math.tanh %654 : vector<8x32xf32>
    %675 = arith.negf %663 : vector<8x32xf32>
    %676 = math.exp %675 : vector<8x32xf32>
    %cst_399 = arith.constant 1.000000e+00 : f32
    %677 = vector.broadcast %cst_399 : f32 to vector<8x32xf32>
    %678 = arith.addf %677, %676 : vector<8x32xf32>
    %679 = arith.divf %677, %678 : vector<8x32xf32>
    %680 = arith.mulf %673, %575 : vector<8x32xf32>
    %681 = arith.mulf %668, %674 : vector<8x32xf32>
    %682 = arith.addf %680, %681 : vector<8x32xf32>
    %683 = math.tanh %682 : vector<8x32xf32>
    %684 = arith.mulf %679, %683 : vector<8x32xf32>
    %c6_i32 = arith.constant 6 : i32
    %c8_i32_400 = arith.constant 8 : i32
    %685 = arith.muli %c6_i32, %c8_i32_400 : i32
    %686 = tpu.assume_multiple %685, 8 : i32
    %687 = arith.truncf %625 : vector<8x32xf32> to vector<8x32xbf16>
    %c0_401 = arith.constant 0 : index
    %c0_402 = arith.constant 0 : index
    %c0_403 = arith.constant 0 : index
    %688 = vector.load %arg3[%c0_401, %c0_402, %c0_403] : memref<4x32x32xbf16, #tpu.memory_space<vmem>>, vector<1x32x32xbf16>
    %689 = vector.shape_cast %688 : vector<1x32x32xbf16> to vector<32x32xbf16>
    %cst_404 = arith.constant dense<0.000000e+00> : vector<8x32xf32>
    %690 = tpu.matmul %687, %689, %cst_404 {dimension_numbers = #tpu.dot_dimension_numbers<[1], [0], [0], [1], [0, 0, 1, 1], [], []>} : vector<8x32xbf16>, vector<32x32xbf16>, vector<8x32xf32> -> vector<8x32xf32>
    %691 = arith.index_cast %686 : i32 to index
    %c0_405 = arith.constant 0 : index
    %692 = vector.load %arg11[%691, %c0_405] : memref<64x32xf32, #tpu.memory_space<vmem>>, vector<8x32xf32>
    %693 = arith.addf %692, %690 : vector<8x32xf32>
    %c1_406 = arith.constant 1 : index
    %c0_407 = arith.constant 0 : index
    %c0_408 = arith.constant 0 : index
    %694 = vector.load %arg3[%c1_406, %c0_407, %c0_408] : memref<4x32x32xbf16, #tpu.memory_space<vmem>>, vector<1x32x32xbf16>
    %695 = vector.shape_cast %694 : vector<1x32x32xbf16> to vector<32x32xbf16>
    %cst_409 = arith.constant dense<0.000000e+00> : vector<8x32xf32>
    %696 = tpu.matmul %687, %695, %cst_409 {dimension_numbers = #tpu.dot_dimension_numbers<[1], [0], [0], [1], [0, 0, 1, 1], [], []>} : vector<8x32xbf16>, vector<32x32xbf16>, vector<8x32xf32> -> vector<8x32xf32>
    %697 = arith.index_cast %686 : i32 to index
    %c0_410 = arith.constant 0 : index
    %698 = vector.load %arg12[%697, %c0_410] : memref<64x32xf32, #tpu.memory_space<vmem>>, vector<8x32xf32>
    %699 = arith.addf %698, %696 : vector<8x32xf32>
    %c2_411 = arith.constant 2 : index
    %c0_412 = arith.constant 0 : index
    %c0_413 = arith.constant 0 : index
    %700 = vector.load %arg3[%c2_411, %c0_412, %c0_413] : memref<4x32x32xbf16, #tpu.memory_space<vmem>>, vector<1x32x32xbf16>
    %701 = vector.shape_cast %700 : vector<1x32x32xbf16> to vector<32x32xbf16>
    %cst_414 = arith.constant dense<0.000000e+00> : vector<8x32xf32>
    %702 = tpu.matmul %687, %701, %cst_414 {dimension_numbers = #tpu.dot_dimension_numbers<[1], [0], [0], [1], [0, 0, 1, 1], [], []>} : vector<8x32xbf16>, vector<32x32xbf16>, vector<8x32xf32> -> vector<8x32xf32>
    %703 = arith.index_cast %686 : i32 to index
    %c0_415 = arith.constant 0 : index
    %704 = vector.load %arg13[%703, %c0_415] : memref<64x32xf32, #tpu.memory_space<vmem>>, vector<8x32xf32>
    %705 = arith.addf %704, %702 : vector<8x32xf32>
    %c3_416 = arith.constant 3 : index
    %c0_417 = arith.constant 0 : index
    %c0_418 = arith.constant 0 : index
    %706 = vector.load %arg3[%c3_416, %c0_417, %c0_418] : memref<4x32x32xbf16, #tpu.memory_space<vmem>>, vector<1x32x32xbf16>
    %707 = vector.shape_cast %706 : vector<1x32x32xbf16> to vector<32x32xbf16>
    %cst_419 = arith.constant dense<0.000000e+00> : vector<8x32xf32>
    %708 = tpu.matmul %687, %707, %cst_419 {dimension_numbers = #tpu.dot_dimension_numbers<[1], [0], [0], [1], [0, 0, 1, 1], [], []>} : vector<8x32xbf16>, vector<32x32xbf16>, vector<8x32xf32> -> vector<8x32xf32>
    %709 = arith.index_cast %686 : i32 to index
    %c0_420 = arith.constant 0 : index
    %710 = vector.load %arg14[%709, %c0_420] : memref<64x32xf32, #tpu.memory_space<vmem>>, vector<8x32xf32>
    %711 = arith.addf %710, %708 : vector<8x32xf32>
    %712 = arith.negf %693 : vector<8x32xf32>
    %713 = math.exp %712 : vector<8x32xf32>
    %cst_421 = arith.constant 1.000000e+00 : f32
    %714 = vector.broadcast %cst_421 : f32 to vector<8x32xf32>
    %715 = arith.addf %714, %713 : vector<8x32xf32>
    %716 = arith.divf %714, %715 : vector<8x32xf32>
    %717 = arith.negf %699 : vector<8x32xf32>
    %718 = math.exp %717 : vector<8x32xf32>
    %cst_422 = arith.constant 1.000000e+00 : f32
    %719 = vector.broadcast %cst_422 : f32 to vector<8x32xf32>
    %720 = arith.addf %719, %718 : vector<8x32xf32>
    %721 = arith.divf %719, %720 : vector<8x32xf32>
    %722 = math.tanh %705 : vector<8x32xf32>
    %723 = arith.negf %711 : vector<8x32xf32>
    %724 = math.exp %723 : vector<8x32xf32>
    %cst_423 = arith.constant 1.000000e+00 : f32
    %725 = vector.broadcast %cst_423 : f32 to vector<8x32xf32>
    %726 = arith.addf %725, %724 : vector<8x32xf32>
    %727 = arith.divf %725, %726 : vector<8x32xf32>
    %728 = arith.mulf %721, %623 : vector<8x32xf32>
    %729 = arith.mulf %716, %722 : vector<8x32xf32>
    %730 = arith.addf %728, %729 : vector<8x32xf32>
    %731 = math.tanh %730 : vector<8x32xf32>
    %732 = arith.mulf %727, %731 : vector<8x32xf32>
    %733 = arith.truncf %732 : vector<8x32xf32> to vector<8x32xbf16>
    %734 = arith.truncf %684 : vector<8x32xf32> to vector<8x32xbf16>
    %c0_424 = arith.constant 0 : index
    %c0_425 = arith.constant 0 : index
    %c0_426 = arith.constant 0 : index
    %735 = vector.load %arg6[%c0_424, %c0_425, %c0_426] : memref<4x32x32xbf16, #tpu.memory_space<vmem>>, vector<1x32x32xbf16>
    %736 = vector.shape_cast %735 : vector<1x32x32xbf16> to vector<32x32xbf16>
    %cst_427 = arith.constant dense<0.000000e+00> : vector<8x32xf32>
    %737 = tpu.matmul %734, %736, %cst_427 {dimension_numbers = #tpu.dot_dimension_numbers<[1], [0], [0], [1], [0, 0, 1, 1], [], []>} : vector<8x32xbf16>, vector<32x32xbf16>, vector<8x32xf32> -> vector<8x32xf32>
    %c0_428 = arith.constant 0 : index
    %c0_429 = arith.constant 0 : index
    %c0_430 = arith.constant 0 : index
    %738 = vector.load %arg5[%c0_428, %c0_429, %c0_430] : memref<4x32x32xbf16, #tpu.memory_space<vmem>>, vector<1x32x32xbf16>
    %739 = vector.shape_cast %738 : vector<1x32x32xbf16> to vector<32x32xbf16>
    %cst_431 = arith.constant dense<0.000000e+00> : vector<8x32xf32>
    %740 = tpu.matmul %733, %739, %cst_431 {dimension_numbers = #tpu.dot_dimension_numbers<[1], [0], [0], [1], [0, 0, 1, 1], [], []>} : vector<8x32xbf16>, vector<32x32xbf16>, vector<8x32xf32> -> vector<8x32xf32>
    %741 = vector.broadcast %34 : vector<1x32xf32> to vector<8x32xf32>
    %742 = arith.addf %740, %741 : vector<8x32xf32>
    %743 = arith.addf %742, %737 : vector<8x32xf32>
    %c1_432 = arith.constant 1 : index
    %c0_433 = arith.constant 0 : index
    %c0_434 = arith.constant 0 : index
    %744 = vector.load %arg6[%c1_432, %c0_433, %c0_434] : memref<4x32x32xbf16, #tpu.memory_space<vmem>>, vector<1x32x32xbf16>
    %745 = vector.shape_cast %744 : vector<1x32x32xbf16> to vector<32x32xbf16>
    %cst_435 = arith.constant dense<0.000000e+00> : vector<8x32xf32>
    %746 = tpu.matmul %734, %745, %cst_435 {dimension_numbers = #tpu.dot_dimension_numbers<[1], [0], [0], [1], [0, 0, 1, 1], [], []>} : vector<8x32xbf16>, vector<32x32xbf16>, vector<8x32xf32> -> vector<8x32xf32>
    %c1_436 = arith.constant 1 : index
    %c0_437 = arith.constant 0 : index
    %c0_438 = arith.constant 0 : index
    %747 = vector.load %arg5[%c1_436, %c0_437, %c0_438] : memref<4x32x32xbf16, #tpu.memory_space<vmem>>, vector<1x32x32xbf16>
    %748 = vector.shape_cast %747 : vector<1x32x32xbf16> to vector<32x32xbf16>
    %cst_439 = arith.constant dense<0.000000e+00> : vector<8x32xf32>
    %749 = tpu.matmul %733, %748, %cst_439 {dimension_numbers = #tpu.dot_dimension_numbers<[1], [0], [0], [1], [0, 0, 1, 1], [], []>} : vector<8x32xbf16>, vector<32x32xbf16>, vector<8x32xf32> -> vector<8x32xf32>
    %750 = vector.broadcast %36 : vector<1x32xf32> to vector<8x32xf32>
    %751 = arith.addf %749, %750 : vector<8x32xf32>
    %752 = arith.addf %751, %746 : vector<8x32xf32>
    %c2_440 = arith.constant 2 : index
    %c0_441 = arith.constant 0 : index
    %c0_442 = arith.constant 0 : index
    %753 = vector.load %arg6[%c2_440, %c0_441, %c0_442] : memref<4x32x32xbf16, #tpu.memory_space<vmem>>, vector<1x32x32xbf16>
    %754 = vector.shape_cast %753 : vector<1x32x32xbf16> to vector<32x32xbf16>
    %cst_443 = arith.constant dense<0.000000e+00> : vector<8x32xf32>
    %755 = tpu.matmul %734, %754, %cst_443 {dimension_numbers = #tpu.dot_dimension_numbers<[1], [0], [0], [1], [0, 0, 1, 1], [], []>} : vector<8x32xbf16>, vector<32x32xbf16>, vector<8x32xf32> -> vector<8x32xf32>
    %c2_444 = arith.constant 2 : index
    %c0_445 = arith.constant 0 : index
    %c0_446 = arith.constant 0 : index
    %756 = vector.load %arg5[%c2_444, %c0_445, %c0_446] : memref<4x32x32xbf16, #tpu.memory_space<vmem>>, vector<1x32x32xbf16>
    %757 = vector.shape_cast %756 : vector<1x32x32xbf16> to vector<32x32xbf16>
    %cst_447 = arith.constant dense<0.000000e+00> : vector<8x32xf32>
    %758 = tpu.matmul %733, %757, %cst_447 {dimension_numbers = #tpu.dot_dimension_numbers<[1], [0], [0], [1], [0, 0, 1, 1], [], []>} : vector<8x32xbf16>, vector<32x32xbf16>, vector<8x32xf32> -> vector<8x32xf32>
    %759 = vector.broadcast %38 : vector<1x32xf32> to vector<8x32xf32>
    %760 = arith.addf %758, %759 : vector<8x32xf32>
    %761 = arith.addf %760, %755 : vector<8x32xf32>
    %c3_448 = arith.constant 3 : index
    %c0_449 = arith.constant 0 : index
    %c0_450 = arith.constant 0 : index
    %762 = vector.load %arg6[%c3_448, %c0_449, %c0_450] : memref<4x32x32xbf16, #tpu.memory_space<vmem>>, vector<1x32x32xbf16>
    %763 = vector.shape_cast %762 : vector<1x32x32xbf16> to vector<32x32xbf16>
    %cst_451 = arith.constant dense<0.000000e+00> : vector<8x32xf32>
    %764 = tpu.matmul %734, %763, %cst_451 {dimension_numbers = #tpu.dot_dimension_numbers<[1], [0], [0], [1], [0, 0, 1, 1], [], []>} : vector<8x32xbf16>, vector<32x32xbf16>, vector<8x32xf32> -> vector<8x32xf32>
    %c3_452 = arith.constant 3 : index
    %c0_453 = arith.constant 0 : index
    %c0_454 = arith.constant 0 : index
    %765 = vector.load %arg5[%c3_452, %c0_453, %c0_454] : memref<4x32x32xbf16, #tpu.memory_space<vmem>>, vector<1x32x32xbf16>
    %766 = vector.shape_cast %765 : vector<1x32x32xbf16> to vector<32x32xbf16>
    %cst_455 = arith.constant dense<0.000000e+00> : vector<8x32xf32>
    %767 = tpu.matmul %733, %766, %cst_455 {dimension_numbers = #tpu.dot_dimension_numbers<[1], [0], [0], [1], [0, 0, 1, 1], [], []>} : vector<8x32xbf16>, vector<32x32xbf16>, vector<8x32xf32> -> vector<8x32xf32>
    %768 = vector.broadcast %40 : vector<1x32xf32> to vector<8x32xf32>
    %769 = arith.addf %767, %768 : vector<8x32xf32>
    %770 = arith.addf %769, %764 : vector<8x32xf32>
    %771 = arith.negf %743 : vector<8x32xf32>
    %772 = math.exp %771 : vector<8x32xf32>
    %cst_456 = arith.constant 1.000000e+00 : f32
    %773 = vector.broadcast %cst_456 : f32 to vector<8x32xf32>
    %774 = arith.addf %773, %772 : vector<8x32xf32>
    %775 = arith.divf %773, %774 : vector<8x32xf32>
    %776 = arith.negf %752 : vector<8x32xf32>
    %777 = math.exp %776 : vector<8x32xf32>
    %cst_457 = arith.constant 1.000000e+00 : f32
    %778 = vector.broadcast %cst_457 : f32 to vector<8x32xf32>
    %779 = arith.addf %778, %777 : vector<8x32xf32>
    %780 = arith.divf %778, %779 : vector<8x32xf32>
    %781 = math.tanh %761 : vector<8x32xf32>
    %782 = arith.negf %770 : vector<8x32xf32>
    %783 = math.exp %782 : vector<8x32xf32>
    %cst_458 = arith.constant 1.000000e+00 : f32
    %784 = vector.broadcast %cst_458 : f32 to vector<8x32xf32>
    %785 = arith.addf %784, %783 : vector<8x32xf32>
    %786 = arith.divf %784, %785 : vector<8x32xf32>
    %787 = arith.mulf %780, %682 : vector<8x32xf32>
    %788 = arith.mulf %775, %781 : vector<8x32xf32>
    %789 = arith.addf %787, %788 : vector<8x32xf32>
    %790 = math.tanh %789 : vector<8x32xf32>
    %791 = arith.mulf %786, %790 : vector<8x32xf32>
    %c7_i32 = arith.constant 7 : i32
    %c8_i32_459 = arith.constant 8 : i32
    %792 = arith.muli %c7_i32, %c8_i32_459 : i32
    %793 = tpu.assume_multiple %792, 8 : i32
    %794 = arith.truncf %732 : vector<8x32xf32> to vector<8x32xbf16>
    %c0_460 = arith.constant 0 : index
    %c0_461 = arith.constant 0 : index
    %c0_462 = arith.constant 0 : index
    %795 = vector.load %arg3[%c0_460, %c0_461, %c0_462] : memref<4x32x32xbf16, #tpu.memory_space<vmem>>, vector<1x32x32xbf16>
    %796 = vector.shape_cast %795 : vector<1x32x32xbf16> to vector<32x32xbf16>
    %cst_463 = arith.constant dense<0.000000e+00> : vector<8x32xf32>
    %797 = tpu.matmul %794, %796, %cst_463 {dimension_numbers = #tpu.dot_dimension_numbers<[1], [0], [0], [1], [0, 0, 1, 1], [], []>} : vector<8x32xbf16>, vector<32x32xbf16>, vector<8x32xf32> -> vector<8x32xf32>
    %798 = arith.index_cast %793 : i32 to index
    %c0_464 = arith.constant 0 : index
    %799 = vector.load %arg11[%798, %c0_464] : memref<64x32xf32, #tpu.memory_space<vmem>>, vector<8x32xf32>
    %800 = arith.addf %799, %797 : vector<8x32xf32>
    %c1_465 = arith.constant 1 : index
    %c0_466 = arith.constant 0 : index
    %c0_467 = arith.constant 0 : index
    %801 = vector.load %arg3[%c1_465, %c0_466, %c0_467] : memref<4x32x32xbf16, #tpu.memory_space<vmem>>, vector<1x32x32xbf16>
    %802 = vector.shape_cast %801 : vector<1x32x32xbf16> to vector<32x32xbf16>
    %cst_468 = arith.constant dense<0.000000e+00> : vector<8x32xf32>
    %803 = tpu.matmul %794, %802, %cst_468 {dimension_numbers = #tpu.dot_dimension_numbers<[1], [0], [0], [1], [0, 0, 1, 1], [], []>} : vector<8x32xbf16>, vector<32x32xbf16>, vector<8x32xf32> -> vector<8x32xf32>
    %804 = arith.index_cast %793 : i32 to index
    %c0_469 = arith.constant 0 : index
    %805 = vector.load %arg12[%804, %c0_469] : memref<64x32xf32, #tpu.memory_space<vmem>>, vector<8x32xf32>
    %806 = arith.addf %805, %803 : vector<8x32xf32>
    %c2_470 = arith.constant 2 : index
    %c0_471 = arith.constant 0 : index
    %c0_472 = arith.constant 0 : index
    %807 = vector.load %arg3[%c2_470, %c0_471, %c0_472] : memref<4x32x32xbf16, #tpu.memory_space<vmem>>, vector<1x32x32xbf16>
    %808 = vector.shape_cast %807 : vector<1x32x32xbf16> to vector<32x32xbf16>
    %cst_473 = arith.constant dense<0.000000e+00> : vector<8x32xf32>
    %809 = tpu.matmul %794, %808, %cst_473 {dimension_numbers = #tpu.dot_dimension_numbers<[1], [0], [0], [1], [0, 0, 1, 1], [], []>} : vector<8x32xbf16>, vector<32x32xbf16>, vector<8x32xf32> -> vector<8x32xf32>
    %810 = arith.index_cast %793 : i32 to index
    %c0_474 = arith.constant 0 : index
    %811 = vector.load %arg13[%810, %c0_474] : memref<64x32xf32, #tpu.memory_space<vmem>>, vector<8x32xf32>
    %812 = arith.addf %811, %809 : vector<8x32xf32>
    %c3_475 = arith.constant 3 : index
    %c0_476 = arith.constant 0 : index
    %c0_477 = arith.constant 0 : index
    %813 = vector.load %arg3[%c3_475, %c0_476, %c0_477] : memref<4x32x32xbf16, #tpu.memory_space<vmem>>, vector<1x32x32xbf16>
    %814 = vector.shape_cast %813 : vector<1x32x32xbf16> to vector<32x32xbf16>
    %cst_478 = arith.constant dense<0.000000e+00> : vector<8x32xf32>
    %815 = tpu.matmul %794, %814, %cst_478 {dimension_numbers = #tpu.dot_dimension_numbers<[1], [0], [0], [1], [0, 0, 1, 1], [], []>} : vector<8x32xbf16>, vector<32x32xbf16>, vector<8x32xf32> -> vector<8x32xf32>
    %816 = arith.index_cast %793 : i32 to index
    %c0_479 = arith.constant 0 : index
    %817 = vector.load %arg14[%816, %c0_479] : memref<64x32xf32, #tpu.memory_space<vmem>>, vector<8x32xf32>
    %818 = arith.addf %817, %815 : vector<8x32xf32>
    %819 = arith.negf %800 : vector<8x32xf32>
    %820 = math.exp %819 : vector<8x32xf32>
    %cst_480 = arith.constant 1.000000e+00 : f32
    %821 = vector.broadcast %cst_480 : f32 to vector<8x32xf32>
    %822 = arith.addf %821, %820 : vector<8x32xf32>
    %823 = arith.divf %821, %822 : vector<8x32xf32>
    %824 = arith.negf %806 : vector<8x32xf32>
    %825 = math.exp %824 : vector<8x32xf32>
    %cst_481 = arith.constant 1.000000e+00 : f32
    %826 = vector.broadcast %cst_481 : f32 to vector<8x32xf32>
    %827 = arith.addf %826, %825 : vector<8x32xf32>
    %828 = arith.divf %826, %827 : vector<8x32xf32>
    %829 = math.tanh %812 : vector<8x32xf32>
    %830 = arith.negf %818 : vector<8x32xf32>
    %831 = math.exp %830 : vector<8x32xf32>
    %cst_482 = arith.constant 1.000000e+00 : f32
    %832 = vector.broadcast %cst_482 : f32 to vector<8x32xf32>
    %833 = arith.addf %832, %831 : vector<8x32xf32>
    %834 = arith.divf %832, %833 : vector<8x32xf32>
    %835 = arith.mulf %828, %730 : vector<8x32xf32>
    %836 = arith.mulf %823, %829 : vector<8x32xf32>
    %837 = arith.addf %835, %836 : vector<8x32xf32>
    %838 = math.tanh %837 : vector<8x32xf32>
    %839 = arith.mulf %834, %838 : vector<8x32xf32>
    %840 = arith.truncf %839 : vector<8x32xf32> to vector<8x32xbf16>
    %841 = arith.truncf %791 : vector<8x32xf32> to vector<8x32xbf16>
    %c0_483 = arith.constant 0 : index
    %c0_484 = arith.constant 0 : index
    %c0_485 = arith.constant 0 : index
    %842 = vector.load %arg6[%c0_483, %c0_484, %c0_485] : memref<4x32x32xbf16, #tpu.memory_space<vmem>>, vector<1x32x32xbf16>
    %843 = vector.shape_cast %842 : vector<1x32x32xbf16> to vector<32x32xbf16>
    %cst_486 = arith.constant dense<0.000000e+00> : vector<8x32xf32>
    %844 = tpu.matmul %841, %843, %cst_486 {dimension_numbers = #tpu.dot_dimension_numbers<[1], [0], [0], [1], [0, 0, 1, 1], [], []>} : vector<8x32xbf16>, vector<32x32xbf16>, vector<8x32xf32> -> vector<8x32xf32>
    %c0_487 = arith.constant 0 : index
    %c0_488 = arith.constant 0 : index
    %c0_489 = arith.constant 0 : index
    %845 = vector.load %arg5[%c0_487, %c0_488, %c0_489] : memref<4x32x32xbf16, #tpu.memory_space<vmem>>, vector<1x32x32xbf16>
    %846 = vector.shape_cast %845 : vector<1x32x32xbf16> to vector<32x32xbf16>
    %cst_490 = arith.constant dense<0.000000e+00> : vector<8x32xf32>
    %847 = tpu.matmul %840, %846, %cst_490 {dimension_numbers = #tpu.dot_dimension_numbers<[1], [0], [0], [1], [0, 0, 1, 1], [], []>} : vector<8x32xbf16>, vector<32x32xbf16>, vector<8x32xf32> -> vector<8x32xf32>
    %848 = vector.broadcast %34 : vector<1x32xf32> to vector<8x32xf32>
    %849 = arith.addf %847, %848 : vector<8x32xf32>
    %850 = arith.addf %849, %844 : vector<8x32xf32>
    %c1_491 = arith.constant 1 : index
    %c0_492 = arith.constant 0 : index
    %c0_493 = arith.constant 0 : index
    %851 = vector.load %arg6[%c1_491, %c0_492, %c0_493] : memref<4x32x32xbf16, #tpu.memory_space<vmem>>, vector<1x32x32xbf16>
    %852 = vector.shape_cast %851 : vector<1x32x32xbf16> to vector<32x32xbf16>
    %cst_494 = arith.constant dense<0.000000e+00> : vector<8x32xf32>
    %853 = tpu.matmul %841, %852, %cst_494 {dimension_numbers = #tpu.dot_dimension_numbers<[1], [0], [0], [1], [0, 0, 1, 1], [], []>} : vector<8x32xbf16>, vector<32x32xbf16>, vector<8x32xf32> -> vector<8x32xf32>
    %c1_495 = arith.constant 1 : index
    %c0_496 = arith.constant 0 : index
    %c0_497 = arith.constant 0 : index
    %854 = vector.load %arg5[%c1_495, %c0_496, %c0_497] : memref<4x32x32xbf16, #tpu.memory_space<vmem>>, vector<1x32x32xbf16>
    %855 = vector.shape_cast %854 : vector<1x32x32xbf16> to vector<32x32xbf16>
    %cst_498 = arith.constant dense<0.000000e+00> : vector<8x32xf32>
    %856 = tpu.matmul %840, %855, %cst_498 {dimension_numbers = #tpu.dot_dimension_numbers<[1], [0], [0], [1], [0, 0, 1, 1], [], []>} : vector<8x32xbf16>, vector<32x32xbf16>, vector<8x32xf32> -> vector<8x32xf32>
    %857 = vector.broadcast %36 : vector<1x32xf32> to vector<8x32xf32>
    %858 = arith.addf %856, %857 : vector<8x32xf32>
    %859 = arith.addf %858, %853 : vector<8x32xf32>
    %c2_499 = arith.constant 2 : index
    %c0_500 = arith.constant 0 : index
    %c0_501 = arith.constant 0 : index
    %860 = vector.load %arg6[%c2_499, %c0_500, %c0_501] : memref<4x32x32xbf16, #tpu.memory_space<vmem>>, vector<1x32x32xbf16>
    %861 = vector.shape_cast %860 : vector<1x32x32xbf16> to vector<32x32xbf16>
    %cst_502 = arith.constant dense<0.000000e+00> : vector<8x32xf32>
    %862 = tpu.matmul %841, %861, %cst_502 {dimension_numbers = #tpu.dot_dimension_numbers<[1], [0], [0], [1], [0, 0, 1, 1], [], []>} : vector<8x32xbf16>, vector<32x32xbf16>, vector<8x32xf32> -> vector<8x32xf32>
    %c2_503 = arith.constant 2 : index
    %c0_504 = arith.constant 0 : index
    %c0_505 = arith.constant 0 : index
    %863 = vector.load %arg5[%c2_503, %c0_504, %c0_505] : memref<4x32x32xbf16, #tpu.memory_space<vmem>>, vector<1x32x32xbf16>
    %864 = vector.shape_cast %863 : vector<1x32x32xbf16> to vector<32x32xbf16>
    %cst_506 = arith.constant dense<0.000000e+00> : vector<8x32xf32>
    %865 = tpu.matmul %840, %864, %cst_506 {dimension_numbers = #tpu.dot_dimension_numbers<[1], [0], [0], [1], [0, 0, 1, 1], [], []>} : vector<8x32xbf16>, vector<32x32xbf16>, vector<8x32xf32> -> vector<8x32xf32>
    %866 = vector.broadcast %38 : vector<1x32xf32> to vector<8x32xf32>
    %867 = arith.addf %865, %866 : vector<8x32xf32>
    %868 = arith.addf %867, %862 : vector<8x32xf32>
    %c3_507 = arith.constant 3 : index
    %c0_508 = arith.constant 0 : index
    %c0_509 = arith.constant 0 : index
    %869 = vector.load %arg6[%c3_507, %c0_508, %c0_509] : memref<4x32x32xbf16, #tpu.memory_space<vmem>>, vector<1x32x32xbf16>
    %870 = vector.shape_cast %869 : vector<1x32x32xbf16> to vector<32x32xbf16>
    %cst_510 = arith.constant dense<0.000000e+00> : vector<8x32xf32>
    %871 = tpu.matmul %841, %870, %cst_510 {dimension_numbers = #tpu.dot_dimension_numbers<[1], [0], [0], [1], [0, 0, 1, 1], [], []>} : vector<8x32xbf16>, vector<32x32xbf16>, vector<8x32xf32> -> vector<8x32xf32>
    %c3_511 = arith.constant 3 : index
    %c0_512 = arith.constant 0 : index
    %c0_513 = arith.constant 0 : index
    %872 = vector.load %arg5[%c3_511, %c0_512, %c0_513] : memref<4x32x32xbf16, #tpu.memory_space<vmem>>, vector<1x32x32xbf16>
    %873 = vector.shape_cast %872 : vector<1x32x32xbf16> to vector<32x32xbf16>
    %cst_514 = arith.constant dense<0.000000e+00> : vector<8x32xf32>
    %874 = tpu.matmul %840, %873, %cst_514 {dimension_numbers = #tpu.dot_dimension_numbers<[1], [0], [0], [1], [0, 0, 1, 1], [], []>} : vector<8x32xbf16>, vector<32x32xbf16>, vector<8x32xf32> -> vector<8x32xf32>
    %875 = vector.broadcast %40 : vector<1x32xf32> to vector<8x32xf32>
    %876 = arith.addf %874, %875 : vector<8x32xf32>
    %877 = arith.addf %876, %871 : vector<8x32xf32>
    %878 = arith.negf %850 : vector<8x32xf32>
    %879 = math.exp %878 : vector<8x32xf32>
    %cst_515 = arith.constant 1.000000e+00 : f32
    %880 = vector.broadcast %cst_515 : f32 to vector<8x32xf32>
    %881 = arith.addf %880, %879 : vector<8x32xf32>
    %882 = arith.divf %880, %881 : vector<8x32xf32>
    %883 = arith.negf %859 : vector<8x32xf32>
    %884 = math.exp %883 : vector<8x32xf32>
    %cst_516 = arith.constant 1.000000e+00 : f32
    %885 = vector.broadcast %cst_516 : f32 to vector<8x32xf32>
    %886 = arith.addf %885, %884 : vector<8x32xf32>
    %887 = arith.divf %885, %886 : vector<8x32xf32>
    %888 = math.tanh %868 : vector<8x32xf32>
    %889 = arith.negf %877 : vector<8x32xf32>
    %890 = math.exp %889 : vector<8x32xf32>
    %cst_517 = arith.constant 1.000000e+00 : f32
    %891 = vector.broadcast %cst_517 : f32 to vector<8x32xf32>
    %892 = arith.addf %891, %890 : vector<8x32xf32>
    %893 = arith.divf %891, %892 : vector<8x32xf32>
    %894 = arith.mulf %887, %789 : vector<8x32xf32>
    %895 = arith.mulf %882, %888 : vector<8x32xf32>
    %896 = arith.addf %894, %895 : vector<8x32xf32>
    %897 = math.tanh %896 : vector<8x32xf32>
    %898 = arith.mulf %893, %897 : vector<8x32xf32>
    %c8_i32_518 = arith.constant 8 : i32
    %899 = arith.truncf %898 : vector<8x32xf32> to vector<8x32xbf16>
    %c0_519 = arith.constant 0 : index
    %c0_520 = arith.constant 0 : index
    %900 = vector.load %arg8[%c0_519, %c0_520] : memref<32x3xbf16, #tpu.memory_space<vmem>>, vector<32x3xbf16>
    %cst_521 = arith.constant dense<0.000000e+00> : vector<8x3xf32>
    %901 = tpu.matmul %899, %900, %cst_521 {dimension_numbers = #tpu.dot_dimension_numbers<[1], [0], [0], [1], [0, 0, 1, 1], [], []>} : vector<8x32xbf16>, vector<32x3xbf16>, vector<8x3xf32> -> vector<8x3xf32>
    %c0_522 = arith.constant 0 : index
    %c0_523 = arith.constant 0 : index
    %902 = vector.load %arg9[%c0_522, %c0_523] : memref<1x3xf32, #tpu.memory_space<vmem>>, vector<1x3xf32>
    %903 = vector.broadcast %902 : vector<1x3xf32> to vector<8x3xf32>
    %904 = arith.addf %901, %903 : vector<8x3xf32>
    %c0_524 = arith.constant 0 : index
    %c0_525 = arith.constant 0 : index
    %905 = vector.load %arg10[%c0_524, %c0_525] : memref<8x3xf32, #tpu.memory_space<vmem>>, vector<8x3xf32>
    tpu.vector_store %arg10[%c0_524, %c0_525], %904 {strides = array<i32>} : memref<8x3xf32, #tpu.memory_space<vmem>>, vector<8x3xf32>,
    return
  }
  func.func @transform_0(%arg0: i32) -> (i32, i32) {
    %c0_i32 = arith.constant 0 : i32
    %c0_i32_0 = arith.constant 0 : i32
    %c0_i32_1 = arith.constant 0 : i32
    return %c0_i32, %c0_i32_0 : i32, i32
  }
  func.func @transform_1(%arg0: i32) -> (i32, i32, i32) {
    %c0_i32 = arith.constant 0 : i32
    %c0_i32_0 = arith.constant 0 : i32
    %c0_i32_1 = arith.constant 0 : i32
    %c0_i32_2 = arith.constant 0 : i32
    return %c0_i32, %c0_i32_0, %c0_i32_1 : i32, i32, i32
  }
  func.func @transform_2(%arg0: i32) -> (i32, i32, i32) {
    %c0_i32 = arith.constant 0 : i32
    %c0_i32_0 = arith.constant 0 : i32
    %c0_i32_1 = arith.constant 0 : i32
    %c0_i32_2 = arith.constant 0 : i32
    return %c0_i32, %c0_i32_0, %c0_i32_1 : i32, i32, i32
  }
  func.func @transform_3(%arg0: i32) -> (i32, i32, i32) {
    %c0_i32 = arith.constant 0 : i32
    %c0_i32_0 = arith.constant 0 : i32
    %c0_i32_1 = arith.constant 0 : i32
    %c0_i32_2 = arith.constant 0 : i32
    return %c0_i32, %c0_i32_0, %c0_i32_1 : i32, i32, i32
  }
  func.func @transform_4(%arg0: i32) -> (i32, i32, i32) {
    %c0_i32 = arith.constant 0 : i32
    %c0_i32_0 = arith.constant 0 : i32
    %c0_i32_1 = arith.constant 0 : i32
    %c0_i32_2 = arith.constant 0 : i32
    return %c0_i32, %c0_i32_0, %c0_i32_1 : i32, i32, i32
  }
  func.func @transform_5(%arg0: i32) -> (i32, i32, i32) {
    %c0_i32 = arith.constant 0 : i32
    %c0_i32_0 = arith.constant 0 : i32
    %c0_i32_1 = arith.constant 0 : i32
    %c0_i32_2 = arith.constant 0 : i32
    return %c0_i32, %c0_i32_0, %c0_i32_1 : i32, i32, i32
  }
  func.func @transform_6(%arg0: i32) -> (i32, i32, i32) {
    %c0_i32 = arith.constant 0 : i32
    %c0_i32_0 = arith.constant 0 : i32
    %c0_i32_1 = arith.constant 0 : i32
    %c0_i32_2 = arith.constant 0 : i32
    return %c0_i32, %c0_i32_0, %c0_i32_1 : i32, i32, i32
  }
  func.func @transform_7(%arg0: i32) -> (i32, i32) {
    %c0_i32 = arith.constant 0 : i32
    %c0_i32_0 = arith.constant 0 : i32
    %c0_i32_1 = arith.constant 0 : i32
    return %c0_i32, %c0_i32_0 : i32, i32
  }
  func.func @transform_8(%arg0: i32) -> (i32, i32) {
    %c0_i32 = arith.constant 0 : i32
    %c0_i32_0 = arith.constant 0 : i32
    %c0_i32_1 = arith.constant 0 : i32
    return %c0_i32, %c0_i32_0 : i32, i32
  }
  func.func @transform_9(%arg0: i32) -> (i32, i32) {
    %c0_i32 = arith.constant 0 : i32
    %c0_i32_0 = arith.constant 0 : i32
    %c0_i32_1 = arith.constant 0 : i32
    return %c0_i32, %c0_i32_0 : i32, i32
  }
}

</mosaic_0001>

<bundles_post_ra>
// kernel: lstm_model_forward.1
= control target key start
LH: loop header
LB: loop body
LE: loop exit
PB: predicated region body
PF: predicated region fallthrough
CT: control target
= control target key end

     0   :  { %14 = vsyncpa [#allocation7], 0  ;;  %s8118_s0 = inlined_call_operand.vmem [shape: bf16[64,16], index: 0, kind: input, shape index: {}]   ;;  %s8119_s1 = inlined_call_operand.vmem [shape: bf16[4,16,32], index: 1, kind: input, shape index: {}]   ;;  %s8120_s2 = inlined_call_operand.vmem [shape: bf16[4,32,32], index: 2, kind: input, shape index: {}]   ;;  %s8121_s3 = inlined_call_operand.vmem [shape: f32[4,1,32], index: 3, kind: input, shape index: {}]   ;;  %s8122_s4 = inlined_call_operand.hbm [shape: bf16[4,32,32], index: 4, kind: input, shape index: {}]   ;;  %s8123_s5 = inlined_call_operand.hbm [shape: bf16[4,32,32], index: 5, kind: input, shape index: {}]   ;;  %s8124_s6 = inlined_call_operand.vmem [shape: f32[4,1,32], index: 6, kind: input, shape index: {}]   ;;  %s8125_s7 = inlined_call_operand.vmem [shape: bf16[32,3], index: 7, kind: input, shape index: {}]   ;;  %s8126_s8 = inlined_call_operand.vmem [shape: f32[1,3], index: 8, kind: input, shape index: {}]   ;;  %s8127_s9 = inlined_call_operand.vmem [shape: f32[8,3], index: 9, kind: output, shape index: {}]  }
   0x1   :  { %15 = vsyncpa [#allocation9], 0  ;;  %s6923_s30 = smov [#allocation6]  }
   0x2   :  { %s29_s10 = sshll.u32 %s6923_s30, 4  ;;  %s30_s10 = int_to_ptr.vmem [resolvable:$true] %s29_s10 }
   0x3   :  { %s6887_s11 = scalar_lea.vmem %s30_s10, 1024  ;;  %p6892_p1 = scmp.lt.s32.totalorder %s30_s10, %s30_s10 }
   0x4   :  { %p6888_p0 = scmp.ne.s32.totalorder %s30_s10, %s6887_s11  ;;  %p6893_p2 = scmp.lt.s32.totalorder %s6887_s11, %s6887_s11 }
   0x6   :  { %p6894_p3 = por %p6893_p2, %p6892_p1 }
   0x8   :  { %p6895_p4 = pnand %p6894_p3, %p6888_p0 }
   0xa   :  { %6898 = shalt.err (!%p6895_p4)
}
   0xb   :  { %s6924_s12 = smov 64   ;;  %s6925_s13 = smov 4  }
   0xc   :  { %35 = dma.hbm_to_vmem [thread:$0]  %s8122_s4, 1024, %s30_s10, [#allocation7], %s6924_s12, %s6924_s12, %s6925_s13  }
   0xd   :  { %s6926_s16 = smov [#allocation8]  }
   0xe   :  { %s41_s17 = sshll.u32 %s6926_s16, 4  ;;  %s42_s17 = int_to_ptr.vmem [resolvable:$true] %s41_s17 }
   0xf   :  { %s6907_s18 = scalar_lea.vmem %s42_s17, 1024  ;;  %p6912_p6 = scmp.lt.s32.totalorder %s42_s17, %s42_s17 }
  0x10   :  { %p6908_p5 = scmp.ne.s32.totalorder %s42_s17, %s6907_s18  ;;  %p6913_p7 = scmp.lt.s32.totalorder %s6907_s18, %s6907_s18 }
  0x12   :  { %p6914_p8 = por %p6913_p7, %p6912_p6 }
  0x14   :  { %p6915_p9 = pnand %p6914_p8, %p6908_p5 }
  0x16   :  { %6918 = shalt.err (!%p6915_p9)
}
  0x17   :  { %47 = dma.hbm_to_vmem [thread:$0]  %s8123_s5, 1024, %s42_s17, [#allocation9], %s6924_s12, %s6924_s12, %s6925_s13  }
  0x18   :  { %6919 = dma.done.wait [#allocation7], 1024  }
  0x19   :  { %6920 = vsyncadd [#allocation7], 4294966272 }
  0x1a   :  { %6921 = dma.done.wait [#allocation9], 1024  }
  0x1b   :  { %6922 = vsyncadd [#allocation9], 4294966272  ;;  %v6533_v0 = vld [vmem:[%s8119_s1] sm:$0xff]   ;;  %v6534_v1 = vld [vmem:[%s8119_s1 + $0x8] sm:$0xff]   ;;  %vm104_vm0 = vcmask 130048   ;;  %v6927_v8 = vmov 0.0  }
  0x1c   :  { %5710 = vmatprep.subr.bf16.mxu0 %v6533_v0  ;;  %v6535_v2 = vld [vmem:[%s8118_s0] sm:$0xff]   ;;  %5720 = vmatprep.subr.bf16.mxu1 %v6534_v1  ;;  %v6536_v3 = vld [vmem:[%s8118_s0 + $0x8] sm:$0xff]   ;;  %v6537_v4 = vld [vmem:[%s8119_s1 + $0x10] sm:$0xff]   ;;  %vm6928_vm1 = vmmov 0   ;;  %v6929_v15 = vmov 0   ;;  %vm182_vm2 = vcmask 261120  }
  0x1d   :  { %5711 = vmatpush3.bf16.msra.mxu0 %v6533_v0  ;;  %5721 = vmatpush3.bf16.msra.mxu1 %v6534_v1  ;;  %v6538_v5 = vld [vmem:[%s8119_s1 + $0x18] sm:$0xff]   ;;  %v6539_v6 = vld [vmem:[%s8118_s0 + $0x10] sm:$0xff]   ;;  %v7025_v9 = vld [vmem:[%s8120_s2 + $0x8] sm:$0xff]   ;;  %vm5171_vm3 = vcmask 23552  }
  0x1e   :  { %5712 = vmatprep.mubr.msk.bf16.mxu0 %vm104_vm0, %v6535_v2  ;;  %5722 = vmatprep.mubr.msk.bf16.mxu1 %vm104_vm0, %v6535_v2  ;;  %v6540_v7 = vld [vmem:[%s8118_s0 + $0x18] sm:$0xff]   ;;  %v7035_v11 = vld [vmem:[%s8120_s2] sm:$0xff]   ;;  %v7041_v12 = vld [vmem:[%s8120_s2 + $0x10] sm:$0xff]  }
  0x1f   :  { %5730 = vmatprep.subr.bf16.mxu0 %v6537_v4  ;;  %5740 = vmatprep.subr.bf16.mxu1 %v6538_v5  ;;  %v7030_v10 = vld [vmem:[%s8120_s2 + $0x18] sm:$0xff]   ;;  %v7063_v13 = vld [vmem:[%s8120_s2 + $0x28] sm:$0xff]   ;;  %v7074_v16 = vld [vmem:[%s8120_s2 + $0x20] sm:$0xff]  }
  0x20   :  { %5713 = vmatmul.mubr.msk.bf16.vlgmr.msra.gmra.mxu0 %vm104_vm0, %v6536_v3  ;;  %5723 = vmatmul.mubr.msk.bf16.vlgmr.msra.gmra.mxu1 %vm104_vm0, %v6536_v3  ;;  %v7068_v14 = vld [vmem:[%s8120_s2 + $0x38] sm:$0xff]   ;;  %v7081_v17 = vld [vmem:[%s8120_s2 + $0x30] sm:$0xff]   ;;  %v7096_v18 = vld [vmem:[#allocation8 + $0x8] sm:$0xff]  }
  0x21   :  { %5731 = vmatpush3.bf16.msra.mxu0 %v6537_v4  ;;  %5741 = vmatpush3.bf16.msra.mxu1 %v6538_v5  ;;  %v7100_v19 = vld [vmem:[#allocation8] sm:$0xff]   ;;  %v7104_v20 = vld [vmem:[#allocation8 + $0x18] sm:$0xff]   ;;  %v7110_v21 = vld [vmem:[#allocation8 + $0x10] sm:$0xff]  }
  0x22   :  { %5716 = vmatprep.mubr.msk.bf16.mxu0 %vm104_vm0, %v6539_v6  ;;  %5726 = vmatprep.mubr.msk.bf16.mxu1 %vm104_vm0, %v6539_v6  ;;  %v7114_v22 = vld [vmem:[#allocation8 + $0x28] sm:$0xff]   ;;  %v7120_v23 = vld [vmem:[#allocation8 + $0x20] sm:$0xff]   ;;  %v7124_v24 = vld [vmem:[#allocation8 + $0x38] sm:$0xff]  }
  0x23   :  { %5750 = vmatprep.subr.bf16.mxu0 %v6927_v8  ;;  %5758 = vmatprep.subr.bf16.mxu1 %v6927_v8  ;;  %v7130_v25 = vld [vmem:[#allocation8 + $0x30] sm:$0xff]   ;;  %v7134_v26 = vld [vmem:[#allocation6 + $0x8] sm:$0xff]   ;;  %v7140_v27 = vld [vmem:[#allocation6] sm:$0xff]  }
  0x24   :  { %v5179_v28 = vld [vmem:[%s8121_s3] ss:$0 sm:$0xff]  ;;  %v5192_v29 = vld [vmem:[%s8121_s3 + $0x1] ss:$0 sm:$0xff]  ;;  %v5201_v59 = vld [vmem:[%s8121_s3 + $0x2] ss:$0 sm:$0xff] }
  0x25   :  { %v5210_v62 = vld [vmem:[%s8121_s3 + $0x3] ss:$0 sm:$0xff] }
  0x28   :  { %5717 = vmatmul.mubr.msk.bf16.gmra.mxu0 %vm104_vm0, %v6540_v7  ;;  %5727 = vmatmul.mubr.msk.bf16.gmra.mxu1 %vm104_vm0, %v6540_v7 }
  0x29   :  { %5732 = vmatprep.mubr.msk.bf16.mxu0 %vm104_vm0, %v6535_v2  ;;  %5742 = vmatprep.mubr.msk.bf16.mxu1 %vm104_vm0, %v6535_v2 }
  0x30   :  { %5733 = vmatmul.mubr.msk.bf16.vlgmr.msra.gmra.mxu0 %vm104_vm0, %v6536_v3  ;;  %5743 = vmatmul.mubr.msk.bf16.vlgmr.msra.gmra.mxu1 %vm104_vm0, %v6536_v3 }
  0x31   :  { %5751 = vmatpush3.bf16.msra.mxu0 %v7025_v9  ;;  %5759 = vmatpush3.bf16.msra.mxu1 %v7030_v10 }
  0x32   :  { %5736 = vmatprep.mubr.msk.bf16.mxu0 %vm104_vm0, %v6539_v6  ;;  %5746 = vmatprep.mubr.msk.bf16.mxu1 %vm104_vm0, %v6539_v6 }
  0x33   :  { %5752 = vmatprep.subr.bf16.mxu0 %v6927_v8  ;;  %5760 = vmatprep.subr.bf16.mxu1 %v6927_v8 }
  0x35   :  { %5753 = vmatpush3.bf16.msra.mxu0 %v7035_v11  ;;  %5761 = vmatpush3.bf16.msra.mxu1 %v7041_v12 }
  0x36   :  { %5766 = vmatprep.subr.bf16.mxu0 %v6927_v8  ;;  %5774 = vmatprep.subr.bf16.mxu1 %v6927_v8 }
  0x38   :  { %5737 = vmatmul.mubr.msk.bf16.gmra.mxu0 %vm104_vm0, %v6540_v7  ;;  %5747 = vmatmul.mubr.msk.bf16.gmra.mxu1 %vm104_vm0, %v6540_v7 }
  0x39   :  { %5754 = vmatprep.mubr.msk.bf16.mxu0 %vm6928_vm1, %v6927_v8  ;;  %5762 = vmatprep.mubr.msk.bf16.mxu1 %vm6928_vm1, %v6927_v8 }
  0x40   :  { %5755 = vmatmul.mubr.bf16.vlgmr.msra.gmra.mxu0 %v6929_v15  ;;  %5763 = vmatmul.mubr.bf16.vlgmr.msra.gmra.mxu1 %v6929_v15 }
  0x41   :  { %5767 = vmatpush3.bf16.msra.mxu0 %v7063_v13  ;;  %5775 = vmatpush3.bf16.msra.mxu1 %v7068_v14 }
  0x42   :  { %5768 = vmatprep.subr.bf16.mxu0 %v6927_v8  ;;  %5776 = vmatprep.subr.bf16.mxu1 %v6927_v8 }
  0x43   :  { %5770 = vmatprep.mubr.msk.bf16.mxu0 %vm6928_vm1, %v6927_v8  ;;  %5778 = vmatprep.mubr.msk.bf16.mxu1 %vm6928_vm1, %v6927_v8 }
  0x45   :  { %5769 = vmatpush3.bf16.msra.mxu0 %v7074_v16  ;;  %5777 = vmatpush3.bf16.msra.mxu1 %v7081_v17 }
  0x46   :  { %5782 = vmatprep.subr.bf16.mxu0 %v6927_v8  ;;  %5790 = vmatprep.subr.bf16.mxu1 %v6927_v8 }
  0x48   :  { %5771 = vmatmul.mubr.bf16.vlgmr.msra.gmra.mxu0 %v6929_v15  ;;  %5779 = vmatmul.mubr.bf16.vlgmr.msra.gmra.mxu1 %v6929_v15 }
  0x49   :  { %5786 = vmatprep.mubr.msk.bf16.mxu0 %vm6928_vm1, %v6927_v8  ;;  %5794 = vmatprep.mubr.msk.bf16.mxu1 %vm6928_vm1, %v6927_v8 }
  0x4a   :  { %5783 = vmatpush3.bf16.msra.mxu0 %v7096_v18  ;;  %5791 = vmatpush3.bf16.msra.mxu1 %v7134_v26 }
  0x4b   :  { %5784 = vmatprep.subr.bf16.mxu0 %v6927_v8  ;;  %5792 = vmatprep.subr.bf16.mxu1 %v6927_v8 }
  0x4e   :  { %5785 = vmatpush3.bf16.msra.mxu0 %v7100_v19  ;;  %5793 = vmatpush3.bf16.msra.mxu1 %v7140_v27 }
  0x4f   :  { %5798 = vmatprep.subr.bf16.mxu0 %v6927_v8  ;;  %5806 = vmatprep.subr.bf16.mxu1 %v6927_v8 }
  0x51   :  { %5787 = vmatmul.mubr.bf16.vlgmr.msra.gmra.mxu0 %v6929_v15 }
  0x52   :  { %5799 = vmatpush3.bf16.msra.mxu0 %v7104_v20  ;;  %5802 = vmatprep.mubr.msk.bf16.mxu0 %vm6928_vm1, %v6927_v8 }
  0x53   :  { %5800 = vmatprep.subr.bf16.mxu0 %v6927_v8 }
  0x56   :  { %5801 = vmatpush3.bf16.msra.mxu0 %v7110_v21 }
  0x57   :  { %5814 = vmatprep.subr.bf16.mxu0 %v6927_v8 }
  0x59   :  { %5803 = vmatmul.mubr.bf16.vlgmr.msra.gmra.mxu0 %v6929_v15 }
  0x5a   :  { %5815 = vmatpush3.bf16.msra.mxu0 %v7114_v22  ;;  %5818 = vmatprep.mubr.msk.bf16.mxu0 %vm6928_vm1, %v6927_v8 }
  0x5b   :  { %5816 = vmatprep.subr.bf16.mxu0 %v6927_v8 }
  0x5e   :  { %5817 = vmatpush3.bf16.msra.mxu0 %v7120_v23 }
  0x5f   :  { %5830 = vmatprep.subr.bf16.mxu0 %v6927_v8 }
  0x61   :  { %5819 = vmatmul.mubr.bf16.vlgmr.msra.gmra.mxu0 %v6929_v15 }
  0x62   :  { %5831 = vmatpush3.bf16.msra.mxu0 %v7124_v24  ;;  %5834 = vmatprep.mubr.msk.bf16.mxu0 %vm6928_vm1, %v6927_v8 }
  0x63   :  { %5832 = vmatprep.subr.bf16.mxu0 %v6927_v8 }
  0x66   :  { %5833 = vmatpush3.bf16.msra.mxu0 %v7130_v25 }
  0x67   :  { %5846 = vmatprep.subr.bf16.mxu0 %v6927_v8 }
  0x69   :  { %5835 = vmatmul.mubr.bf16.vlgmr.msra.gmra.mxu0 %v6929_v15 }
  0x6a   :  { %5847 = vmatpush3.bf16.msra.mxu0 %v7025_v9  ;;  %5850 = vmatprep.mubr.msk.bf16.mxu0 %vm6928_vm1, %v6927_v8 }
  0x6b   :  { %5848 = vmatprep.subr.bf16.mxu0 %v6927_v8 }
  0x6e   :  { %5849 = vmatpush3.bf16.msra.mxu0 %v7035_v11 }
  0x6f   :  { %5862 = vmatprep.subr.bf16.mxu0 %v6927_v8 }
  0xe0   :  { %v5714_v30 = vpop.f32.mrf.mxu0  ;;  %v5724_v32 = vpop.f32.mrf.mxu1 }
  0xe1   :  { %v160_v31 = vadd.f32 %v5714_v30, %v5179_v28  ;;  %v251_v33 = vadd.f32 %v5724_v32, %v5192_v29 }
  0xe2   :  { %v151_v34 = vpop.f32.mrf.mxu0  ;;  %v242_v36 = vpop.f32.mrf.mxu1 }
  0xe3   :  { %185 = vst.msk [vmem:[#allocation2 + $0x10] sm:$0xff] %vm182_vm2, %v160_v31  ;;  %v152_v35 = vadd.f32 %v5179_v28, %v151_v34  ;;  %275 = vst.msk [vmem:[#allocation3 + $0x10] sm:$0xff] %vm182_vm2, %v251_v33  ;;  %v243_v37 = vadd.f32 %v5192_v29, %v242_v36 }
  0xe4   :  { %v5715_v38 = vpop.f32.mrf.mxu0  ;;  %v5725_v40 = vpop.f32.mrf.mxu1 }
  0xe5   :  { %183 = vst.msk [vmem:[#allocation2] sm:$0xff] %vm182_vm2, %v152_v35  ;;  %v163_v39 = vadd.f32 %v5715_v38, %v5179_v28  ;;  %273 = vst.msk [vmem:[#allocation3] sm:$0xff] %vm182_vm2, %v243_v37  ;;  %v254_v41 = vadd.f32 %v5725_v40, %v5192_v29 }
  0xe6   :  { %v154_v42 = vpop.f32.mrf.mxu0  ;;  %v245_v44 = vpop.f32.mrf.mxu1 }
  0xe7   :  { %186 = vst.msk [vmem:[#allocation2 + $0x18] sm:$0xff] %vm182_vm2, %v163_v39  ;;  %v155_v43 = vadd.f32 %v5179_v28, %v154_v42  ;;  %276 = vst.msk [vmem:[#allocation3 + $0x18] sm:$0xff] %vm182_vm2, %v254_v41  ;;  %v246_v45 = vadd.f32 %v5192_v29, %v245_v44 }
  0xe8   :  { %v5718_v46 = vpop.f32.mrf.mxu0  ;;  %v5728_v48 = vpop.f32.mrf.mxu1 }
  0xe9   :  { %184 = vst.msk [vmem:[#allocation2 + $0x8] sm:$0xff] %vm182_vm2, %v155_v43  ;;  %v176_v47 = vadd.f32 %v5718_v46, %v5179_v28  ;;  %274 = vst.msk [vmem:[#allocation3 + $0x8] sm:$0xff] %vm182_vm2, %v246_v45  ;;  %v267_v49 = vadd.f32 %v5728_v48, %v5192_v29 }
  0xea   :  { %v167_v50 = vpop.f32.mrf.mxu0  ;;  %v258_v52 = vpop.f32.mrf.mxu1 }
  0xeb   :  { %189 = vst.msk [vmem:[#allocation2 + $0x30] sm:$0xff] %vm182_vm2, %v176_v47  ;;  %v168_v51 = vadd.f32 %v5179_v28, %v167_v50  ;;  %279 = vst.msk [vmem:[#allocation3 + $0x30] sm:$0xff] %vm182_vm2, %v267_v49  ;;  %v259_v53 = vadd.f32 %v5192_v29, %v258_v52 }
  0xec   :  { %v5719_v54 = vpop.f32.mrf.mxu0  ;;  %v5729_v56 = vpop.f32.mrf.mxu1  ;;  %v527_v52 = vld [vmem:[#allocation2] sm:$0xff] }
  0xed   :  { %187 = vst.msk [vmem:[#allocation2 + $0x20] sm:$0xff] %vm182_vm2, %v168_v51  ;;  %v179_v55 = vadd.f32 %v5719_v54, %v5179_v28  ;;  %277 = vst.msk [vmem:[#allocation3 + $0x20] sm:$0xff] %vm182_vm2, %v259_v53  ;;  %v270_v57 = vadd.f32 %v5729_v56, %v5192_v29 }
  0xee   :  { %v170_v58 = vpop.f32.mrf.mxu0  ;;  %v261_v61 = vpop.f32.mrf.mxu1 }
  0xef   :  { %190 = vst.msk [vmem:[#allocation2 + $0x38] sm:$0xff] %vm182_vm2, %v179_v55  ;;  %v171_v60 = vadd.f32 %v5179_v28, %v170_v58  ;;  %280 = vst.msk [vmem:[#allocation3 + $0x38] sm:$0xff] %vm182_vm2, %v270_v57  ;;  %v262_v63 = vadd.f32 %v5192_v29, %v261_v61  ;;  %v586_v55 = vld [vmem:[#allocation3] sm:$0xff] }
  0xf0   :  { %v5734_v0 = vpop.f32.mrf.mxu0  ;;  %v5744_v2 = vpop.f32.mrf.mxu1 }
  0xf1   :  { %188 = vst.msk [vmem:[#allocation2 + $0x28] sm:$0xff] %vm182_vm2, %v171_v60  ;;  %v341_v1 = vadd.f32 %v5734_v0, %v5201_v59  ;;  %278 = vst.msk [vmem:[#allocation3 + $0x28] sm:$0xff] %vm182_vm2, %v262_v63  ;;  %v431_v3 = vadd.f32 %v5744_v2, %v5210_v62 }
  0xf2   :  { %v332_v4 = vpop.f32.mrf.mxu0  ;;  %v422_v6 = vpop.f32.mrf.mxu1 }
  0xf3   :  { %365 = vst.msk [vmem:[#allocation4 + $0x10] sm:$0xff] %vm182_vm2, %v341_v1  ;;  %v333_v5 = vadd.f32 %v5201_v59, %v332_v4  ;;  %455 = vst.msk [vmem:[#allocation5 + $0x10] sm:$0xff] %vm182_vm2, %v431_v3  ;;  %v423_v7 = vadd.f32 %v5210_v62, %v422_v6 }
  0xf4   :  { %v5735_v15 = vpop.f32.mrf.mxu0  ;;  %v5745_v29 = vpop.f32.mrf.mxu1 }
  0xf5   :  { %363 = vst.msk [vmem:[#allocation4] sm:$0xff] %vm182_vm2, %v333_v5  ;;  %v344_v28 = vadd.f32 %v5735_v15, %v5201_v59  ;;  %453 = vst.msk [vmem:[#allocation5] sm:$0xff] %vm182_vm2, %v423_v7  ;;  %v434_v30 = vadd.f32 %v5745_v29, %v5210_v62 }
  0xf6   :  { %v335_v31 = vpop.f32.mrf.mxu0  ;;  %v425_v33 = vpop.f32.mrf.mxu1 }
  0xf7   :  { %366 = vst.msk [vmem:[#allocation4 + $0x18] sm:$0xff] %vm182_vm2, %v344_v28  ;;  %v336_v32 = vadd.f32 %v5201_v59, %v335_v31  ;;  %456 = vst.msk [vmem:[#allocation5 + $0x18] sm:$0xff] %vm182_vm2, %v434_v30  ;;  %v426_v34 = vadd.f32 %v5210_v62, %v425_v33 }
  0xf8   :  { %v5738_v35 = vpop.f32.mrf.mxu0  ;;  %v5748_v37 = vpop.f32.mrf.mxu1 }
  0xf9   :  { %364 = vst.msk [vmem:[#allocation4 + $0x8] sm:$0xff] %vm182_vm2, %v336_v32  ;;  %v357_v36 = vadd.f32 %v5738_v35, %v5201_v59  ;;  %454 = vst.msk [vmem:[#allocation5 + $0x8] sm:$0xff] %vm182_vm2, %v426_v34  ;;  %v447_v38 = vadd.f32 %v5748_v37, %v5210_v62 }
  0xfa   :  { %v348_v39 = vpop.f32.mrf.mxu0  ;;  %v438_v41 = vpop.f32.mrf.mxu1 }
  0xfb   :  { %369 = vst.msk [vmem:[#allocation4 + $0x30] sm:$0xff] %vm182_vm2, %v357_v36  ;;  %v349_v40 = vadd.f32 %v5201_v59, %v348_v39  ;;  %459 = vst.msk [vmem:[#allocation5 + $0x30] sm:$0xff] %vm182_vm2, %v447_v38  ;;  %v439_v42 = vadd.f32 %v5210_v62, %v438_v41 }
  0xfc   :  { %v5739_v43 = vpop.f32.mrf.mxu0  ;;  %v5749_v45 = vpop.f32.mrf.mxu1  ;;  %v704_v3 = vld [vmem:[#allocation5] sm:$0xff] }
  0xfd   :  { %367 = vst.msk [vmem:[#allocation4 + $0x20] sm:$0xff] %vm182_vm2, %v349_v40  ;;  %v360_v44 = vadd.f32 %v5739_v43, %v5201_v59  ;;  %457 = vst.msk [vmem:[#allocation5 + $0x20] sm:$0xff] %vm182_vm2, %v439_v42  ;;  %v450_v46 = vadd.f32 %v5749_v45, %v5210_v62  ;;  %v645_v29 = vld [vmem:[#allocation4] sm:$0xff] }
  0xfe   :  { %v351_v47 = vpop.f32.mrf.mxu0  ;;  %v441_v49 = vpop.f32.mrf.mxu1 }
  0xff   :  { %370 = vst.msk [vmem:[#allocation4 + $0x38] sm:$0xff] %vm182_vm2, %v360_v44  ;;  %v352_v48 = vadd.f32 %v5201_v59, %v351_v47  ;;  %460 = vst.msk [vmem:[#allocation5 + $0x38] sm:$0xff] %vm182_vm2, %v450_v46  ;;  %v442_v50 = vadd.f32 %v5210_v62, %v441_v49 }
 0x100   :  { %v521_v51 = vpop.f32.mrf.mxu0  ;;  %v580_v54 = vpop.f32.mrf.mxu1 }
 0x101   :  { %368 = vst.msk [vmem:[#allocation4 + $0x28] sm:$0xff] %vm182_vm2, %v352_v48  ;;  %v528_v53 = vadd.f32 %v527_v52, %v521_v51  ;;  %458 = vst.msk [vmem:[#allocation5 + $0x28] sm:$0xff] %vm182_vm2, %v442_v50  ;;  %v587_v56 = vadd.f32 %v586_v55, %v580_v54  ;;  %v7195_v48 = vld [vmem:[#allocation6 + $0x18] sm:$0xff]   ;;  %v7201_v50 = vld [vmem:[#allocation6 + $0x10] sm:$0xff]  }
 0x102   :  { %v5756_v57 = vpop.f32.mrf.mxu0  ;;  %v5764_v60 = vpop.f32.mrf.mxu1  ;;  %v7211_v51 = vld [vmem:[#allocation6 + $0x28] sm:$0xff]   ;;  %v7218_v52 = vld [vmem:[#allocation6 + $0x20] sm:$0xff]   ;;  %v7235_v54 = vld [vmem:[#allocation6 + $0x30] sm:$0xff]  }
 0x103   :  { %v5239_v58 = vmul.f32 -1.442695, %v528_v53  ;;  %v5240_v61 = vmul.f32 -1.442695, %v587_v56  ;;  %v7228_v53 = vld [vmem:[#allocation6 + $0x38] sm:$0xff]  }
 0x104   :  { %v524_v63 = vpop.f32.mrf.mxu0  ;;  %v583_v59 = vpop.f32.mrf.mxu1 }
 0x105   :  { %6567 = vpow2.f32 %v5239_v58 }
 0x106   :  { %6569 = vpow2.f32 %v5240_v61  ;;  %v5757_v0 = vpop.f32.mrf.mxu0  ;;  %v5765_v62 = vpop.f32.mrf.mxu1 }
 0x108   :  { %v639_v1 = vpop.f32.mrf.mxu0  ;;  %v698_v2 = vpop.f32.mrf.mxu1 }
 0x109   :  { %v705_v5 = vadd.f32 %v704_v3, %v698_v2  ;;  %v646_v32 = vadd.f32 %v645_v29, %v639_v1 }
 0x10a   :  { %v5772_v4 = vpop.f32.mrf.mxu0  ;;  %v5780_v6 = vpop.f32.mrf.mxu1 }
 0x10b   :  { %v5241_v30 = vmul.f32 -1.442695, %v705_v5 }
 0x10c   :  { %v642_v7 = vpop.f32.mrf.mxu0  ;;  %v701_v15 = vpop.f32.mrf.mxu1 }
 0x10d   :  { %6571 = vpow2.f32 %v5241_v30  ;;  %v7266_v7 = vld [vmem:[%s8124_s6] ss:$0 sm:$0xff] }
 0x10e   :  { %v5773_v28 = vpop.f32.mrf.mxu0  ;;  %v5781_v31 = vpop.f32.mrf.mxu1  ;;  %6573 = vtanh.f32 %v646_v32 }
 0x111   :  { %v781_v55 = vpop.f32.mrf.mxu0 }
 0x112   :  { %v6568_v33 = vpop.eup %6567 }
 0x113   :  { %v6570_v34 = vpop.eup %6569  ;;  %v709_v35 = vadd.f32 1.0, %v6568_v33  ;;  %v5788_v56 = vpop.f32.mrf.mxu0 }
 0x114   :  { %v715_v36 = vadd.f32 1.0, %v6570_v34 }
 0x115   :  { %6575 = vrcp.f32 %v709_v35  ;;  %v784_v57 = vpop.f32.mrf.mxu0 }
 0x116   :  { %6577 = vrcp.f32 %v715_v36 }
 0x117   :  { %v5789_v58 = vpop.f32.mrf.mxu0 }
 0x119   :  { %v904_v60 = vpop.f32.mrf.mxu0 }
 0x11a   :  { %v6572_v37 = vpop.eup %6571 }
 0x11b   :  { %v6574_v38 = vpop.eup %6573  ;;  %v722_v42 = vadd.f32 1.0, %v6572_v37  ;;  %v5804_v61 = vpop.f32.mrf.mxu0 }
 0x11c   :  { %v1281_v61 = vld [vmem:[#allocation2 + $0x8] sm:$0xff] }
 0x11d   :  { %6579 = vrcp.f32 %v722_v42  ;;  %v907_v63 = vpop.f32.mrf.mxu0 }
 0x11e   :  { %v7280_v63 = vld [vmem:[%s8124_s6 + $0x2] ss:$0 sm:$0xff] }
 0x11f   :  { %v5805_v59 = vpop.f32.mrf.mxu0 }
 0x121   :  { %v1025_v0 = vpop.f32.mrf.mxu0 }
 0x122   :  { %v6576_v39 = vpop.eup %6575 }
 0x123   :  { %v6578_v40 = vpop.eup %6577  ;;  %v726_v41 = vmul.f32 %v6576_v39, %v6574_v38  ;;  %v5820_v62 = vpop.f32.mrf.mxu0  ;;  %v7272_v38 = vld [vmem:[%s8124_s6 + $0x1] ss:$0 sm:$0xff] }
 0x124   :  { %v725_v43 = vmul.f32 0.0, %v6578_v40 }
 0x125   :  { %v1028_v1 = vpop.f32.mrf.mxu0 }
 0x126   :  { %v7192_v44 = vadd.f32 %v726_v41, %v725_v43 }
 0x127   :  { %v5821_v2 = vpop.f32.mrf.mxu0 }
 0x128   :  { %6581 = vtanh.f32 %v7192_v44 }
 0x129   :  { %v1146_v3 = vpop.f32.mrf.mxu0 }
 0x12a   :  { %v6580_v45 = vpop.eup %6579 }
 0x12b   :  { %v5836_v4 = vpop.f32.mrf.mxu0 }
 0x12c   :  { %v7286_v4 = vld [vmem:[%s8124_s6 + $0x3] ss:$0 sm:$0xff] }
 0x12d   :  { %v1149_v5 = vpop.f32.mrf.mxu0 }
 0x12f   :  { %v5837_v6 = vpop.f32.mrf.mxu0 }
 0x135   :  { %v6582_v46 = vpop.eup %6581 }
 0x136   :  { %v729_v47 = vmul.f32 %v6582_v46, %v6580_v45 }
 0x138   :  { %v730_v49 = vpack.c.bf16 %v729_v47, %v729_v47 }
 0x13a   :  { %5795 = vmatmul.mubr.msk.bf16.vlgmr.msra.gmra.mxu1 %vm182_vm2, %v730_v49  ;;  %5851 = vmatmul.mubr.msk.bf16.vlgmr.msra.gmra.mxu0 %vm182_vm2, %v730_v49 }
 0x13b   :  { %5807 = vmatpush3.bf16.msra.mxu1 %v7195_v48  ;;  %5863 = vmatpush3.bf16.msra.mxu0 %v7063_v13 }
 0x13c   :  { %5808 = vmatprep.subr.bf16.mxu1 %v6927_v8  ;;  %5864 = vmatprep.subr.bf16.mxu0 %v6927_v8 }
 0x13d   :  { %5810 = vmatprep.mubr.msk.bf16.mxu1 %vm6928_vm1, %v6927_v8  ;;  %5866 = vmatprep.mubr.msk.bf16.mxu0 %vm6928_vm1, %v6927_v8 }
 0x13f   :  { %5809 = vmatpush3.bf16.msra.mxu1 %v7201_v50  ;;  %5865 = vmatpush3.bf16.msra.mxu0 %v7074_v16 }
 0x140   :  { %5822 = vmatprep.subr.bf16.mxu1 %v6927_v8  ;;  %5878 = vmatprep.subr.bf16.mxu0 %v6927_v8 }
 0x142   :  { %5811 = vmatmul.mubr.msk.bf16.vlgmr.msra.gmra.mxu1 %vm182_vm2, %v730_v49  ;;  %5867 = vmatmul.mubr.msk.bf16.vlgmr.msra.gmra.mxu0 %vm182_vm2, %v730_v49 }
 0x143   :  { %5823 = vmatpush3.bf16.msra.mxu1 %v7211_v51  ;;  %5826 = vmatprep.mubr.msk.bf16.mxu1 %vm6928_vm1, %v6927_v8 }
 0x144   :  { %5824 = vmatprep.subr.bf16.mxu1 %v6927_v8  ;;  %5879 = vmatpush3.bf16.msra.mxu0 %v7096_v18 }
 0x145   :  { %5880 = vmatprep.subr.bf16.mxu0 %v6927_v8  ;;  %5882 = vmatprep.mubr.msk.bf16.mxu0 %vm6928_vm1, %v6927_v8 }
 0x147   :  { %5825 = vmatpush3.bf16.msra.mxu1 %v7218_v52 }
 0x148   :  { %5838 = vmatprep.subr.bf16.mxu1 %v6927_v8  ;;  %5881 = vmatpush3.bf16.msra.mxu0 %v7100_v19 }
 0x149   :  { %5894 = vmatprep.subr.bf16.mxu0 %v6927_v8 }
 0x14a   :  { %5827 = vmatmul.mubr.msk.bf16.vlgmr.msra.gmra.mxu1 %vm182_vm2, %v730_v49 }
 0x14b   :  { %5839 = vmatpush3.bf16.msra.mxu1 %v7228_v53  ;;  %5842 = vmatprep.mubr.msk.bf16.mxu1 %vm6928_vm1, %v6927_v8 }
 0x14c   :  { %5840 = vmatprep.subr.bf16.mxu1 %v6927_v8 }
 0x14f   :  { %5841 = vmatpush3.bf16.msra.mxu1 %v7235_v54 }
 0x150   :  { %5854 = vmatprep.subr.bf16.mxu1 %v6927_v8 }
 0x152   :  { %5843 = vmatmul.mubr.msk.bf16.vlgmr.msra.gmra.mxu1 %vm182_vm2, %v730_v49 }
 0x153   :  { %5855 = vmatpush3.bf16.msra.mxu1 %v7030_v10  ;;  %5858 = vmatprep.mubr.msk.bf16.mxu1 %vm6928_vm1, %v6927_v8 }
 0x154   :  { %5856 = vmatprep.subr.bf16.mxu1 %v6927_v8 }
 0x157   :  { %5857 = vmatpush3.bf16.msra.mxu1 %v7041_v12 }
 0x158   :  { %5870 = vmatprep.subr.bf16.mxu1 %v6927_v8 }
 0x15a   :  { %5859 = vmatmul.mubr.msk.bf16.vlgmr.msra.gmra.mxu1 %vm182_vm2, %v730_v49 }
 0x15b   :  { %5871 = vmatpush3.bf16.msra.mxu1 %v7068_v14  ;;  %5874 = vmatprep.mubr.msk.bf16.mxu1 %vm6928_vm1, %v6927_v8 }
 0x15c   :  { %5872 = vmatprep.subr.bf16.mxu1 %v6927_v8 }
 0x15f   :  { %5873 = vmatpush3.bf16.msra.mxu1 %v7081_v17 }
 0x160   :  { %5886 = vmatprep.subr.bf16.mxu1 %v6927_v8 }
 0x162   :  { %5875 = vmatmul.mubr.msk.bf16.vlgmr.msra.gmra.mxu1 %vm182_vm2, %v730_v49 }
 0x163   :  { %5887 = vmatpush3.bf16.msra.mxu1 %v7134_v26  ;;  %5890 = vmatprep.mubr.msk.bf16.mxu1 %vm6928_vm1, %v6927_v8 }
 0x164   :  { %5888 = vmatprep.subr.bf16.mxu1 %v6927_v8 }
 0x167   :  { %5889 = vmatpush3.bf16.msra.mxu1 %v7140_v27 }
 0x168   :  { %5902 = vmatprep.subr.bf16.mxu1 %v6927_v8 }
 0x1fa   :  { %v846_v15 = vpop.f32.mrf.mxu1  ;;  %v1274_v28 = vpop.f32.mrf.mxu0 }
 0x1fb   :  { %v847_v29 = vadd.f32 %v7266_v7, %v846_v15  ;;  %v1282_v59 = vadd.f32 %v1281_v61, %v1274_v28 }
 0x1fc   :  { %v5796_v30 = vpop.f32.mrf.mxu1  ;;  %v5852_v31 = vpop.f32.mrf.mxu0 }
 0x1fd   :  { %v852_v32 = vadd.f32 %v847_v29, %v781_v55  ;;  %v5273_v5 = vmul.f32 -1.442695, %v1282_v59 }
 0x1fe   :  { %v849_v33 = vpop.f32.mrf.mxu1  ;;  %v1277_v34 = vpop.f32.mrf.mxu0 }
 0x1ff   :  { %v5266_v35 = vmul.f32 -1.442695, %v852_v32 }
 0x200   :  { %v5797_v36 = vpop.f32.mrf.mxu1  ;;  %v5853_v37 = vpop.f32.mrf.mxu0 }
 0x201   :  { %6583 = vpow2.f32 %v5266_v35 }
 0x202   :  { %v967_v39 = vpop.f32.mrf.mxu1  ;;  %v7274_v40 = vpop.f32.mrf.mxu0 }
 0x203   :  { %v968_v41 = vadd.f32 %v7272_v38, %v967_v39  ;;  %v1324_v39 = vld [vmem:[#allocation3 + $0x8] sm:$0xff] }
 0x204   :  { %v5812_v42 = vpop.f32.mrf.mxu1  ;;  %v5868_v43 = vpop.f32.mrf.mxu0 }
 0x205   :  { %v973_v45 = vadd.f32 %v968_v41, %v904_v60 }
 0x206   :  { %v970_v46 = vpop.f32.mrf.mxu1  ;;  %v1363_v47 = vpop.f32.mrf.mxu0 }
 0x207   :  { %v5267_v49 = vmul.f32 -1.442695, %v973_v45  ;;  %v1410_v47 = vld [vmem:[#allocation5 + $0x8] sm:$0xff] }
 0x208   :  { %v5813_v55 = vpop.f32.mrf.mxu1  ;;  %v5869_v56 = vpop.f32.mrf.mxu0 }
 0x209   :  { %6585 = vpow2.f32 %v5267_v49 }
 0x20a   :  { %v1088_v57 = vpop.f32.mrf.mxu1  ;;  %6587 = vpow2.f32 %v5273_v5 }
 0x20b   :  { %v1089_v2 = vadd.f32 %v7280_v63, %v1088_v57 }
 0x20c   :  { %v5828_v58 = vpop.f32.mrf.mxu1 }
 0x20d   :  { %v1094_v30 = vadd.f32 %v1089_v2, %v1025_v0 }
 0x20e   :  { %v1091_v62 = vpop.f32.mrf.mxu1  ;;  %v6584_v1 = vpop.eup %6583 }
 0x20f   :  { %v1219_v15 = vadd.f32 1.0, %v6584_v1 }
 0x210   :  { %v5829_v60 = vpop.f32.mrf.mxu1 }
 0x211   :  { %6589 = vrcp.f32 %v1219_v15  ;;  %v1367_v15 = vld [vmem:[#allocation4 + $0x8] sm:$0xff] }
 0x212   :  { %v1209_v6 = vpop.f32.mrf.mxu1  ;;  %6591 = vtanh.f32 %v1094_v30  ;;  %v1368_v30 = vadd.f32 %v1367_v15, %v7274_v40 }
 0x213   :  { %v1210_v29 = vadd.f32 %v7286_v4, %v1209_v6 }
 0x214   :  { %v5844_v31 = vpop.f32.mrf.mxu1 }
 0x215   :  { %v1215_v32 = vadd.f32 %v1210_v29, %v1146_v3 }
 0x216   :  { %v6586_v33 = vpop.eup %6585  ;;  %v1212_v28 = vpop.f32.mrf.mxu1 }
 0x217   :  { %v1225_v34 = vadd.f32 1.0, %v6586_v33  ;;  %v5268_v35 = vmul.f32 -1.442695, %v1215_v32  ;;  %v6588_v3 = vpop.eup %6587 }
 0x218   :  { %v5845_v36 = vpop.f32.mrf.mxu1  ;;  %v1415_v6 = vadd.f32 1.0, %v6588_v3 }
 0x219   :  { %6593 = vrcp.f32 %v1225_v34 }
 0x21a   :  { %6595 = vpow2.f32 %v5268_v35  ;;  %v1317_v37 = vpop.f32.mrf.mxu1 }
 0x21b   :  { %v1325_v41 = vadd.f32 %v1324_v39, %v1317_v37 }
 0x21c   :  { %v5860_v42 = vpop.f32.mrf.mxu1 }
 0x21d   :  { %v5274_v43 = vmul.f32 -1.442695, %v1325_v41 }
 0x21e   :  { %v1320_v45 = vpop.f32.mrf.mxu1  ;;  %v6590_v49 = vpop.eup %6589 }
 0x21f   :  { %6597 = vpow2.f32 %v5274_v43  ;;  %v6592_v57 = vpop.eup %6591 }
 0x220   :  { %v5861_v0 = vpop.f32.mrf.mxu1  ;;  %v1236_v1 = vmul.f32 %v6592_v57, %v6590_v49 }
 0x222   :  { %v1403_v46 = vpop.f32.mrf.mxu1 }
 0x223   :  { %v1411_v55 = vadd.f32 %v1410_v47, %v1403_v46 }
 0x224   :  { %v5876_v56 = vpop.f32.mrf.mxu1 }
 0x225   :  { %v5275_v60 = vmul.f32 -1.442695, %v1411_v55 }
 0x226   :  { %v6594_v58 = vpop.eup %6593  ;;  %v1406_v61 = vpop.f32.mrf.mxu1 }
 0x227   :  { %v6596_v59 = vpop.eup %6595  ;;  %v1235_v62 = vmul.f32 0.0, %v6594_v58 }
 0x228   :  { %v1232_v2 = vadd.f32 1.0, %v6596_v59  ;;  %v5877_v5 = vpop.f32.mrf.mxu1 }
 0x229   :  { %v7289_v29 = vadd.f32 %v1236_v1, %v1235_v62 }
 0x22a   :  { %6599 = vrcp.f32 %v1232_v2 }
 0x22b   :  { %6601 = vtanh.f32 %v7289_v29 }
 0x22c   :  { %v6598_v31 = vpop.eup %6597  ;;  %6603 = vpow2.f32 %v5275_v60 }
 0x22d   :  { %6605 = vrcp.f32 %v1415_v6  ;;  %v1421_v32 = vadd.f32 1.0, %v6598_v31 }
 0x22e   :  { %6607 = vtanh.f32 %v1368_v30 }
 0x22f   :  { %6609 = vrcp.f32 %v1421_v32 }
 0x237   :  { %v6600_v33 = vpop.eup %6599 }
 0x238   :  { %v6602_v28 = vpop.eup %6601 }
 0x239   :  { %v6604_v34 = vpop.eup %6603  ;;  %v1239_v35 = vmul.f32 %v6602_v28, %v6600_v33  ;;  %v1833_v28 = vld [vmem:[#allocation2 + $0x10] sm:$0xff] }
 0x23a   :  { %v6606_v36 = vpop.eup %6605  ;;  %v1428_v42 = vadd.f32 1.0, %v6604_v34 }
 0x23b   :  { %v6608_v37 = vpop.eup %6607  ;;  %v1437_v39 = vpack.c.bf16 %v1239_v35, %v1239_v35 }
 0x23c   :  { %v6610_v41 = vpop.eup %6609  ;;  %v1432_v43 = vmul.f32 %v6608_v37, %v6606_v36  ;;  %6611 = vrcp.f32 %v1428_v42 }
 0x23d   :  { %v1431_v40 = vmul.f32 %v6610_v41, %v7192_v44  ;;  %5883 = vmatmul.mubr.msk.bf16.vlgmr.msra.gmra.mxu0 %vm182_vm2, %v1437_v39 }
 0x23e   :  { %5895 = vmatpush3.bf16.msra.mxu0 %v7104_v20  ;;  %5898 = vmatprep.mubr.msk.bf16.mxu0 %vm6928_vm1, %v6927_v8 }
 0x23f   :  { %v7298_v45 = vadd.f32 %v1432_v43, %v1431_v40  ;;  %5896 = vmatprep.subr.bf16.mxu0 %v6927_v8 }
 0x241   :  { %6613 = vtanh.f32 %v7298_v45 }
 0x242   :  { %5897 = vmatpush3.bf16.msra.mxu0 %v7110_v21 }
 0x243   :  { %5910 = vmatprep.subr.bf16.mxu0 %v6927_v8 }
 0x245   :  { %5899 = vmatmul.mubr.msk.bf16.vlgmr.msra.gmra.mxu0 %vm182_vm2, %v1437_v39 }
 0x246   :  { %5911 = vmatpush3.bf16.msra.mxu0 %v7114_v22  ;;  %5914 = vmatprep.mubr.msk.bf16.mxu0 %vm6928_vm1, %v6927_v8 }
 0x247   :  { %5912 = vmatprep.subr.bf16.mxu0 %v6927_v8 }
 0x249   :  { %v6612_v20 = vpop.eup %6611 }
 0x24a   :  { %5913 = vmatpush3.bf16.msra.mxu0 %v7120_v23 }
 0x24b   :  { %5926 = vmatprep.subr.bf16.mxu0 %v6927_v8 }
 0x24d   :  { %5915 = vmatmul.mubr.msk.bf16.vlgmr.msra.gmra.mxu0 %vm182_vm2, %v1437_v39 }
 0x24e   :  { %v6614_v44 = vpop.eup %6613  ;;  %5927 = vmatpush3.bf16.msra.mxu0 %v7124_v24  ;;  %5930 = vmatprep.mubr.msk.bf16.mxu0 %vm6928_vm1, %v6927_v8 }
 0x24f   :  { %v1435_v21 = vmul.f32 %v6614_v44, %v6612_v20  ;;  %5928 = vmatprep.subr.bf16.mxu0 %v6927_v8 }
 0x251   :  { %v1436_v22 = vpack.c.bf16 %v1435_v21, %v1435_v21 }
 0x252   :  { %5929 = vmatpush3.bf16.msra.mxu0 %v7130_v25 }
 0x253   :  { %5891 = vmatmul.mubr.msk.bf16.vlgmr.msra.gmra.mxu1 %vm182_vm2, %v1436_v22  ;;  %5942 = vmatprep.subr.bf16.mxu0 %v6927_v8 }
 0x254   :  { %5903 = vmatpush3.bf16.msra.mxu1 %v7195_v48  ;;  %5906 = vmatprep.mubr.msk.bf16.mxu1 %vm6928_vm1, %v6927_v8 }
 0x255   :  { %5931 = vmatmul.mubr.msk.bf16.vlgmr.msra.gmra.mxu0 %vm182_vm2, %v1437_v39  ;;  %5904 = vmatprep.subr.bf16.mxu1 %v6927_v8 }
 0x256   :  { %5943 = vmatpush3.bf16.msra.mxu0 %v7025_v9  ;;  %5946 = vmatprep.mubr.msk.bf16.mxu0 %vm6928_vm1, %v6927_v8 }
 0x257   :  { %5944 = vmatprep.subr.bf16.mxu0 %v6927_v8 }
 0x258   :  { %5905 = vmatpush3.bf16.msra.mxu1 %v7201_v50 }
 0x259   :  { %5918 = vmatprep.subr.bf16.mxu1 %v6927_v8 }
 0x25a   :  { %5945 = vmatpush3.bf16.msra.mxu0 %v7035_v11 }
 0x25b   :  { %5907 = vmatmul.mubr.msk.bf16.vlgmr.msra.gmra.mxu1 %vm182_vm2, %v1436_v22  ;;  %5958 = vmatprep.subr.bf16.mxu0 %v6927_v8 }
 0x25c   :  { %5919 = vmatpush3.bf16.msra.mxu1 %v7211_v51  ;;  %5922 = vmatprep.mubr.msk.bf16.mxu1 %vm6928_vm1, %v6927_v8 }
 0x25d   :  { %5947 = vmatmul.mubr.msk.bf16.vlgmr.msra.gmra.mxu0 %vm182_vm2, %v1436_v22  ;;  %5920 = vmatprep.subr.bf16.mxu1 %v6927_v8 }
 0x25e   :  { %5959 = vmatpush3.bf16.msra.mxu0 %v7063_v13  ;;  %5962 = vmatprep.mubr.msk.bf16.mxu0 %vm6928_vm1, %v6927_v8 }
 0x25f   :  { %5960 = vmatprep.subr.bf16.mxu0 %v6927_v8 }
 0x260   :  { %5921 = vmatpush3.bf16.msra.mxu1 %v7218_v52 }
 0x261   :  { %5934 = vmatprep.subr.bf16.mxu1 %v6927_v8 }
 0x262   :  { %5961 = vmatpush3.bf16.msra.mxu0 %v7074_v16 }
 0x263   :  { %5923 = vmatmul.mubr.msk.bf16.vlgmr.msra.gmra.mxu1 %vm182_vm2, %v1436_v22  ;;  %5974 = vmatprep.subr.bf16.mxu0 %v6927_v8 }
 0x264   :  { %5935 = vmatpush3.bf16.msra.mxu1 %v7228_v53  ;;  %5938 = vmatprep.mubr.msk.bf16.mxu1 %vm6928_vm1, %v6927_v8 }
 0x265   :  { %5963 = vmatmul.mubr.msk.bf16.vlgmr.msra.gmra.mxu0 %vm182_vm2, %v1436_v22  ;;  %5936 = vmatprep.subr.bf16.mxu1 %v6927_v8 }
 0x266   :  { %5975 = vmatpush3.bf16.msra.mxu0 %v7096_v18  ;;  %5978 = vmatprep.mubr.msk.bf16.mxu0 %vm6928_vm1, %v6927_v8 }
 0x267   :  { %5976 = vmatprep.subr.bf16.mxu0 %v6927_v8 }
 0x268   :  { %5937 = vmatpush3.bf16.msra.mxu1 %v7235_v54 }
 0x269   :  { %5950 = vmatprep.subr.bf16.mxu1 %v6927_v8 }
 0x26a   :  { %5977 = vmatpush3.bf16.msra.mxu0 %v7100_v19 }
 0x26b   :  { %5939 = vmatmul.mubr.msk.bf16.vlgmr.msra.gmra.mxu1 %vm182_vm2, %v1436_v22  ;;  %5990 = vmatprep.subr.bf16.mxu0 %v6927_v8 }
 0x26c   :  { %5951 = vmatpush3.bf16.msra.mxu1 %v7030_v10  ;;  %5954 = vmatprep.mubr.msk.bf16.mxu1 %vm6928_vm1, %v6927_v8 }
 0x26d   :  { %5952 = vmatprep.subr.bf16.mxu1 %v6927_v8 }
 0x270   :  { %5953 = vmatpush3.bf16.msra.mxu1 %v7041_v12 }
 0x271   :  { %5966 = vmatprep.subr.bf16.mxu1 %v6927_v8 }
 0x273   :  { %5955 = vmatmul.mubr.msk.bf16.vlgmr.msra.gmra.mxu1 %vm182_vm2, %v1436_v22 }
 0x274   :  { %5967 = vmatpush3.bf16.msra.mxu1 %v7068_v14  ;;  %5970 = vmatprep.mubr.msk.bf16.mxu1 %vm6928_vm1, %v6927_v8 }
 0x275   :  { %5968 = vmatprep.subr.bf16.mxu1 %v6927_v8 }
 0x278   :  { %5969 = vmatpush3.bf16.msra.mxu1 %v7081_v17 }
 0x279   :  { %5982 = vmatprep.subr.bf16.mxu1 %v6927_v8 }
 0x27b   :  { %5971 = vmatmul.mubr.msk.bf16.vlgmr.msra.gmra.mxu1 %vm182_vm2, %v1436_v22 }
 0x27c   :  { %5983 = vmatpush3.bf16.msra.mxu1 %v7134_v26  ;;  %5986 = vmatprep.mubr.msk.bf16.mxu1 %vm6928_vm1, %v6927_v8 }
 0x27d   :  { %5984 = vmatprep.subr.bf16.mxu1 %v6927_v8 }
 0x280   :  { %5985 = vmatpush3.bf16.msra.mxu1 %v7140_v27 }
 0x281   :  { %5998 = vmatprep.subr.bf16.mxu1 %v6927_v8 }
 0x2fd   :  { %v1475_v9 = vpop.f32.mrf.mxu0 }
 0x2ff   :  { %v5884_v10 = vpop.f32.mrf.mxu0 }
 0x301   :  { %v1478_v11 = vpop.f32.mrf.mxu0 }
 0x303   :  { %v5885_v12 = vpop.f32.mrf.mxu0 }
 0x305   :  { %v1559_v13 = vpop.f32.mrf.mxu0 }
 0x307   :  { %v5900_v14 = vpop.f32.mrf.mxu0 }
 0x309   :  { %v1562_v16 = vpop.f32.mrf.mxu0 }
 0x30b   :  { %v5901_v17 = vpop.f32.mrf.mxu0 }
 0x30d   :  { %v1640_v18 = vpop.f32.mrf.mxu0 }
 0x30f   :  { %v5916_v19 = vpop.f32.mrf.mxu0 }
 0x310   :  { %v1876_v19 = vld [vmem:[#allocation3 + $0x10] sm:$0xff] }
 0x311   :  { %v1643_v23 = vpop.f32.mrf.mxu0 }
 0x313   :  { %v1518_v24 = vpop.f32.mrf.mxu1  ;;  %v5917_v25 = vpop.f32.mrf.mxu0 }
 0x314   :  { %v1519_v26 = vadd.f32 %v7266_v7, %v1518_v24 }
 0x315   :  { %v5892_v0 = vpop.f32.mrf.mxu1  ;;  %v1721_v46 = vpop.f32.mrf.mxu0 }
 0x316   :  { %v1524_v27 = vadd.f32 %v1519_v26, %v1475_v9 }
 0x317   :  { %v1521_v3 = vpop.f32.mrf.mxu1  ;;  %v5932_v47 = vpop.f32.mrf.mxu0 }
 0x318   :  { %v5284_v49 = vmul.f32 -1.442695, %v1524_v27 }
 0x319   :  { %v5893_v55 = vpop.f32.mrf.mxu1  ;;  %v1724_v56 = vpop.f32.mrf.mxu0 }
 0x31a   :  { %6615 = vpow2.f32 %v5284_v49 }
 0x31b   :  { %v1599_v57 = vpop.f32.mrf.mxu1  ;;  %v5933_v58 = vpop.f32.mrf.mxu0 }
 0x31c   :  { %v1600_v61 = vadd.f32 %v7272_v38, %v1599_v57 }
 0x31d   :  { %v5908_v59 = vpop.f32.mrf.mxu1  ;;  %v1826_v62 = vpop.f32.mrf.mxu0 }
 0x31e   :  { %v1605_v1 = vadd.f32 %v1600_v61, %v1559_v13  ;;  %v1834_v34 = vadd.f32 %v1833_v28, %v1826_v62 }
 0x31f   :  { %v1602_v2 = vpop.f32.mrf.mxu1  ;;  %v5948_v60 = vpop.f32.mrf.mxu0 }
 0x320   :  { %v5285_v5 = vmul.f32 -1.442695, %v1605_v1  ;;  %v5291_v43 = vmul.f32 -1.442695, %v1834_v34 }
 0x321   :  { %v5909_v6 = vpop.f32.mrf.mxu1  ;;  %v1829_v15 = vpop.f32.mrf.mxu0 }
 0x322   :  { %6617 = vpow2.f32 %v5285_v5  ;;  %v1919_v5 = vld [vmem:[#allocation4 + $0x10] sm:$0xff] }
 0x323   :  { %v1680_v30 = vpop.f32.mrf.mxu1  ;;  %v5949_v31 = vpop.f32.mrf.mxu0  ;;  %6619 = vpow2.f32 %v5291_v43 }
 0x324   :  { %v1681_v39 = vadd.f32 %v7280_v63, %v1680_v30 }
 0x325   :  { %v5924_v32 = vpop.f32.mrf.mxu1  ;;  %v1912_v33 = vpop.f32.mrf.mxu0 }
 0x326   :  { %v1686_v22 = vadd.f32 %v1681_v39, %v1640_v18  ;;  %v1920_v15 = vadd.f32 %v1919_v5, %v1912_v33 }
 0x327   :  { %v1683_v35 = vpop.f32.mrf.mxu1  ;;  %v5964_v36 = vpop.f32.mrf.mxu0 }
 0x328   :  { %v6616_v37 = vpop.eup %6615 }
 0x329   :  { %v5925_v41 = vpop.f32.mrf.mxu1  ;;  %v1915_v42 = vpop.f32.mrf.mxu0  ;;  %v1771_v44 = vadd.f32 1.0, %v6616_v37 }
 0x32b   :  { %v1761_v40 = vpop.f32.mrf.mxu1  ;;  %v5965_v20 = vpop.f32.mrf.mxu0  ;;  %6621 = vrcp.f32 %v1771_v44  ;;  %v7411_v44 = vld [vmem:[#allocation8 + $0x20] sm:$0xff]  }
 0x32c   :  { %v1762_v21 = vadd.f32 %v7286_v4, %v1761_v40  ;;  %6623 = vtanh.f32 %v1686_v22  ;;  %v7393_v40 = vld [vmem:[#allocation8 + $0x18] sm:$0xff]   ;;  %v7400_v20 = vld [vmem:[#allocation8 + $0x10] sm:$0xff]  }
 0x32d   :  { %v5940_v9 = vpop.f32.mrf.mxu1 }
 0x32e   :  { %v1767_v10 = vadd.f32 %v1762_v21, %v1721_v46  ;;  %v1962_v46 = vld [vmem:[#allocation5 + $0x10] sm:$0xff] }
 0x32f   :  { %v6618_v11 = vpop.eup %6617  ;;  %v1764_v12 = vpop.f32.mrf.mxu1 }
 0x330   :  { %v1777_v13 = vadd.f32 1.0, %v6618_v11  ;;  %v5286_v14 = vmul.f32 -1.442695, %v1767_v10  ;;  %v6620_v27 = vpop.eup %6619  ;;  %v7416_v10 = vld [vmem:[#allocation8 + $0x38] sm:$0xff]   ;;  %v7422_v12 = vld [vmem:[#allocation8 + $0x30] sm:$0xff]  }
 0x331   :  { %v5941_v16 = vpop.f32.mrf.mxu1  ;;  %v1967_v2 = vadd.f32 1.0, %v6620_v27 }
 0x332   :  { %6625 = vrcp.f32 %v1777_v13  ;;  %v7435_v13 = vld [vmem:[%s8120_s2 + $0x8] sm:$0xff]   ;;  %v7513_v16 = vld [vmem:[%s8120_s2 + $0x38] sm:$0xff]  }
 0x333   :  { %v1869_v17 = vpop.f32.mrf.mxu1  ;;  %6627 = vpow2.f32 %v5286_v14  ;;  %v7495_v14 = vld [vmem:[%s8120_s2 + $0x18] sm:$0xff]  }
 0x334   :  { %v1877_v23 = vadd.f32 %v1876_v19, %v1869_v17  ;;  %v7522_v17 = vld [vmem:[%s8120_s2 + $0x30] sm:$0xff]   ;;  %v7527_v19 = vld [vmem:[#allocation6 + $0x8] sm:$0xff]  }
 0x335   :  { %v5956_v24 = vpop.f32.mrf.mxu1 }
 0x336   :  { %v5292_v25 = vmul.f32 -1.442695, %v1877_v23  ;;  %v7533_v23 = vld [vmem:[#allocation6] sm:$0xff]  }
 0x337   :  { %v1872_v26 = vpop.f32.mrf.mxu1 }
 0x338   :  { %6629 = vpow2.f32 %v5292_v25  ;;  %v6622_v47 = vpop.eup %6621 }
 0x339   :  { %v5957_v18 = vpop.f32.mrf.mxu1  ;;  %v6624_v55 = vpop.eup %6623 }
 0x33a   :  { %v1788_v59 = vmul.f32 %v6624_v55, %v6622_v47 }
 0x33b   :  { %v1955_v0 = vpop.f32.mrf.mxu1 }
 0x33c   :  { %v1963_v3 = vadd.f32 %v1962_v46, %v1955_v0 }
 0x33d   :  { %v5972_v49 = vpop.f32.mrf.mxu1 }
 0x33e   :  { %v5293_v57 = vmul.f32 -1.442695, %v1963_v3 }
 0x33f   :  { %v6626_v56 = vpop.eup %6625  ;;  %v1958_v58 = vpop.f32.mrf.mxu1 }
 0x340   :  { %v1787_v61 = vmul.f32 %v6626_v56, %v7289_v29  ;;  %v6628_v62 = vpop.eup %6627  ;;  %6631 = vpow2.f32 %v5293_v57 }
 0x341   :  { %v5973_v1 = vpop.f32.mrf.mxu1  ;;  %v1784_v6 = vadd.f32 1.0, %v6628_v62 }
 0x342   :  { %v7386_v60 = vadd.f32 %v1788_v59, %v1787_v61 }
 0x344   :  { %6633 = vtanh.f32 %v7386_v60 }
 0x345   :  { %v6630_v30 = vpop.eup %6629  ;;  %6635 = vrcp.f32 %v1784_v6 }
 0x346   :  { %6637 = vrcp.f32 %v1967_v2  ;;  %v1973_v31 = vadd.f32 1.0, %v6630_v30 }
 0x347   :  { %6639 = vtanh.f32 %v1920_v15 }
 0x348   :  { %6641 = vrcp.f32 %v1973_v31 }
 0x34d   :  { %v6632_v32 = vpop.eup %6631 }
 0x34e   :  { %v1980_v39 = vadd.f32 1.0, %v6632_v32 }
 0x350   :  { %6643 = vrcp.f32 %v1980_v39 }
 0x351   :  { %v6634_v29 = vpop.eup %6633 }
 0x352   :  { %v6636_v28 = vpop.eup %6635 }
 0x353   :  { %v6638_v34 = vpop.eup %6637  ;;  %v1791_v35 = vmul.f32 %v6636_v28, %v6634_v29 }
 0x354   :  { %v6640_v36 = vpop.eup %6639 }
 0x355   :  { %v6642_v37 = vpop.eup %6641  ;;  %v1989_v41 = vpack.c.bf16 %v1791_v35, %v1791_v35  ;;  %v1984_v42 = vmul.f32 %v6640_v36, %v6638_v34 }
 0x356   :  { %v1983_v33 = vmul.f32 %v6642_v37, %v7298_v45  ;;  %v7405_v45 = vld [vmem:[#allocation8 + $0x28] sm:$0xff]  }
 0x357   :  { %5979 = vmatmul.mubr.msk.bf16.vlgmr.msra.gmra.mxu0 %vm182_vm2, %v1989_v41 }
 0x358   :  { %v7391_v43 = vadd.f32 %v1984_v42, %v1983_v33  ;;  %5991 = vmatpush3.bf16.msra.mxu0 %v7393_v40  ;;  %5994 = vmatprep.mubr.msk.bf16.mxu0 %vm6928_vm1, %v6927_v8 }
 0x359   :  { %5992 = vmatprep.subr.bf16.mxu0 %v6927_v8 }
 0x35a   :  { %6645 = vtanh.f32 %v7391_v43 }
 0x35c   :  { %5993 = vmatpush3.bf16.msra.mxu0 %v7400_v20 }
 0x35d   :  { %6006 = vmatprep.subr.bf16.mxu0 %v6927_v8  ;;  %v6644_v21 = vpop.eup %6643 }
 0x35f   :  { %5995 = vmatmul.mubr.msk.bf16.vlgmr.msra.gmra.mxu0 %vm182_vm2, %v1989_v41 }
 0x360   :  { %6007 = vmatpush3.bf16.msra.mxu0 %v7405_v45  ;;  %6010 = vmatprep.mubr.msk.bf16.mxu0 %vm6928_vm1, %v6927_v8 }
 0x361   :  { %6008 = vmatprep.subr.bf16.mxu0 %v6927_v8 }
 0x364   :  { %6009 = vmatpush3.bf16.msra.mxu0 %v7411_v44 }
 0x365   :  { %6022 = vmatprep.subr.bf16.mxu0 %v6927_v8 }
 0x367   :  { %v6646_v22 = vpop.eup %6645  ;;  %6011 = vmatmul.mubr.msk.bf16.vlgmr.msra.gmra.mxu0 %vm182_vm2, %v1989_v41 }
 0x368   :  { %v1987_v9 = vmul.f32 %v6646_v22, %v6644_v21  ;;  %6023 = vmatpush3.bf16.msra.mxu0 %v7416_v10  ;;  %6026 = vmatprep.mubr.msk.bf16.mxu0 %vm6928_vm1, %v6927_v8  ;;  %v2385_v21 = vld [vmem:[#allocation2 + $0x18] sm:$0xff] }
 0x369   :  { %6024 = vmatprep.subr.bf16.mxu0 %v6927_v8 }
 0x36a   :  { %v1988_v11 = vpack.c.bf16 %v1987_v9, %v1987_v9 }
 0x36c   :  { %6025 = vmatpush3.bf16.msra.mxu0 %v7422_v12  ;;  %5987 = vmatmul.mubr.msk.bf16.vlgmr.msra.gmra.mxu1 %vm182_vm2, %v1988_v11 }
 0x36d   :  { %5999 = vmatpush3.bf16.msra.mxu1 %v7195_v48  ;;  %6038 = vmatprep.subr.bf16.mxu0 %v6927_v8  ;;  %v7446_v48 = vld [vmem:[%s8120_s2] sm:$0xff]  }
 0x36e   :  { %6000 = vmatprep.subr.bf16.mxu1 %v6927_v8  ;;  %6002 = vmatprep.mubr.msk.bf16.mxu1 %vm6928_vm1, %v6927_v8 }
 0x36f   :  { %6027 = vmatmul.mubr.msk.bf16.vlgmr.msra.gmra.mxu0 %vm182_vm2, %v1989_v41 }
 0x370   :  { %6039 = vmatpush3.bf16.msra.mxu0 %v7435_v13  ;;  %6042 = vmatprep.mubr.msk.bf16.mxu0 %vm6928_vm1, %v6927_v8 }
 0x371   :  { %6001 = vmatpush3.bf16.msra.mxu1 %v7201_v50  ;;  %6040 = vmatprep.subr.bf16.mxu0 %v6927_v8  ;;  %v7459_v50 = vld [vmem:[%s8120_s2 + $0x28] sm:$0xff]  }
 0x372   :  { %6014 = vmatprep.subr.bf16.mxu1 %v6927_v8 }
 0x374   :  { %6041 = vmatpush3.bf16.msra.mxu0 %v7446_v48  ;;  %6003 = vmatmul.mubr.msk.bf16.vlgmr.msra.gmra.mxu1 %vm182_vm2, %v1988_v11 }
 0x375   :  { %6015 = vmatpush3.bf16.msra.mxu1 %v7211_v51  ;;  %6054 = vmatprep.subr.bf16.mxu0 %v6927_v8  ;;  %v7470_v51 = vld [vmem:[%s8120_s2 + $0x20] sm:$0xff]  }
 0x376   :  { %6016 = vmatprep.subr.bf16.mxu1 %v6927_v8  ;;  %6018 = vmatprep.mubr.msk.bf16.mxu1 %vm6928_vm1, %v6927_v8 }
 0x377   :  { %6043 = vmatmul.mubr.msk.bf16.vlgmr.msra.gmra.mxu0 %vm182_vm2, %v1988_v11 }
 0x378   :  { %6055 = vmatpush3.bf16.msra.mxu0 %v7459_v50  ;;  %6058 = vmatprep.mubr.msk.bf16.mxu0 %vm6928_vm1, %v6927_v8 }
 0x379   :  { %6017 = vmatpush3.bf16.msra.mxu1 %v7218_v52  ;;  %6056 = vmatprep.subr.bf16.mxu0 %v6927_v8  ;;  %v7480_v52 = vld [vmem:[#allocation8 + $0x8] sm:$0xff]  }
 0x37a   :  { %6030 = vmatprep.subr.bf16.mxu1 %v6927_v8 }
 0x37c   :  { %6057 = vmatpush3.bf16.msra.mxu0 %v7470_v51  ;;  %6019 = vmatmul.mubr.msk.bf16.vlgmr.msra.gmra.mxu1 %vm182_vm2, %v1988_v11 }
 0x37d   :  { %6031 = vmatpush3.bf16.msra.mxu1 %v7228_v53  ;;  %6034 = vmatprep.mubr.msk.bf16.mxu1 %vm6928_vm1, %v6927_v8  ;;  %v7489_v53 = vld [vmem:[#allocation8] sm:$0xff]  }
 0x37e   :  { %6032 = vmatprep.subr.bf16.mxu1 %v6927_v8  ;;  %6070 = vmatprep.subr.bf16.mxu0 %v6927_v8 }
 0x37f   :  { %6059 = vmatmul.mubr.msk.bf16.vlgmr.msra.gmra.mxu0 %vm182_vm2, %v1988_v11 }
 0x380   :  { %6071 = vmatpush3.bf16.msra.mxu0 %v7480_v52  ;;  %6074 = vmatprep.mubr.msk.bf16.mxu0 %vm6928_vm1, %v6927_v8 }
 0x381   :  { %6033 = vmatpush3.bf16.msra.mxu1 %v7235_v54  ;;  %6072 = vmatprep.subr.bf16.mxu0 %v6927_v8  ;;  %v7505_v54 = vld [vmem:[%s8120_s2 + $0x10] sm:$0xff]  }
 0x382   :  { %6046 = vmatprep.subr.bf16.mxu1 %v6927_v8 }
 0x384   :  { %6035 = vmatmul.mubr.msk.bf16.vlgmr.msra.gmra.mxu1 %vm182_vm2, %v1988_v11  ;;  %6073 = vmatpush3.bf16.msra.mxu0 %v7489_v53 }
 0x385   :  { %6047 = vmatpush3.bf16.msra.mxu1 %v7495_v14  ;;  %6050 = vmatprep.mubr.msk.bf16.mxu1 %vm6928_vm1, %v6927_v8 }
 0x386   :  { %6048 = vmatprep.subr.bf16.mxu1 %v6927_v8  ;;  %6086 = vmatprep.subr.bf16.mxu0 %v6927_v8 }
 0x389   :  { %6049 = vmatpush3.bf16.msra.mxu1 %v7505_v54 }
 0x38a   :  { %6062 = vmatprep.subr.bf16.mxu1 %v6927_v8 }
 0x38c   :  { %6051 = vmatmul.mubr.msk.bf16.vlgmr.msra.gmra.mxu1 %vm182_vm2, %v1988_v11 }
 0x38d   :  { %6063 = vmatpush3.bf16.msra.mxu1 %v7513_v16  ;;  %6066 = vmatprep.mubr.msk.bf16.mxu1 %vm6928_vm1, %v6927_v8 }
 0x38e   :  { %6064 = vmatprep.subr.bf16.mxu1 %v6927_v8 }
 0x391   :  { %6065 = vmatpush3.bf16.msra.mxu1 %v7522_v17 }
 0x392   :  { %6078 = vmatprep.subr.bf16.mxu1 %v6927_v8 }
 0x394   :  { %6067 = vmatmul.mubr.msk.bf16.vlgmr.msra.gmra.mxu1 %vm182_vm2, %v1988_v11 }
 0x395   :  { %6079 = vmatpush3.bf16.msra.mxu1 %v7527_v19  ;;  %6082 = vmatprep.mubr.msk.bf16.mxu1 %vm6928_vm1, %v6927_v8 }
 0x396   :  { %6080 = vmatprep.subr.bf16.mxu1 %v6927_v8 }
 0x399   :  { %6081 = vmatpush3.bf16.msra.mxu1 %v7533_v23 }
 0x39a   :  { %6094 = vmatprep.subr.bf16.mxu1 %v6927_v8 }
 0x417   :  { %v2027_v24 = vpop.f32.mrf.mxu0 }
 0x419   :  { %v5980_v25 = vpop.f32.mrf.mxu0 }
 0x41b   :  { %v2030_v26 = vpop.f32.mrf.mxu0 }
 0x41d   :  { %v5981_v18 = vpop.f32.mrf.mxu0 }
 0x41f   :  { %v2111_v0 = vpop.f32.mrf.mxu0 }
 0x421   :  { %v5996_v46 = vpop.f32.mrf.mxu0 }
 0x423   :  { %v2114_v27 = vpop.f32.mrf.mxu0 }
 0x425   :  { %v5997_v3 = vpop.f32.mrf.mxu0 }
 0x427   :  { %v2192_v47 = vpop.f32.mrf.mxu0 }
 0x429   :  { %v6012_v49 = vpop.f32.mrf.mxu0 }
 0x42b   :  { %v2195_v55 = vpop.f32.mrf.mxu0 }
 0x42c   :  { %v2070_v56 = vpop.f32.mrf.mxu1 }
 0x42d   :  { %v2071_v57 = vadd.f32 %v7266_v7, %v2070_v56  ;;  %v6013_v58 = vpop.f32.mrf.mxu0 }
 0x42e   :  { %v5988_v61 = vpop.f32.mrf.mxu1 }
 0x42f   :  { %v2076_v59 = vadd.f32 %v2071_v57, %v2027_v24  ;;  %v2273_v62 = vpop.f32.mrf.mxu0 }
 0x430   :  { %v2073_v1 = vpop.f32.mrf.mxu1 }
 0x431   :  { %v5302_v2 = vmul.f32 -1.442695, %v2076_v59  ;;  %v6028_v5 = vpop.f32.mrf.mxu0 }
 0x432   :  { %v5989_v6 = vpop.f32.mrf.mxu1  ;;  %v2428_v5 = vld [vmem:[#allocation3 + $0x18] sm:$0xff] }
 0x433   :  { %v2276_v15 = vpop.f32.mrf.mxu0  ;;  %6647 = vpow2.f32 %v5302_v2 }
 0x434   :  { %v2151_v30 = vpop.f32.mrf.mxu1 }
 0x435   :  { %v2152_v31 = vadd.f32 %v7272_v38, %v2151_v30  ;;  %v6029_v32 = vpop.f32.mrf.mxu0 }
 0x436   :  { %v6004_v29 = vpop.f32.mrf.mxu1 }
 0x437   :  { %v2157_v28 = vadd.f32 %v2152_v31, %v2111_v0  ;;  %v2378_v34 = vpop.f32.mrf.mxu0 }
 0x438   :  { %v2154_v35 = vpop.f32.mrf.mxu1  ;;  %v2386_v9 = vadd.f32 %v2385_v21, %v2378_v34 }
 0x439   :  { %v5303_v36 = vmul.f32 -1.442695, %v2157_v28  ;;  %v6044_v7 = vpop.f32.mrf.mxu0 }
 0x43a   :  { %v6005_v37 = vpop.f32.mrf.mxu1  ;;  %v5309_v0 = vmul.f32 -1.442695, %v2386_v9 }
 0x43b   :  { %6649 = vpow2.f32 %v5303_v36  ;;  %v2381_v39 = vpop.f32.mrf.mxu0 }
 0x43c   :  { %v2232_v41 = vpop.f32.mrf.mxu1  ;;  %6651 = vpow2.f32 %v5309_v0 }
 0x43d   :  { %v6045_v42 = vpop.f32.mrf.mxu0  ;;  %v2233_v38 = vadd.f32 %v7280_v63, %v2232_v41 }
 0x43e   :  { %v6020_v33 = vpop.f32.mrf.mxu1 }
 0x43f   :  { %v2464_v22 = vpop.f32.mrf.mxu0  ;;  %v2238_v55 = vadd.f32 %v2233_v38, %v2192_v47 }
 0x440   :  { %v2235_v11 = vpop.f32.mrf.mxu1  ;;  %v6648_v25 = vpop.eup %6647 }
 0x441   :  { %v6060_v24 = vpop.f32.mrf.mxu0  ;;  %v2323_v27 = vadd.f32 1.0, %v6648_v25  ;;  %v2471_v11 = vld [vmem:[#allocation4 + $0x18] sm:$0xff] }
 0x442   :  { %v6021_v26 = vpop.f32.mrf.mxu1  ;;  %v2472_v25 = vadd.f32 %v2471_v11, %v2464_v22 }
 0x443   :  { %v2467_v18 = vpop.f32.mrf.mxu0  ;;  %6653 = vrcp.f32 %v2323_v27 }
 0x444   :  { %v2313_v46 = vpop.f32.mrf.mxu1  ;;  %6655 = vtanh.f32 %v2238_v55 }
 0x445   :  { %v2314_v3 = vadd.f32 %v7286_v4, %v2313_v46  ;;  %v6061_v49 = vpop.f32.mrf.mxu0 }
 0x446   :  { %v6036_v56 = vpop.f32.mrf.mxu1 }
 0x447   :  { %v2319_v57 = vadd.f32 %v2314_v3, %v2273_v62  ;;  %v2514_v62 = vld [vmem:[#allocation5 + $0x18] sm:$0xff] }
 0x448   :  { %v6650_v58 = vpop.eup %6649  ;;  %v2316_v61 = vpop.f32.mrf.mxu1 }
 0x449   :  { %v2329_v59 = vadd.f32 1.0, %v6650_v58  ;;  %v5304_v1 = vmul.f32 -1.442695, %v2319_v57  ;;  %v6652_v32 = vpop.eup %6651 }
 0x44a   :  { %v6037_v2 = vpop.f32.mrf.mxu1  ;;  %v2519_v21 = vadd.f32 1.0, %v6652_v32 }
 0x44b   :  { %6657 = vrcp.f32 %v2329_v59  ;;  %v7570_v2 = vld [vmem:[#allocation6 + $0x18] sm:$0xff]  }
 0x44c   :  { %v2421_v63 = vpop.f32.mrf.mxu1  ;;  %6659 = vpow2.f32 %v5304_v1 }
 0x44d   :  { %v2429_v6 = vadd.f32 %v2428_v5, %v2421_v63  ;;  %v7581_v63 = vld [vmem:[#allocation6 + $0x10] sm:$0xff]   ;;  %v7588_v5 = vld [vmem:[#allocation6 + $0x28] sm:$0xff]  }
 0x44e   :  { %v6052_v15 = vpop.f32.mrf.mxu1 }
 0x44f   :  { %v5310_v30 = vmul.f32 -1.442695, %v2429_v6  ;;  %v7599_v6 = vld [vmem:[#allocation6 + $0x20] sm:$0xff]   ;;  %v7606_v15 = vld [vmem:[#allocation6 + $0x38] sm:$0xff]  }
 0x450   :  { %v2424_v4 = vpop.f32.mrf.mxu1  ;;  %v6654_v28 = vpop.eup %6653 }
 0x451   :  { %6661 = vpow2.f32 %v5310_v30  ;;  %v6656_v35 = vpop.eup %6655  ;;  %v7617_v30 = vld [vmem:[#allocation6 + $0x30] sm:$0xff]  }
 0x452   :  { %v6053_v47 = vpop.f32.mrf.mxu1  ;;  %v2340_v41 = vmul.f32 %v6656_v35, %v6654_v28 }
 0x454   :  { %v2507_v31 = vpop.f32.mrf.mxu1 }
 0x455   :  { %v2515_v29 = vadd.f32 %v2514_v62, %v2507_v31 }
 0x456   :  { %v6068_v34 = vpop.f32.mrf.mxu1 }
 0x457   :  { %v5311_v7 = vmul.f32 -1.442695, %v2515_v29 }
 0x458   :  { %v6658_v36 = vpop.eup %6657  ;;  %v2510_v37 = vpop.f32.mrf.mxu1 }
 0x459   :  { %v2339_v39 = vmul.f32 %v6658_v36, %v7386_v60  ;;  %v6660_v42 = vpop.eup %6659  ;;  %6663 = vpow2.f32 %v5311_v7 }
 0x45a   :  { %v6069_v33 = vpop.f32.mrf.mxu1  ;;  %v2336_v24 = vadd.f32 1.0, %v6660_v42 }
 0x45b   :  { %v7542_v9 = vadd.f32 %v2340_v41, %v2339_v39  ;;  %v7648_v39 = vld [vmem:[%s8124_s6] ss:$0 sm:$0xff] }
 0x45d   :  { %6665 = vtanh.f32 %v7542_v9 }
 0x45e   :  { %v6662_v38 = vpop.eup %6661  ;;  %6667 = vrcp.f32 %v2336_v24 }
 0x45f   :  { %6669 = vrcp.f32 %v2519_v21  ;;  %v2525_v26 = vadd.f32 1.0, %v6662_v38 }
 0x460   :  { %6671 = vtanh.f32 %v2472_v25 }
 0x461   :  { %6673 = vrcp.f32 %v2525_v26 }
 0x466   :  { %v6664_v18 = vpop.eup %6663 }
 0x467   :  { %v2532_v55 = vadd.f32 1.0, %v6664_v18 }
 0x469   :  { %6675 = vrcp.f32 %v2532_v55 }
 0x46a   :  { %v6666_v60 = vpop.eup %6665 }
 0x46b   :  { %v6668_v0 = vpop.eup %6667 }
 0x46c   :  { %v6670_v46 = vpop.eup %6669  ;;  %v2343_v27 = vmul.f32 %v6668_v0, %v6666_v60  ;;  %v7654_v0 = vld [vmem:[%s8124_s6 + $0x1] ss:$0 sm:$0xff] }
 0x46d   :  { %v6672_v3 = vpop.eup %6671 }
 0x46e   :  { %v6674_v49 = vpop.eup %6673  ;;  %v2541_v56 = vpack.c.bf16 %v2343_v27, %v2343_v27  ;;  %v2536_v57 = vmul.f32 %v6672_v3, %v6670_v46 }
 0x46f   :  { %v2535_v22 = vmul.f32 %v6674_v49, %v7391_v43 }
 0x470   :  { %6075 = vmatmul.mubr.msk.bf16.vlgmr.msra.gmra.mxu0 %vm182_vm2, %v2541_v56 }
 0x471   :  { %v7547_v58 = vadd.f32 %v2536_v57, %v2535_v22  ;;  %6087 = vmatpush3.bf16.msra.mxu0 %v7393_v40  ;;  %6090 = vmatprep.mubr.msk.bf16.mxu0 %vm6928_vm1, %v6927_v8 }
 0x472   :  { %6088 = vmatprep.subr.bf16.mxu0 %v6927_v8 }
 0x473   :  { %6677 = vtanh.f32 %v7547_v58 }
 0x475   :  { %6089 = vmatpush3.bf16.msra.mxu0 %v7400_v20 }
 0x476   :  { %6102 = vmatprep.subr.bf16.mxu0 %v6927_v8  ;;  %v6676_v43 = vpop.eup %6675 }
 0x478   :  { %6091 = vmatmul.mubr.msk.bf16.vlgmr.msra.gmra.mxu0 %vm182_vm2, %v2541_v56 }
 0x479   :  { %6103 = vmatpush3.bf16.msra.mxu0 %v7405_v45  ;;  %6106 = vmatprep.mubr.msk.bf16.mxu0 %vm6928_vm1, %v6927_v8 }
 0x47a   :  { %6104 = vmatprep.subr.bf16.mxu0 %v6927_v8 }
 0x47d   :  { %6105 = vmatpush3.bf16.msra.mxu0 %v7411_v44 }
 0x47e   :  { %6118 = vmatprep.subr.bf16.mxu0 %v6927_v8 }
 0x480   :  { %v6678_v61 = vpop.eup %6677  ;;  %6107 = vmatmul.mubr.msk.bf16.vlgmr.msra.gmra.mxu0 %vm182_vm2, %v2541_v56 }
 0x481   :  { %v2539_v59 = vmul.f32 %v6678_v61, %v6676_v43  ;;  %6119 = vmatpush3.bf16.msra.mxu0 %v7416_v10  ;;  %6122 = vmatprep.mubr.msk.bf16.mxu0 %vm6928_vm1, %v6927_v8 }
 0x482   :  { %6120 = vmatprep.subr.bf16.mxu0 %v6927_v8 }
 0x483   :  { %v2540_v1 = vpack.c.bf16 %v2539_v59, %v2539_v59 }
 0x485   :  { %6121 = vmatpush3.bf16.msra.mxu0 %v7422_v12  ;;  %6083 = vmatmul.mubr.msk.bf16.vlgmr.msra.gmra.mxu1 %vm182_vm2, %v2540_v1 }
 0x486   :  { %6095 = vmatpush3.bf16.msra.mxu1 %v7570_v2  ;;  %6134 = vmatprep.subr.bf16.mxu0 %v6927_v8 }
 0x487   :  { %6096 = vmatprep.subr.bf16.mxu1 %v6927_v8  ;;  %6098 = vmatprep.mubr.msk.bf16.mxu1 %vm6928_vm1, %v6927_v8 }
 0x488   :  { %6123 = vmatmul.mubr.msk.bf16.vlgmr.msra.gmra.mxu0 %vm182_vm2, %v2541_v56 }
 0x489   :  { %6135 = vmatpush3.bf16.msra.mxu0 %v7435_v13  ;;  %6138 = vmatprep.mubr.msk.bf16.mxu0 %vm6928_vm1, %v6927_v8 }
 0x48a   :  { %6097 = vmatpush3.bf16.msra.mxu1 %v7581_v63  ;;  %6136 = vmatprep.subr.bf16.mxu0 %v6927_v8 }
 0x48b   :  { %6110 = vmatprep.subr.bf16.mxu1 %v6927_v8 }
 0x48d   :  { %6137 = vmatpush3.bf16.msra.mxu0 %v7446_v48  ;;  %6099 = vmatmul.mubr.msk.bf16.vlgmr.msra.gmra.mxu1 %vm182_vm2, %v2540_v1 }
 0x48e   :  { %6111 = vmatpush3.bf16.msra.mxu1 %v7588_v5  ;;  %6150 = vmatprep.subr.bf16.mxu0 %v6927_v8 }
 0x48f   :  { %6112 = vmatprep.subr.bf16.mxu1 %v6927_v8  ;;  %6114 = vmatprep.mubr.msk.bf16.mxu1 %vm6928_vm1, %v6927_v8 }
 0x490   :  { %6139 = vmatmul.mubr.msk.bf16.vlgmr.msra.gmra.mxu0 %vm182_vm2, %v2540_v1 }
 0x491   :  { %6151 = vmatpush3.bf16.msra.mxu0 %v7459_v50  ;;  %6154 = vmatprep.mubr.msk.bf16.mxu0 %vm6928_vm1, %v6927_v8 }
 0x492   :  { %6113 = vmatpush3.bf16.msra.mxu1 %v7599_v6  ;;  %6152 = vmatprep.subr.bf16.mxu0 %v6927_v8 }
 0x493   :  { %6126 = vmatprep.subr.bf16.mxu1 %v6927_v8 }
 0x495   :  { %6153 = vmatpush3.bf16.msra.mxu0 %v7470_v51  ;;  %6115 = vmatmul.mubr.msk.bf16.vlgmr.msra.gmra.mxu1 %vm182_vm2, %v2540_v1 }
 0x496   :  { %6127 = vmatpush3.bf16.msra.mxu1 %v7606_v15  ;;  %6130 = vmatprep.mubr.msk.bf16.mxu1 %vm6928_vm1, %v6927_v8 }
 0x497   :  { %6128 = vmatprep.subr.bf16.mxu1 %v6927_v8  ;;  %6166 = vmatprep.subr.bf16.mxu0 %v6927_v8 }
 0x498   :  { %6155 = vmatmul.mubr.msk.bf16.vlgmr.msra.gmra.mxu0 %vm182_vm2, %v2540_v1 }
 0x499   :  { %6167 = vmatpush3.bf16.msra.mxu0 %v7480_v52  ;;  %6170 = vmatprep.mubr.msk.bf16.mxu0 %vm6928_vm1, %v6927_v8 }
 0x49a   :  { %6129 = vmatpush3.bf16.msra.mxu1 %v7617_v30  ;;  %6168 = vmatprep.subr.bf16.mxu0 %v6927_v8 }
 0x49b   :  { %6142 = vmatprep.subr.bf16.mxu1 %v6927_v8 }
 0x49d   :  { %6131 = vmatmul.mubr.msk.bf16.vlgmr.msra.gmra.mxu1 %vm182_vm2, %v2540_v1  ;;  %6169 = vmatpush3.bf16.msra.mxu0 %v7489_v53 }
 0x49e   :  { %6143 = vmatpush3.bf16.msra.mxu1 %v7495_v14  ;;  %6146 = vmatprep.mubr.msk.bf16.mxu1 %vm6928_vm1, %v6927_v8 }
 0x49f   :  { %6144 = vmatprep.subr.bf16.mxu1 %v6927_v8  ;;  %6182 = vmatprep.subr.bf16.mxu0 %v6927_v8 }
 0x4a2   :  { %6145 = vmatpush3.bf16.msra.mxu1 %v7505_v54 }
 0x4a3   :  { %6158 = vmatprep.subr.bf16.mxu1 %v6927_v8 }
 0x4a5   :  { %6147 = vmatmul.mubr.msk.bf16.vlgmr.msra.gmra.mxu1 %vm182_vm2, %v2540_v1 }
 0x4a6   :  { %6159 = vmatpush3.bf16.msra.mxu1 %v7513_v16  ;;  %6162 = vmatprep.mubr.msk.bf16.mxu1 %vm6928_vm1, %v6927_v8 }
 0x4a7   :  { %6160 = vmatprep.subr.bf16.mxu1 %v6927_v8 }
 0x4aa   :  { %6161 = vmatpush3.bf16.msra.mxu1 %v7522_v17 }
 0x4ab   :  { %6174 = vmatprep.subr.bf16.mxu1 %v6927_v8 }
 0x4ad   :  { %6163 = vmatmul.mubr.msk.bf16.vlgmr.msra.gmra.mxu1 %vm182_vm2, %v2540_v1 }
 0x4ae   :  { %6175 = vmatpush3.bf16.msra.mxu1 %v7527_v19  ;;  %6178 = vmatprep.mubr.msk.bf16.mxu1 %vm6928_vm1, %v6927_v8 }
 0x4af   :  { %6176 = vmatprep.subr.bf16.mxu1 %v6927_v8 }
 0x4b2   :  { %6177 = vmatpush3.bf16.msra.mxu1 %v7533_v23 }
 0x4b3   :  { %6190 = vmatprep.subr.bf16.mxu1 %v6927_v8 }
 0x530   :  { %v2579_v4 = vpop.f32.mrf.mxu0 }
 0x532   :  { %v6076_v47 = vpop.f32.mrf.mxu0 }
 0x533   :  { %v2937_v47 = vld [vmem:[#allocation2 + $0x20] sm:$0xff] }
 0x534   :  { %v2582_v31 = vpop.f32.mrf.mxu0 }
 0x536   :  { %v6077_v62 = vpop.f32.mrf.mxu0 }
 0x538   :  { %v2663_v32 = vpop.f32.mrf.mxu0 }
 0x53a   :  { %v6092_v29 = vpop.f32.mrf.mxu0 }
 0x53c   :  { %v2666_v28 = vpop.f32.mrf.mxu0 }
 0x53e   :  { %v6093_v34 = vpop.f32.mrf.mxu0 }
 0x540   :  { %v2744_v35 = vpop.f32.mrf.mxu0 }
 0x542   :  { %v6108_v36 = vpop.f32.mrf.mxu0 }
 0x544   :  { %v2747_v7 = vpop.f32.mrf.mxu0 }
 0x545   :  { %v2622_v37 = vpop.f32.mrf.mxu1 }
 0x546   :  { %v2623_v41 = vadd.f32 %v7648_v39, %v2622_v37  ;;  %v6109_v42 = vpop.f32.mrf.mxu0 }
 0x547   :  { %v6084_v33 = vpop.f32.mrf.mxu1 }
 0x548   :  { %v2628_v21 = vadd.f32 %v2623_v41, %v2579_v4  ;;  %v2825_v11 = vpop.f32.mrf.mxu0 }
 0x549   :  { %v2625_v24 = vpop.f32.mrf.mxu1 }
 0x54a   :  { %v5320_v25 = vmul.f32 -1.442695, %v2628_v21  ;;  %v6124_v38 = vpop.f32.mrf.mxu0  ;;  %v7666_v21 = vld [vmem:[%s8124_s6 + $0x3] ss:$0 sm:$0xff] }
 0x54b   :  { %v6085_v26 = vpop.f32.mrf.mxu1 }
 0x54c   :  { %v2828_v18 = vpop.f32.mrf.mxu0  ;;  %6679 = vpow2.f32 %v5320_v25 }
 0x54d   :  { %v2703_v60 = vpop.f32.mrf.mxu1 }
 0x54e   :  { %v2704_v46 = vadd.f32 %v7654_v0, %v2703_v60  ;;  %v6125_v27 = vpop.f32.mrf.mxu0 }
 0x54f   :  { %v6100_v3 = vpop.f32.mrf.mxu1 }
 0x550   :  { %v2709_v49 = vadd.f32 %v2704_v46, %v2663_v32  ;;  %v2930_v55 = vpop.f32.mrf.mxu0  ;;  %v7660_v32 = vld [vmem:[%s8124_s6 + $0x2] ss:$0 sm:$0xff] }
 0x551   :  { %v2706_v56 = vpop.f32.mrf.mxu1  ;;  %v2938_v62 = vadd.f32 %v2937_v47, %v2930_v55 }
 0x552   :  { %v5321_v57 = vmul.f32 -1.442695, %v2709_v49  ;;  %v6140_v22 = vpop.f32.mrf.mxu0  ;;  %v2980_v56 = vld [vmem:[#allocation3 + $0x20] sm:$0xff] }
 0x553   :  { %v6101_v43 = vpop.f32.mrf.mxu1  ;;  %v5327_v41 = vmul.f32 -1.442695, %v2938_v62 }
 0x554   :  { %6681 = vpow2.f32 %v5321_v57  ;;  %v2933_v61 = vpop.f32.mrf.mxu0 }
 0x555   :  { %v2784_v59 = vpop.f32.mrf.mxu1  ;;  %6683 = vpow2.f32 %v5327_v41 }
 0x556   :  { %v6141_v1 = vpop.f32.mrf.mxu0  ;;  %v2785_v36 = vadd.f32 %v7660_v32, %v2784_v59 }
 0x557   :  { %v6116_v4 = vpop.f32.mrf.mxu1 }
 0x558   :  { %v3016_v31 = vpop.f32.mrf.mxu0  ;;  %v2790_v38 = vadd.f32 %v2785_v36, %v2744_v35 }
 0x559   :  { %v2787_v29 = vpop.f32.mrf.mxu1  ;;  %v6680_v34 = vpop.eup %6679 }
 0x55a   :  { %v6156_v28 = vpop.f32.mrf.mxu0  ;;  %v2875_v33 = vadd.f32 1.0, %v6680_v34 }
 0x55b   :  { %v6117_v7 = vpop.f32.mrf.mxu1 }
 0x55c   :  { %v3019_v37 = vpop.f32.mrf.mxu0  ;;  %6685 = vrcp.f32 %v2875_v33 }
 0x55d   :  { %v2865_v42 = vpop.f32.mrf.mxu1  ;;  %6687 = vtanh.f32 %v2790_v38 }
 0x55e   :  { %v2866_v24 = vadd.f32 %v7666_v21, %v2865_v42  ;;  %v6157_v25 = vpop.f32.mrf.mxu0 }
 0x55f   :  { %v6132_v26 = vpop.f32.mrf.mxu1  ;;  %v3023_v25 = vld [vmem:[#allocation4 + $0x20] sm:$0xff] }
 0x560   :  { %v2871_v18 = vadd.f32 %v2866_v24, %v2825_v11  ;;  %v3066_v11 = vld [vmem:[#allocation5 + $0x20] sm:$0xff]  ;;  %v3024_v26 = vadd.f32 %v3023_v25, %v3016_v31 }
 0x561   :  { %v6682_v60 = vpop.eup %6681  ;;  %v2868_v46 = vpop.f32.mrf.mxu1 }
 0x562   :  { %v2881_v27 = vadd.f32 1.0, %v6682_v60  ;;  %v5322_v3 = vmul.f32 -1.442695, %v2871_v18  ;;  %v6684_v1 = vpop.eup %6683 }
 0x563   :  { %v6133_v49 = vpop.f32.mrf.mxu1  ;;  %v3071_v33 = vadd.f32 1.0, %v6684_v1 }
 0x564   :  { %6689 = vrcp.f32 %v2881_v27 }
 0x565   :  { %v2973_v55 = vpop.f32.mrf.mxu1  ;;  %6691 = vpow2.f32 %v5322_v3 }
 0x566   :  { %v2981_v57 = vadd.f32 %v2980_v56, %v2973_v55 }
 0x567   :  { %v6148_v22 = vpop.f32.mrf.mxu1 }
 0x568   :  { %v5328_v43 = vmul.f32 -1.442695, %v2981_v57 }
 0x569   :  { %v2976_v61 = vpop.f32.mrf.mxu1  ;;  %v6686_v47 = vpop.eup %6685 }
 0x56a   :  { %6693 = vpow2.f32 %v5328_v43  ;;  %v6688_v29 = vpop.eup %6687 }
 0x56b   :  { %v6149_v35 = vpop.f32.mrf.mxu1  ;;  %v2892_v37 = vmul.f32 %v6688_v29, %v6686_v47 }
 0x56d   :  { %v3059_v59 = vpop.f32.mrf.mxu1 }
 0x56e   :  { %v3067_v4 = vadd.f32 %v3066_v11, %v3059_v59 }
 0x56f   :  { %v6164_v62 = vpop.f32.mrf.mxu1 }
 0x570   :  { %v5329_v34 = vmul.f32 -1.442695, %v3067_v4 }
 0x571   :  { %v6690_v28 = vpop.eup %6689  ;;  %v3062_v36 = vpop.f32.mrf.mxu1 }
 0x572   :  { %v2891_v7 = vmul.f32 %v6690_v28, %v7542_v9  ;;  %v6692_v41 = vpop.eup %6691  ;;  %6695 = vpow2.f32 %v5329_v34 }
 0x573   :  { %v6165_v42 = vpop.f32.mrf.mxu1  ;;  %v2888_v38 = vadd.f32 1.0, %v6692_v41 }
 0x574   :  { %v7670_v24 = vadd.f32 %v2892_v37, %v2891_v7 }
 0x576   :  { %6697 = vtanh.f32 %v7670_v24 }
 0x577   :  { %v6694_v18 = vpop.eup %6693  ;;  %6699 = vrcp.f32 %v2888_v38 }
 0x578   :  { %6701 = vrcp.f32 %v3071_v33  ;;  %v3077_v60 = vadd.f32 1.0, %v6694_v18 }
 0x579   :  { %6703 = vtanh.f32 %v3024_v26 }
 0x57a   :  { %6705 = vrcp.f32 %v3077_v60 }
 0x57f   :  { %v6696_v46 = vpop.eup %6695 }
 0x580   :  { %v3084_v57 = vadd.f32 1.0, %v6696_v46  ;;  %v3489_v46 = vld [vmem:[#allocation2 + $0x28] sm:$0xff] }
 0x582   :  { %6707 = vrcp.f32 %v3084_v57 }
 0x583   :  { %v6698_v9 = vpop.eup %6697 }
 0x584   :  { %v6700_v27 = vpop.eup %6699 }
 0x585   :  { %v6702_v3 = vpop.eup %6701  ;;  %v2895_v49 = vmul.f32 %v6700_v27, %v6698_v9 }
 0x586   :  { %v6704_v55 = vpop.eup %6703 }
 0x587   :  { %v6706_v56 = vpop.eup %6705  ;;  %v3093_v22 = vpack.c.bf16 %v2895_v49, %v2895_v49  ;;  %v3088_v43 = vmul.f32 %v6704_v55, %v6702_v3 }
 0x588   :  { %v3087_v31 = vmul.f32 %v6706_v56, %v7547_v58 }
 0x589   :  { %6171 = vmatmul.mubr.msk.bf16.vlgmr.msra.gmra.mxu0 %vm182_vm2, %v3093_v22 }
 0x58a   :  { %v7675_v61 = vadd.f32 %v3088_v43, %v3087_v31  ;;  %6183 = vmatpush3.bf16.msra.mxu0 %v7393_v40  ;;  %6186 = vmatprep.mubr.msk.bf16.mxu0 %vm6928_vm1, %v6927_v8 }
 0x58b   :  { %6184 = vmatprep.subr.bf16.mxu0 %v6927_v8 }
 0x58c   :  { %6709 = vtanh.f32 %v7675_v61 }
 0x58e   :  { %6185 = vmatpush3.bf16.msra.mxu0 %v7400_v20 }
 0x58f   :  { %6198 = vmatprep.subr.bf16.mxu0 %v6927_v8  ;;  %v6708_v40 = vpop.eup %6707 }
 0x591   :  { %6187 = vmatmul.mubr.msk.bf16.vlgmr.msra.gmra.mxu0 %vm182_vm2, %v3093_v22 }
 0x592   :  { %6199 = vmatpush3.bf16.msra.mxu0 %v7405_v45  ;;  %6202 = vmatprep.mubr.msk.bf16.mxu0 %vm6928_vm1, %v6927_v8 }
 0x593   :  { %6200 = vmatprep.subr.bf16.mxu0 %v6927_v8 }
 0x596   :  { %6201 = vmatpush3.bf16.msra.mxu0 %v7411_v44 }
 0x597   :  { %6214 = vmatprep.subr.bf16.mxu0 %v6927_v8 }
 0x599   :  { %v6710_v58 = vpop.eup %6709  ;;  %6203 = vmatmul.mubr.msk.bf16.vlgmr.msra.gmra.mxu0 %vm182_vm2, %v3093_v22 }
 0x59a   :  { %v3091_v20 = vmul.f32 %v6710_v58, %v6708_v40  ;;  %6215 = vmatpush3.bf16.msra.mxu0 %v7416_v10  ;;  %6218 = vmatprep.mubr.msk.bf16.mxu0 %vm6928_vm1, %v6927_v8 }
 0x59b   :  { %6216 = vmatprep.subr.bf16.mxu0 %v6927_v8 }
 0x59c   :  { %v3092_v45 = vpack.c.bf16 %v3091_v20, %v3091_v20 }
 0x59e   :  { %6217 = vmatpush3.bf16.msra.mxu0 %v7422_v12  ;;  %6179 = vmatmul.mubr.msk.bf16.vlgmr.msra.gmra.mxu1 %vm182_vm2, %v3092_v45 }
 0x59f   :  { %6191 = vmatpush3.bf16.msra.mxu1 %v7570_v2  ;;  %6230 = vmatprep.subr.bf16.mxu0 %v6927_v8 }
 0x5a0   :  { %6192 = vmatprep.subr.bf16.mxu1 %v6927_v8  ;;  %6194 = vmatprep.mubr.msk.bf16.mxu1 %vm6928_vm1, %v6927_v8 }
 0x5a1   :  { %6219 = vmatmul.mubr.msk.bf16.vlgmr.msra.gmra.mxu0 %vm182_vm2, %v3093_v22 }
 0x5a2   :  { %6231 = vmatpush3.bf16.msra.mxu0 %v7435_v13  ;;  %6234 = vmatprep.mubr.msk.bf16.mxu0 %vm6928_vm1, %v6927_v8 }
 0x5a3   :  { %6193 = vmatpush3.bf16.msra.mxu1 %v7581_v63  ;;  %6232 = vmatprep.subr.bf16.mxu0 %v6927_v8 }
 0x5a4   :  { %6206 = vmatprep.subr.bf16.mxu1 %v6927_v8 }
 0x5a6   :  { %6233 = vmatpush3.bf16.msra.mxu0 %v7446_v48  ;;  %6195 = vmatmul.mubr.msk.bf16.vlgmr.msra.gmra.mxu1 %vm182_vm2, %v3092_v45 }
 0x5a7   :  { %6207 = vmatpush3.bf16.msra.mxu1 %v7588_v5  ;;  %6246 = vmatprep.subr.bf16.mxu0 %v6927_v8 }
 0x5a8   :  { %6208 = vmatprep.subr.bf16.mxu1 %v6927_v8  ;;  %6210 = vmatprep.mubr.msk.bf16.mxu1 %vm6928_vm1, %v6927_v8 }
 0x5a9   :  { %6235 = vmatmul.mubr.msk.bf16.vlgmr.msra.gmra.mxu0 %vm182_vm2, %v3092_v45 }
 0x5aa   :  { %6247 = vmatpush3.bf16.msra.mxu0 %v7459_v50  ;;  %6250 = vmatprep.mubr.msk.bf16.mxu0 %vm6928_vm1, %v6927_v8 }
 0x5ab   :  { %6209 = vmatpush3.bf16.msra.mxu1 %v7599_v6  ;;  %6248 = vmatprep.subr.bf16.mxu0 %v6927_v8 }
 0x5ac   :  { %6222 = vmatprep.subr.bf16.mxu1 %v6927_v8 }
 0x5ae   :  { %6249 = vmatpush3.bf16.msra.mxu0 %v7470_v51  ;;  %6211 = vmatmul.mubr.msk.bf16.vlgmr.msra.gmra.mxu1 %vm182_vm2, %v3092_v45 }
 0x5af   :  { %6223 = vmatpush3.bf16.msra.mxu1 %v7606_v15  ;;  %6226 = vmatprep.mubr.msk.bf16.mxu1 %vm6928_vm1, %v6927_v8 }
 0x5b0   :  { %6224 = vmatprep.subr.bf16.mxu1 %v6927_v8  ;;  %6262 = vmatprep.subr.bf16.mxu0 %v6927_v8 }
 0x5b1   :  { %6251 = vmatmul.mubr.msk.bf16.vlgmr.msra.gmra.mxu0 %vm182_vm2, %v3092_v45 }
 0x5b2   :  { %6263 = vmatpush3.bf16.msra.mxu0 %v7480_v52  ;;  %6266 = vmatprep.mubr.msk.bf16.mxu0 %vm6928_vm1, %v6927_v8 }
 0x5b3   :  { %6225 = vmatpush3.bf16.msra.mxu1 %v7617_v30  ;;  %6264 = vmatprep.subr.bf16.mxu0 %v6927_v8 }
 0x5b4   :  { %6238 = vmatprep.subr.bf16.mxu1 %v6927_v8 }
 0x5b6   :  { %6227 = vmatmul.mubr.msk.bf16.vlgmr.msra.gmra.mxu1 %vm182_vm2, %v3092_v45  ;;  %6265 = vmatpush3.bf16.msra.mxu0 %v7489_v53 }
 0x5b7   :  { %6239 = vmatpush3.bf16.msra.mxu1 %v7495_v14  ;;  %6242 = vmatprep.mubr.msk.bf16.mxu1 %vm6928_vm1, %v6927_v8 }
 0x5b8   :  { %6240 = vmatprep.subr.bf16.mxu1 %v6927_v8  ;;  %6278 = vmatprep.subr.bf16.mxu0 %v6927_v8 }
 0x5bb   :  { %6241 = vmatpush3.bf16.msra.mxu1 %v7505_v54 }
 0x5bc   :  { %6254 = vmatprep.subr.bf16.mxu1 %v6927_v8 }
 0x5be   :  { %6243 = vmatmul.mubr.msk.bf16.vlgmr.msra.gmra.mxu1 %vm182_vm2, %v3092_v45 }
 0x5bf   :  { %6255 = vmatpush3.bf16.msra.mxu1 %v7513_v16  ;;  %6258 = vmatprep.mubr.msk.bf16.mxu1 %vm6928_vm1, %v6927_v8 }
 0x5c0   :  { %6256 = vmatprep.subr.bf16.mxu1 %v6927_v8 }
 0x5c3   :  { %6257 = vmatpush3.bf16.msra.mxu1 %v7522_v17 }
 0x5c4   :  { %6270 = vmatprep.subr.bf16.mxu1 %v6927_v8 }
 0x5c6   :  { %6259 = vmatmul.mubr.msk.bf16.vlgmr.msra.gmra.mxu1 %vm182_vm2, %v3092_v45 }
 0x5c7   :  { %6271 = vmatpush3.bf16.msra.mxu1 %v7527_v19  ;;  %6274 = vmatprep.mubr.msk.bf16.mxu1 %vm6928_vm1, %v6927_v8 }
 0x5c8   :  { %6272 = vmatprep.subr.bf16.mxu1 %v6927_v8 }
 0x5cb   :  { %6273 = vmatpush3.bf16.msra.mxu1 %v7533_v23 }
 0x5cc   :  { %6286 = vmatprep.subr.bf16.mxu1 %v6927_v8 }
 0x649   :  { %v3131_v44 = vpop.f32.mrf.mxu0 }
 0x64b   :  { %v6172_v10 = vpop.f32.mrf.mxu0 }
 0x64d   :  { %v3134_v12 = vpop.f32.mrf.mxu0 }
 0x64f   :  { %v6173_v13 = vpop.f32.mrf.mxu0 }
 0x651   :  { %v3215_v48 = vpop.f32.mrf.mxu0 }
 0x653   :  { %v6188_v50 = vpop.f32.mrf.mxu0 }
 0x655   :  { %v3218_v51 = vpop.f32.mrf.mxu0 }
 0x657   :  { %v6189_v52 = vpop.f32.mrf.mxu0 }
 0x659   :  { %v3296_v53 = vpop.f32.mrf.mxu0 }
 0x65b   :  { %v6204_v14 = vpop.f32.mrf.mxu0 }
 0x65c   :  { %v3532_v14 = vld [vmem:[#allocation3 + $0x28] sm:$0xff] }
 0x65d   :  { %v3299_v54 = vpop.f32.mrf.mxu0 }
 0x65e   :  { %v3174_v16 = vpop.f32.mrf.mxu1 }
 0x65f   :  { %v3175_v17 = vadd.f32 %v7648_v39, %v3174_v16  ;;  %v6205_v19 = vpop.f32.mrf.mxu0 }
 0x660   :  { %v6180_v35 = vpop.f32.mrf.mxu1 }
 0x661   :  { %v3180_v59 = vadd.f32 %v3175_v17, %v3131_v44  ;;  %v3377_v23 = vpop.f32.mrf.mxu0 }
 0x662   :  { %v3177_v11 = vpop.f32.mrf.mxu1 }
 0x663   :  { %v5338_v1 = vmul.f32 -1.442695, %v3180_v59  ;;  %v6220_v4 = vpop.f32.mrf.mxu0  ;;  %v3618_v59 = vld [vmem:[#allocation5 + $0x28] sm:$0xff] }
 0x664   :  { %v6181_v47 = vpop.f32.mrf.mxu1 }
 0x665   :  { %v3380_v62 = vpop.f32.mrf.mxu0  ;;  %6711 = vpow2.f32 %v5338_v1 }
 0x666   :  { %v3255_v29 = vpop.f32.mrf.mxu1 }
 0x667   :  { %v3256_v28 = vadd.f32 %v7654_v0, %v3255_v29  ;;  %v6221_v34 = vpop.f32.mrf.mxu0 }
 0x668   :  { %v6196_v36 = vpop.f32.mrf.mxu1 }
 0x669   :  { %v3261_v7 = vadd.f32 %v3256_v28, %v3215_v48  ;;  %v3482_v37 = vpop.f32.mrf.mxu0 }
 0x66a   :  { %v3258_v41 = vpop.f32.mrf.mxu1  ;;  %v3490_v27 = vadd.f32 %v3489_v46, %v3482_v37 }
 0x66b   :  { %v5339_v42 = vmul.f32 -1.442695, %v3261_v7  ;;  %v6236_v33 = vpop.f32.mrf.mxu0 }
 0x66c   :  { %v6197_v25 = vpop.f32.mrf.mxu1  ;;  %v5345_v43 = vmul.f32 -1.442695, %v3490_v27  ;;  %v3575_v33 = vld [vmem:[#allocation4 + $0x28] sm:$0xff] }
 0x66d   :  { %6713 = vpow2.f32 %v5339_v42  ;;  %v3485_v38 = vpop.f32.mrf.mxu0 }
 0x66e   :  { %v3336_v26 = vpop.f32.mrf.mxu1  ;;  %6715 = vpow2.f32 %v5345_v43 }
 0x66f   :  { %v6237_v18 = vpop.f32.mrf.mxu0  ;;  %v3337_v56 = vadd.f32 %v7660_v32, %v3336_v26 }
 0x670   :  { %v6212_v60 = vpop.f32.mrf.mxu1 }
 0x671   :  { %v3568_v9 = vpop.f32.mrf.mxu0  ;;  %v3342_v45 = vadd.f32 %v3337_v56, %v3296_v53 }
 0x672   :  { %v3339_v3 = vpop.f32.mrf.mxu1  ;;  %v6712_v55 = vpop.eup %6711  ;;  %v3576_v38 = vadd.f32 %v3575_v33, %v3568_v9 }
 0x673   :  { %v6252_v49 = vpop.f32.mrf.mxu0  ;;  %v3427_v40 = vadd.f32 1.0, %v6712_v55 }
 0x674   :  { %v6213_v57 = vpop.f32.mrf.mxu1 }
 0x675   :  { %v3571_v22 = vpop.f32.mrf.mxu0  ;;  %6717 = vrcp.f32 %v3427_v40  ;;  %v7780_v40 = vld [vmem:[#allocation8 + $0x10] sm:$0xff]  }
 0x676   :  { %v3417_v31 = vpop.f32.mrf.mxu1  ;;  %6719 = vtanh.f32 %v3342_v45 }
 0x677   :  { %v3418_v58 = vadd.f32 %v7666_v21, %v3417_v31  ;;  %v6253_v20 = vpop.f32.mrf.mxu0  ;;  %v7773_v31 = vld [vmem:[#allocation8 + $0x18] sm:$0xff]  }
 0x678   :  { %v6228_v44 = vpop.f32.mrf.mxu1 }
 0x679   :  { %v3423_v10 = vadd.f32 %v3418_v58, %v3377_v23  ;;  %v7791_v58 = vld [vmem:[#allocation8 + $0x20] sm:$0xff]  }
 0x67a   :  { %v6714_v12 = vpop.eup %6713  ;;  %v3420_v13 = vpop.f32.mrf.mxu1 }
 0x67b   :  { %v3433_v48 = vadd.f32 1.0, %v6714_v12  ;;  %v5340_v50 = vmul.f32 -1.442695, %v3423_v10  ;;  %v6716_v23 = vpop.eup %6715  ;;  %v7796_v10 = vld [vmem:[#allocation8 + $0x38] sm:$0xff]   ;;  %v7802_v13 = vld [vmem:[#allocation8 + $0x30] sm:$0xff]  }
 0x67c   :  { %v6229_v51 = vpop.f32.mrf.mxu1  ;;  %v3623_v41 = vadd.f32 1.0, %v6716_v23 }
 0x67d   :  { %6721 = vrcp.f32 %v3433_v48  ;;  %v7815_v48 = vld [vmem:[%s8120_s2 + $0x8] sm:$0xff]   ;;  %v7893_v51 = vld [vmem:[%s8120_s2 + $0x38] sm:$0xff]  }
 0x67e   :  { %v3525_v52 = vpop.f32.mrf.mxu1  ;;  %6723 = vpow2.f32 %v5340_v50  ;;  %v7875_v50 = vld [vmem:[%s8120_s2 + $0x18] sm:$0xff]  }
 0x67f   :  { %v3533_v54 = vadd.f32 %v3532_v14, %v3525_v52  ;;  %v7902_v52 = vld [vmem:[%s8120_s2 + $0x30] sm:$0xff]   ;;  %v7907_v14 = vld [vmem:[#allocation6 + $0x8] sm:$0xff]  }
 0x680   :  { %v6244_v16 = vpop.f32.mrf.mxu1 }
 0x681   :  { %v5346_v17 = vmul.f32 -1.442695, %v3533_v54  ;;  %v7913_v54 = vld [vmem:[#allocation6] sm:$0xff]  }
 0x682   :  { %v3528_v19 = vpop.f32.mrf.mxu1  ;;  %v6718_v1 = vpop.eup %6717 }
 0x683   :  { %6725 = vpow2.f32 %v5346_v17  ;;  %v6720_v47 = vpop.eup %6719 }
 0x684   :  { %v6245_v53 = vpop.f32.mrf.mxu1  ;;  %v3444_v36 = vmul.f32 %v6720_v47, %v6718_v1 }
 0x686   :  { %v3611_v35 = vpop.f32.mrf.mxu1 }
 0x687   :  { %v3619_v11 = vadd.f32 %v3618_v59, %v3611_v35 }
 0x688   :  { %v6260_v4 = vpop.f32.mrf.mxu1 }
 0x689   :  { %v5347_v29 = vmul.f32 -1.442695, %v3619_v11 }
 0x68a   :  { %v6722_v62 = vpop.eup %6721  ;;  %v3614_v28 = vpop.f32.mrf.mxu1 }
 0x68b   :  { %v3443_v34 = vmul.f32 %v6722_v62, %v7670_v24  ;;  %v6724_v7 = vpop.eup %6723  ;;  %6727 = vpow2.f32 %v5347_v29 }
 0x68c   :  { %v6261_v37 = vpop.f32.mrf.mxu1  ;;  %v3440_v25 = vadd.f32 1.0, %v6724_v7 }
 0x68d   :  { %v7766_v42 = vadd.f32 %v3444_v36, %v3443_v34 }
 0x68f   :  { %6729 = vtanh.f32 %v7766_v42 }
 0x690   :  { %v6726_v26 = vpop.eup %6725  ;;  %6731 = vrcp.f32 %v3440_v25 }
 0x691   :  { %6733 = vrcp.f32 %v3623_v41  ;;  %v3629_v18 = vadd.f32 1.0, %v6726_v26 }
 0x692   :  { %6735 = vtanh.f32 %v3576_v38 }
 0x693   :  { %6737 = vrcp.f32 %v3629_v18 }
 0x698   :  { %v6728_v60 = vpop.eup %6727 }
 0x699   :  { %v3636_v56 = vadd.f32 1.0, %v6728_v60 }
 0x69b   :  { %6739 = vrcp.f32 %v3636_v56 }
 0x69c   :  { %v6730_v24 = vpop.eup %6729 }
 0x69d   :  { %v6732_v46 = vpop.eup %6731 }
 0x69e   :  { %v6734_v27 = vpop.eup %6733  ;;  %v3447_v3 = vmul.f32 %v6732_v46, %v6730_v24 }
 0x69f   :  { %v6736_v49 = vpop.eup %6735 }
 0x6a0   :  { %v6738_v55 = vpop.eup %6737  ;;  %v3645_v57 = vpack.c.bf16 %v3447_v3, %v3447_v3  ;;  %v3640_v22 = vmul.f32 %v6736_v49, %v6734_v27 }
 0x6a1   :  { %v3639_v9 = vmul.f32 %v6738_v55, %v7675_v61  ;;  %v7785_v61 = vld [vmem:[#allocation8 + $0x28] sm:$0xff]  }
 0x6a2   :  { %6267 = vmatmul.mubr.msk.bf16.vlgmr.msra.gmra.mxu0 %vm182_vm2, %v3645_v57 }
 0x6a3   :  { %v7771_v43 = vadd.f32 %v3640_v22, %v3639_v9  ;;  %6279 = vmatpush3.bf16.msra.mxu0 %v7773_v31  ;;  %6282 = vmatprep.mubr.msk.bf16.mxu0 %vm6928_vm1, %v6927_v8 }
 0x6a4   :  { %6280 = vmatprep.subr.bf16.mxu0 %v6927_v8 }
 0x6a5   :  { %6741 = vtanh.f32 %v7771_v43 }
 0x6a7   :  { %6281 = vmatpush3.bf16.msra.mxu0 %v7780_v40 }
 0x6a8   :  { %6294 = vmatprep.subr.bf16.mxu0 %v6927_v8  ;;  %v6740_v20 = vpop.eup %6739 }
 0x6aa   :  { %6283 = vmatmul.mubr.msk.bf16.vlgmr.msra.gmra.mxu0 %vm182_vm2, %v3645_v57 }
 0x6ab   :  { %6295 = vmatpush3.bf16.msra.mxu0 %v7785_v61  ;;  %6298 = vmatprep.mubr.msk.bf16.mxu0 %vm6928_vm1, %v6927_v8 }
 0x6ac   :  { %6296 = vmatprep.subr.bf16.mxu0 %v6927_v8 }
 0x6af   :  { %6297 = vmatpush3.bf16.msra.mxu0 %v7791_v58 }
 0x6b0   :  { %6310 = vmatprep.subr.bf16.mxu0 %v6927_v8 }
 0x6b2   :  { %v6742_v45 = vpop.eup %6741  ;;  %6299 = vmatmul.mubr.msk.bf16.vlgmr.msra.gmra.mxu0 %vm182_vm2, %v3645_v57 }
 0x6b3   :  { %v3643_v44 = vmul.f32 %v6742_v45, %v6740_v20  ;;  %6311 = vmatpush3.bf16.msra.mxu0 %v7796_v10  ;;  %6314 = vmatprep.mubr.msk.bf16.mxu0 %vm6928_vm1, %v6927_v8  ;;  %v4041_v20 = vld [vmem:[#allocation2 + $0x30] sm:$0xff] }
 0x6b4   :  { %6312 = vmatprep.subr.bf16.mxu0 %v6927_v8 }
 0x6b5   :  { %v3644_v12 = vpack.c.bf16 %v3643_v44, %v3643_v44 }
 0x6b7   :  { %6313 = vmatpush3.bf16.msra.mxu0 %v7802_v13  ;;  %6275 = vmatmul.mubr.msk.bf16.vlgmr.msra.gmra.mxu1 %vm182_vm2, %v3644_v12 }
 0x6b8   :  { %6287 = vmatpush3.bf16.msra.mxu1 %v7570_v2  ;;  %6326 = vmatprep.subr.bf16.mxu0 %v6927_v8  ;;  %v7826_v2 = vld [vmem:[%s8120_s2] sm:$0xff]  }
 0x6b9   :  { %6288 = vmatprep.subr.bf16.mxu1 %v6927_v8  ;;  %6290 = vmatprep.mubr.msk.bf16.mxu1 %vm6928_vm1, %v6927_v8 }
 0x6ba   :  { %6315 = vmatmul.mubr.msk.bf16.vlgmr.msra.gmra.mxu0 %vm182_vm2, %v3645_v57 }
 0x6bb   :  { %6327 = vmatpush3.bf16.msra.mxu0 %v7815_v48  ;;  %6330 = vmatprep.mubr.msk.bf16.mxu0 %vm6928_vm1, %v6927_v8 }
 0x6bc   :  { %6289 = vmatpush3.bf16.msra.mxu1 %v7581_v63  ;;  %6328 = vmatprep.subr.bf16.mxu0 %v6927_v8  ;;  %v7839_v63 = vld [vmem:[%s8120_s2 + $0x28] sm:$0xff]  }
 0x6bd   :  { %6302 = vmatprep.subr.bf16.mxu1 %v6927_v8 }
 0x6bf   :  { %6329 = vmatpush3.bf16.msra.mxu0 %v7826_v2  ;;  %6291 = vmatmul.mubr.msk.bf16.vlgmr.msra.gmra.mxu1 %vm182_vm2, %v3644_v12 }
 0x6c0   :  { %6303 = vmatpush3.bf16.msra.mxu1 %v7588_v5  ;;  %6342 = vmatprep.subr.bf16.mxu0 %v6927_v8  ;;  %v7850_v5 = vld [vmem:[%s8120_s2 + $0x20] sm:$0xff]  }
 0x6c1   :  { %6304 = vmatprep.subr.bf16.mxu1 %v6927_v8  ;;  %6306 = vmatprep.mubr.msk.bf16.mxu1 %vm6928_vm1, %v6927_v8 }
 0x6c2   :  { %6331 = vmatmul.mubr.msk.bf16.vlgmr.msra.gmra.mxu0 %vm182_vm2, %v3644_v12 }
 0x6c3   :  { %6343 = vmatpush3.bf16.msra.mxu0 %v7839_v63  ;;  %6346 = vmatprep.mubr.msk.bf16.mxu0 %vm6928_vm1, %v6927_v8 }
 0x6c4   :  { %6305 = vmatpush3.bf16.msra.mxu1 %v7599_v6  ;;  %6344 = vmatprep.subr.bf16.mxu0 %v6927_v8  ;;  %v7860_v6 = vld [vmem:[#allocation8 + $0x8] sm:$0xff]  }
 0x6c5   :  { %6318 = vmatprep.subr.bf16.mxu1 %v6927_v8 }
 0x6c7   :  { %6345 = vmatpush3.bf16.msra.mxu0 %v7850_v5  ;;  %6307 = vmatmul.mubr.msk.bf16.vlgmr.msra.gmra.mxu1 %vm182_vm2, %v3644_v12 }
 0x6c8   :  { %6319 = vmatpush3.bf16.msra.mxu1 %v7606_v15  ;;  %6322 = vmatprep.mubr.msk.bf16.mxu1 %vm6928_vm1, %v6927_v8  ;;  %v7869_v15 = vld [vmem:[#allocation8] sm:$0xff]  }
 0x6c9   :  { %6320 = vmatprep.subr.bf16.mxu1 %v6927_v8  ;;  %6358 = vmatprep.subr.bf16.mxu0 %v6927_v8 }
 0x6ca   :  { %6347 = vmatmul.mubr.msk.bf16.vlgmr.msra.gmra.mxu0 %vm182_vm2, %v3644_v12 }
 0x6cb   :  { %6359 = vmatpush3.bf16.msra.mxu0 %v7860_v6  ;;  %6362 = vmatprep.mubr.msk.bf16.mxu0 %vm6928_vm1, %v6927_v8 }
 0x6cc   :  { %6321 = vmatpush3.bf16.msra.mxu1 %v7617_v30  ;;  %6360 = vmatprep.subr.bf16.mxu0 %v6927_v8  ;;  %v7885_v30 = vld [vmem:[%s8120_s2 + $0x10] sm:$0xff]  }
 0x6cd   :  { %6334 = vmatprep.subr.bf16.mxu1 %v6927_v8 }
 0x6cf   :  { %6323 = vmatmul.mubr.msk.bf16.vlgmr.msra.gmra.mxu1 %vm182_vm2, %v3644_v12  ;;  %6361 = vmatpush3.bf16.msra.mxu0 %v7869_v15 }
 0x6d0   :  { %6335 = vmatpush3.bf16.msra.mxu1 %v7875_v50  ;;  %6338 = vmatprep.mubr.msk.bf16.mxu1 %vm6928_vm1, %v6927_v8 }
 0x6d1   :  { %6336 = vmatprep.subr.bf16.mxu1 %v6927_v8  ;;  %6374 = vmatprep.subr.bf16.mxu0 %v6927_v8 }
 0x6d4   :  { %6337 = vmatpush3.bf16.msra.mxu1 %v7885_v30 }
 0x6d5   :  { %6350 = vmatprep.subr.bf16.mxu1 %v6927_v8 }
 0x6d7   :  { %6339 = vmatmul.mubr.msk.bf16.vlgmr.msra.gmra.mxu1 %vm182_vm2, %v3644_v12 }
 0x6d8   :  { %6351 = vmatpush3.bf16.msra.mxu1 %v7893_v51  ;;  %6354 = vmatprep.mubr.msk.bf16.mxu1 %vm6928_vm1, %v6927_v8 }
 0x6d9   :  { %6352 = vmatprep.subr.bf16.mxu1 %v6927_v8 }
 0x6dc   :  { %6353 = vmatpush3.bf16.msra.mxu1 %v7902_v52 }
 0x6dd   :  { %6366 = vmatprep.subr.bf16.mxu1 %v6927_v8 }
 0x6df   :  { %6355 = vmatmul.mubr.msk.bf16.vlgmr.msra.gmra.mxu1 %vm182_vm2, %v3644_v12 }
 0x6e0   :  { %6367 = vmatpush3.bf16.msra.mxu1 %v7907_v14  ;;  %6370 = vmatprep.mubr.msk.bf16.mxu1 %vm6928_vm1, %v6927_v8 }
 0x6e1   :  { %6368 = vmatprep.subr.bf16.mxu1 %v6927_v8 }
 0x6e4   :  { %6369 = vmatpush3.bf16.msra.mxu1 %v7913_v54 }
 0x6e5   :  { %6382 = vmatprep.subr.bf16.mxu1 %v6927_v8 }
 0x762   :  { %v3683_v16 = vpop.f32.mrf.mxu0 }
 0x764   :  { %v6268_v17 = vpop.f32.mrf.mxu0 }
 0x766   :  { %v3686_v19 = vpop.f32.mrf.mxu0 }
 0x768   :  { %v6269_v53 = vpop.f32.mrf.mxu0 }
 0x76a   :  { %v3767_v35 = vpop.f32.mrf.mxu0 }
 0x76c   :  { %v6284_v59 = vpop.f32.mrf.mxu0 }
 0x76e   :  { %v3770_v23 = vpop.f32.mrf.mxu0 }
 0x770   :  { %v6285_v11 = vpop.f32.mrf.mxu0 }
 0x772   :  { %v3848_v1 = vpop.f32.mrf.mxu0 }
 0x774   :  { %v6300_v4 = vpop.f32.mrf.mxu0 }
 0x776   :  { %v3851_v47 = vpop.f32.mrf.mxu0 }
 0x777   :  { %v3726_v62 = vpop.f32.mrf.mxu1 }
 0x778   :  { %v3727_v29 = vadd.f32 %v7648_v39, %v3726_v62  ;;  %v6301_v28 = vpop.f32.mrf.mxu0 }
 0x779   :  { %v6276_v34 = vpop.f32.mrf.mxu1 }
 0x77a   :  { %v3732_v36 = vadd.f32 %v3727_v29, %v3683_v16  ;;  %v3929_v7 = vpop.f32.mrf.mxu0 }
 0x77b   :  { %v3729_v37 = vpop.f32.mrf.mxu1 }
 0x77c   :  { %v5356_v41 = vmul.f32 -1.442695, %v3732_v36  ;;  %v6316_v33 = vpop.f32.mrf.mxu0 }
 0x77d   :  { %v6277_v25 = vpop.f32.mrf.mxu1  ;;  %v4084_v33 = vld [vmem:[#allocation3 + $0x30] sm:$0xff] }
 0x77e   :  { %v3932_v38 = vpop.f32.mrf.mxu0  ;;  %6743 = vpow2.f32 %v5356_v41 }
 0x77f   :  { %v3807_v26 = vpop.f32.mrf.mxu1 }
 0x780   :  { %v3808_v18 = vadd.f32 %v7654_v0, %v3807_v26  ;;  %v6317_v60 = vpop.f32.mrf.mxu0 }
 0x781   :  { %v6292_v24 = vpop.f32.mrf.mxu1 }
 0x782   :  { %v3813_v46 = vadd.f32 %v3808_v18, %v3767_v35  ;;  %v4034_v27 = vpop.f32.mrf.mxu0 }
 0x783   :  { %v3810_v3 = vpop.f32.mrf.mxu1  ;;  %v4042_v44 = vadd.f32 %v4041_v20, %v4034_v27 }
 0x784   :  { %v5357_v49 = vmul.f32 -1.442695, %v3813_v46  ;;  %v6332_v39 = vpop.f32.mrf.mxu0 }
 0x785   :  { %v6293_v55 = vpop.f32.mrf.mxu1  ;;  %v5363_v35 = vmul.f32 -1.442695, %v4042_v44 }
 0x786   :  { %6745 = vpow2.f32 %v5357_v49  ;;  %v4037_v56 = vpop.f32.mrf.mxu0 }
 0x787   :  { %v3888_v57 = vpop.f32.mrf.mxu1  ;;  %6747 = vpow2.f32 %v5363_v35 }
 0x788   :  { %v6333_v22 = vpop.f32.mrf.mxu0  ;;  %v3889_v0 = vadd.f32 %v7660_v32, %v3888_v57 }
 0x789   :  { %v6308_v9 = vpop.f32.mrf.mxu1 }
 0x78a   :  { %v4120_v45 = vpop.f32.mrf.mxu0  ;;  %v3894_v47 = vadd.f32 %v3889_v0, %v3848_v1 }
 0x78b   :  { %v3891_v12 = vpop.f32.mrf.mxu1  ;;  %v6744_v17 = vpop.eup %6743 }
 0x78c   :  { %v6348_v16 = vpop.f32.mrf.mxu0  ;;  %v3979_v23 = vadd.f32 1.0, %v6744_v17  ;;  %v4127_v12 = vld [vmem:[#allocation4 + $0x30] sm:$0xff] }
 0x78d   :  { %v6309_v19 = vpop.f32.mrf.mxu1  ;;  %v4128_v17 = vadd.f32 %v4127_v12, %v4120_v45 }
 0x78e   :  { %v4123_v53 = vpop.f32.mrf.mxu0  ;;  %6749 = vrcp.f32 %v3979_v23 }
 0x78f   :  { %v3969_v59 = vpop.f32.mrf.mxu1  ;;  %6751 = vtanh.f32 %v3894_v47 }
 0x790   :  { %v3970_v11 = vadd.f32 %v7666_v21, %v3969_v59  ;;  %v6349_v4 = vpop.f32.mrf.mxu0 }
 0x791   :  { %v6324_v62 = vpop.f32.mrf.mxu1 }
 0x792   :  { %v3975_v29 = vadd.f32 %v3970_v11, %v3929_v7  ;;  %v4170_v7 = vld [vmem:[#allocation5 + $0x30] sm:$0xff] }
 0x793   :  { %v6746_v28 = vpop.eup %6745  ;;  %v3972_v34 = vpop.f32.mrf.mxu1 }
 0x794   :  { %v3985_v36 = vadd.f32 1.0, %v6746_v28  ;;  %v5358_v37 = vmul.f32 -1.442695, %v3975_v29  ;;  %v6748_v60 = vpop.eup %6747 }
 0x795   :  { %v6325_v41 = vpop.f32.mrf.mxu1  ;;  %v4175_v20 = vadd.f32 1.0, %v6748_v60 }
 0x796   :  { %6753 = vrcp.f32 %v3985_v36  ;;  %v7950_v41 = vld [vmem:[#allocation6 + $0x18] sm:$0xff]  }
 0x797   :  { %v4077_v32 = vpop.f32.mrf.mxu1  ;;  %6755 = vpow2.f32 %v5358_v37 }
 0x798   :  { %v4085_v25 = vadd.f32 %v4084_v33, %v4077_v32  ;;  %v7961_v32 = vld [vmem:[#allocation6 + $0x10] sm:$0xff]   ;;  %v7968_v33 = vld [vmem:[#allocation6 + $0x28] sm:$0xff]  }
 0x799   :  { %v6340_v38 = vpop.f32.mrf.mxu1 }
 0x79a   :  { %v5364_v26 = vmul.f32 -1.442695, %v4085_v25 }
 0x79b   :  { %v4080_v21 = vpop.f32.mrf.mxu1  ;;  %v6750_v46 = vpop.eup %6749 }
 0x79c   :  { %6757 = vpow2.f32 %v5364_v26  ;;  %v6752_v3 = vpop.eup %6751 }
 0x79d   :  { %v6341_v1 = vpop.f32.mrf.mxu1  ;;  %v3996_v57 = vmul.f32 %v6752_v3, %v6750_v46 }
 0x79e   :  { %v8028_v1 = vld [vmem:[%s8124_s6] ss:$0 sm:$0xff] }
 0x79f   :  { %v4163_v18 = vpop.f32.mrf.mxu1 }
 0x7a0   :  { %v4171_v24 = vadd.f32 %v4170_v7, %v4163_v18 }
 0x7a1   :  { %v6356_v27 = vpop.f32.mrf.mxu1 }
 0x7a2   :  { %v5365_v39 = vmul.f32 -1.442695, %v4171_v24 }
 0x7a3   :  { %v6754_v49 = vpop.eup %6753  ;;  %v4166_v55 = vpop.f32.mrf.mxu1 }
 0x7a4   :  { %v3995_v56 = vmul.f32 %v6754_v49, %v7766_v42  ;;  %v6756_v22 = vpop.eup %6755  ;;  %6759 = vpow2.f32 %v5365_v39 }
 0x7a5   :  { %v6357_v9 = vpop.f32.mrf.mxu1  ;;  %v3992_v16 = vadd.f32 1.0, %v6756_v22 }
 0x7a6   :  { %v7922_v44 = vadd.f32 %v3996_v57, %v3995_v56  ;;  %v8034_v56 = vld [vmem:[%s8124_s6 + $0x1] ss:$0 sm:$0xff] }
 0x7a8   :  { %6761 = vtanh.f32 %v7922_v44 }
 0x7a9   :  { %v6758_v0 = vpop.eup %6757  ;;  %6763 = vrcp.f32 %v3992_v16 }
 0x7aa   :  { %6765 = vrcp.f32 %v4175_v20  ;;  %v4181_v19 = vadd.f32 1.0, %v6758_v0 }
 0x7ab   :  { %6767 = vtanh.f32 %v4128_v17 }
 0x7ac   :  { %6769 = vrcp.f32 %v4181_v19 }
 0x7b1   :  { %v6760_v53 = vpop.eup %6759 }
 0x7b2   :  { %v4188_v47 = vadd.f32 1.0, %v6760_v53 }
 0x7b4   :  { %6771 = vrcp.f32 %v4188_v47 }
 0x7b5   :  { %v6762_v42 = vpop.eup %6761 }
 0x7b6   :  { %v6764_v35 = vpop.eup %6763 }
 0x7b7   :  { %v6766_v59 = vpop.eup %6765  ;;  %v3999_v23 = vmul.f32 %v6764_v35, %v6762_v42 }
 0x7b8   :  { %v6768_v11 = vpop.eup %6767 }
 0x7b9   :  { %v6770_v4 = vpop.eup %6769  ;;  %v4197_v62 = vpack.c.bf16 %v3999_v23, %v3999_v23  ;;  %v4192_v29 = vmul.f32 %v6768_v11, %v6766_v59  ;;  %v4593_v23 = vld [vmem:[#allocation2 + $0x38] sm:$0xff] }
 0x7ba   :  { %v4191_v45 = vmul.f32 %v6770_v4, %v7771_v43 }
 0x7bb   :  { %6363 = vmatmul.mubr.msk.bf16.vlgmr.msra.gmra.mxu0 %vm182_vm2, %v4197_v62 }
 0x7bc   :  { %v7927_v28 = vadd.f32 %v4192_v29, %v4191_v45  ;;  %6375 = vmatpush3.bf16.msra.mxu0 %v7773_v31  ;;  %6378 = vmatprep.mubr.msk.bf16.mxu0 %vm6928_vm1, %v6927_v8  ;;  %v8040_v45 = vld [vmem:[%s8124_s6 + $0x2] ss:$0 sm:$0xff] }
 0x7bd   :  { %6376 = vmatprep.subr.bf16.mxu0 %v6927_v8 }
 0x7be   :  { %6773 = vtanh.f32 %v7927_v28 }
 0x7c0   :  { %6377 = vmatpush3.bf16.msra.mxu0 %v7780_v40 }
 0x7c1   :  { %6390 = vmatprep.subr.bf16.mxu0 %v6927_v8  ;;  %v6772_v43 = vpop.eup %6771 }
 0x7c3   :  { %6379 = vmatmul.mubr.msk.bf16.vlgmr.msra.gmra.mxu0 %vm182_vm2, %v4197_v62 }
 0x7c4   :  { %6391 = vmatpush3.bf16.msra.mxu0 %v7785_v61  ;;  %6394 = vmatprep.mubr.msk.bf16.mxu0 %vm6928_vm1, %v6927_v8 }
 0x7c5   :  { %6392 = vmatprep.subr.bf16.mxu0 %v6927_v8 }
 0x7c8   :  { %6393 = vmatpush3.bf16.msra.mxu0 %v7791_v58 }
 0x7c9   :  { %6406 = vmatprep.subr.bf16.mxu0 %v6927_v8 }
 0x7cb   :  { %v6774_v34 = vpop.eup %6773  ;;  %6395 = vmatmul.mubr.msk.bf16.vlgmr.msra.gmra.mxu0 %vm182_vm2, %v4197_v62 }
 0x7cc   :  { %v4195_v36 = vmul.f32 %v6774_v34, %v6772_v43  ;;  %6407 = vmatpush3.bf16.msra.mxu0 %v7796_v10  ;;  %6410 = vmatprep.mubr.msk.bf16.mxu0 %vm6928_vm1, %v6927_v8 }
 0x7cd   :  { %6408 = vmatprep.subr.bf16.mxu0 %v6927_v8 }
 0x7ce   :  { %v4196_v37 = vpack.c.bf16 %v4195_v36, %v4195_v36 }
 0x7d0   :  { %6409 = vmatpush3.bf16.msra.mxu0 %v7802_v13  ;;  %6371 = vmatmul.mubr.msk.bf16.vlgmr.msra.gmra.mxu1 %vm182_vm2, %v4196_v37 }
 0x7d1   :  { %6383 = vmatpush3.bf16.msra.mxu1 %v7950_v41  ;;  %6422 = vmatprep.subr.bf16.mxu0 %v6927_v8 }
 0x7d2   :  { %6384 = vmatprep.subr.bf16.mxu1 %v6927_v8  ;;  %6386 = vmatprep.mubr.msk.bf16.mxu1 %vm6928_vm1, %v6927_v8 }
 0x7d3   :  { %6411 = vmatmul.mubr.msk.bf16.vlgmr.msra.gmra.mxu0 %vm182_vm2, %v4197_v62 }
 0x7d4   :  { %6423 = vmatpush3.bf16.msra.mxu0 %v7815_v48  ;;  %6426 = vmatprep.mubr.msk.bf16.mxu0 %vm6928_vm1, %v6927_v8  ;;  %v7979_v48 = vld [vmem:[#allocation6 + $0x20] sm:$0xff]  }
 0x7d5   :  { %6385 = vmatpush3.bf16.msra.mxu1 %v7961_v32  ;;  %6424 = vmatprep.subr.bf16.mxu0 %v6927_v8 }
 0x7d6   :  { %6398 = vmatprep.subr.bf16.mxu1 %v6927_v8 }
 0x7d8   :  { %6425 = vmatpush3.bf16.msra.mxu0 %v7826_v2  ;;  %6387 = vmatmul.mubr.msk.bf16.vlgmr.msra.gmra.mxu1 %vm182_vm2, %v4196_v37  ;;  %v7986_v2 = vld [vmem:[#allocation6 + $0x38] sm:$0xff]  }
 0x7d9   :  { %6399 = vmatpush3.bf16.msra.mxu1 %v7968_v33  ;;  %6438 = vmatprep.subr.bf16.mxu0 %v6927_v8 }
 0x7da   :  { %6400 = vmatprep.subr.bf16.mxu1 %v6927_v8  ;;  %6402 = vmatprep.mubr.msk.bf16.mxu1 %vm6928_vm1, %v6927_v8 }
 0x7db   :  { %6427 = vmatmul.mubr.msk.bf16.vlgmr.msra.gmra.mxu0 %vm182_vm2, %v4196_v37 }
 0x7dc   :  { %6439 = vmatpush3.bf16.msra.mxu0 %v7839_v63  ;;  %6442 = vmatprep.mubr.msk.bf16.mxu0 %vm6928_vm1, %v6927_v8  ;;  %v7997_v63 = vld [vmem:[#allocation6 + $0x30] sm:$0xff]  }
 0x7dd   :  { %6401 = vmatpush3.bf16.msra.mxu1 %v7979_v48  ;;  %6440 = vmatprep.subr.bf16.mxu0 %v6927_v8 }
 0x7de   :  { %6414 = vmatprep.subr.bf16.mxu1 %v6927_v8 }
 0x7e0   :  { %6441 = vmatpush3.bf16.msra.mxu0 %v7850_v5  ;;  %6403 = vmatmul.mubr.msk.bf16.vlgmr.msra.gmra.mxu1 %vm182_vm2, %v4196_v37 }
 0x7e1   :  { %6415 = vmatpush3.bf16.msra.mxu1 %v7986_v2  ;;  %6418 = vmatprep.mubr.msk.bf16.mxu1 %vm6928_vm1, %v6927_v8 }
 0x7e2   :  { %6416 = vmatprep.subr.bf16.mxu1 %v6927_v8  ;;  %6454 = vmatprep.subr.bf16.mxu0 %v6927_v8 }
 0x7e3   :  { %6443 = vmatmul.mubr.msk.bf16.vlgmr.msra.gmra.mxu0 %vm182_vm2, %v4196_v37 }
 0x7e4   :  { %6455 = vmatpush3.bf16.msra.mxu0 %v7860_v6  ;;  %6458 = vmatprep.mubr.msk.bf16.mxu0 %vm6928_vm1, %v6927_v8 }
 0x7e5   :  { %6417 = vmatpush3.bf16.msra.mxu1 %v7997_v63  ;;  %6456 = vmatprep.subr.bf16.mxu0 %v6927_v8 }
 0x7e6   :  { %6430 = vmatprep.subr.bf16.mxu1 %v6927_v8 }
 0x7e8   :  { %6419 = vmatmul.mubr.msk.bf16.vlgmr.msra.gmra.mxu1 %vm182_vm2, %v4196_v37  ;;  %6457 = vmatpush3.bf16.msra.mxu0 %v7869_v15 }
 0x7e9   :  { %6431 = vmatpush3.bf16.msra.mxu1 %v7875_v50  ;;  %6434 = vmatprep.mubr.msk.bf16.mxu1 %vm6928_vm1, %v6927_v8 }
 0x7ea   :  { %6432 = vmatprep.subr.bf16.mxu1 %v6927_v8  ;;  %6470 = vmatprep.subr.bf16.mxu0 %v6927_v8 }
 0x7ed   :  { %6433 = vmatpush3.bf16.msra.mxu1 %v7885_v30 }
 0x7ee   :  { %6446 = vmatprep.subr.bf16.mxu1 %v6927_v8 }
 0x7f0   :  { %6435 = vmatmul.mubr.msk.bf16.vlgmr.msra.gmra.mxu1 %vm182_vm2, %v4196_v37 }
 0x7f1   :  { %6447 = vmatpush3.bf16.msra.mxu1 %v7893_v51  ;;  %6450 = vmatprep.mubr.msk.bf16.mxu1 %vm6928_vm1, %v6927_v8 }
 0x7f2   :  { %6448 = vmatprep.subr.bf16.mxu1 %v6927_v8 }
 0x7f5   :  { %6449 = vmatpush3.bf16.msra.mxu1 %v7902_v52 }
 0x7f6   :  { %6462 = vmatprep.subr.bf16.mxu1 %v6927_v8 }
 0x7f8   :  { %6451 = vmatmul.mubr.msk.bf16.vlgmr.msra.gmra.mxu1 %vm182_vm2, %v4196_v37 }
 0x7f9   :  { %6463 = vmatpush3.bf16.msra.mxu1 %v7907_v14  ;;  %6466 = vmatprep.mubr.msk.bf16.mxu1 %vm6928_vm1, %v6927_v8 }
 0x7fa   :  { %6464 = vmatprep.subr.bf16.mxu1 %v6927_v8 }
 0x7fd   :  { %6465 = vmatpush3.bf16.msra.mxu1 %v7913_v54 }
 0x7fe   :  { %6478 = vmatprep.subr.bf16.mxu1 %v6927_v8 }
 0x87b   :  { %v4235_v5 = vpop.f32.mrf.mxu0 }
 0x87d   :  { %v6364_v6 = vpop.f32.mrf.mxu0 }
 0x87f   :  { %v4238_v15 = vpop.f32.mrf.mxu0 }
 0x880   :  { %v8046_v15 = vld [vmem:[%s8124_s6 + $0x3] ss:$0 sm:$0xff] }
 0x881   :  { %v6365_v50 = vpop.f32.mrf.mxu0 }
 0x883   :  { %v4319_v30 = vpop.f32.mrf.mxu0 }
 0x885   :  { %v6380_v51 = vpop.f32.mrf.mxu0 }
 0x887   :  { %v4322_v52 = vpop.f32.mrf.mxu0 }
 0x889   :  { %v6381_v25 = vpop.f32.mrf.mxu0 }
 0x88b   :  { %v4400_v38 = vpop.f32.mrf.mxu0 }
 0x88d   :  { %v6396_v26 = vpop.f32.mrf.mxu0 }
 0x88f   :  { %v4403_v14 = vpop.f32.mrf.mxu0 }
 0x890   :  { %v4278_v21 = vpop.f32.mrf.mxu1 }
 0x891   :  { %v4279_v54 = vadd.f32 %v8028_v1, %v4278_v21  ;;  %v6397_v18 = vpop.f32.mrf.mxu0 }
 0x892   :  { %v6372_v7 = vpop.f32.mrf.mxu1 }
 0x893   :  { %v4284_v60 = vadd.f32 %v4279_v54, %v4235_v5  ;;  %v4481_v24 = vpop.f32.mrf.mxu0 }
 0x894   :  { %v4281_v46 = vpop.f32.mrf.mxu1 }
 0x895   :  { %v5374_v27 = vmul.f32 -1.442695, %v4284_v60  ;;  %v6412_v3 = vpop.f32.mrf.mxu0  ;;  %v4636_v60 = vld [vmem:[#allocation3 + $0x38] sm:$0xff] }
 0x896   :  { %v6373_v49 = vpop.f32.mrf.mxu1 }
 0x897   :  { %v4484_v39 = vpop.f32.mrf.mxu0  ;;  %6775 = vpow2.f32 %v5374_v27 }
 0x898   :  { %v4359_v55 = vpop.f32.mrf.mxu1 }
 0x899   :  { %v4360_v57 = vadd.f32 %v8034_v56, %v4359_v55  ;;  %v6413_v22 = vpop.f32.mrf.mxu0 }
 0x89a   :  { %v6388_v9 = vpop.f32.mrf.mxu1 }
 0x89b   :  { %v4365_v20 = vadd.f32 %v4360_v57, %v4319_v30  ;;  %v4586_v12 = vpop.f32.mrf.mxu0 }
 0x89c   :  { %v4362_v16 = vpop.f32.mrf.mxu1  ;;  %v4594_v4 = vadd.f32 %v4593_v23, %v4586_v12  ;;  %v4679_v23 = vld [vmem:[#allocation4 + $0x38] sm:$0xff] }
 0x89d   :  { %v5375_v17 = vmul.f32 -1.442695, %v4365_v20  ;;  %v6428_v0 = vpop.f32.mrf.mxu0 }
 0x89e   :  { %v6389_v19 = vpop.f32.mrf.mxu1  ;;  %v5381_v37 = vmul.f32 -1.442695, %v4594_v4 }
 0x89f   :  { %6777 = vpow2.f32 %v5375_v17  ;;  %v4589_v53 = vpop.f32.mrf.mxu0 }
 0x8a0   :  { %v4440_v42 = vpop.f32.mrf.mxu1  ;;  %6779 = vpow2.f32 %v5381_v37 }
 0x8a1   :  { %v6429_v35 = vpop.f32.mrf.mxu0  ;;  %v4441_v43 = vadd.f32 %v8040_v45, %v4440_v42 }
 0x8a2   :  { %v6404_v59 = vpop.f32.mrf.mxu1 }
 0x8a3   :  { %v4672_v11 = vpop.f32.mrf.mxu0  ;;  %v4446_v51 = vadd.f32 %v4441_v43, %v4400_v38 }
 0x8a4   :  { %v4443_v47 = vpop.f32.mrf.mxu1  ;;  %v6776_v29 = vpop.eup %6775 }
 0x8a5   :  { %v6444_v62 = vpop.f32.mrf.mxu0  ;;  %v4531_v6 = vadd.f32 1.0, %v6776_v29  ;;  %v4680_v47 = vadd.f32 %v4679_v23, %v4672_v11 }
 0x8a6   :  { %v6405_v34 = vpop.f32.mrf.mxu1 }
 0x8a7   :  { %v4675_v36 = vpop.f32.mrf.mxu0  ;;  %6781 = vrcp.f32 %v4531_v6 }
 0x8a8   :  { %v4521_v5 = vpop.f32.mrf.mxu1  ;;  %6783 = vtanh.f32 %v4446_v51 }
 0x8a9   :  { %v4522_v50 = vadd.f32 %v8046_v15, %v4521_v5  ;;  %v6445_v30 = vpop.f32.mrf.mxu0 }
 0x8aa   :  { %v6420_v52 = vpop.f32.mrf.mxu1 }
 0x8ab   :  { %v4527_v25 = vadd.f32 %v4522_v50, %v4481_v24  ;;  %v4722_v24 = vld [vmem:[#allocation5 + $0x38] sm:$0xff] }
 0x8ac   :  { %v6778_v26 = vpop.eup %6777  ;;  %v4524_v14 = vpop.f32.mrf.mxu1 }
 0x8ad   :  { %v4537_v21 = vadd.f32 1.0, %v6778_v26  ;;  %v5376_v54 = vmul.f32 -1.442695, %v4527_v25  ;;  %v6780_v55 = vpop.eup %6779 }
 0x8ae   :  { %v6421_v18 = vpop.f32.mrf.mxu1  ;;  %v4727_v35 = vadd.f32 1.0, %v6780_v55 }
 0x8af   :  { %6785 = vrcp.f32 %v4537_v21 }
 0x8b0   :  { %v4629_v7 = vpop.f32.mrf.mxu1  ;;  %6787 = vpow2.f32 %v5376_v54 }
 0x8b1   :  { %v4637_v46 = vadd.f32 %v4636_v60, %v4629_v7 }
 0x8b2   :  { %v6436_v27 = vpop.f32.mrf.mxu1 }
 0x8b3   :  { %v5382_v3 = vmul.f32 -1.442695, %v4637_v46 }
 0x8b4   :  { %v4632_v49 = vpop.f32.mrf.mxu1  ;;  %v6782_v22 = vpop.eup %6781 }
 0x8b5   :  { %6789 = vpow2.f32 %v5382_v3  ;;  %v6784_v20 = vpop.eup %6783 }
 0x8b6   :  { %v6437_v38 = vpop.f32.mrf.mxu1  ;;  %v4548_v19 = vmul.f32 %v6784_v20, %v6782_v22 }
 0x8b8   :  { %v4715_v39 = vpop.f32.mrf.mxu1 }
 0x8b9   :  { %v4723_v57 = vadd.f32 %v4722_v24, %v4715_v39 }
 0x8ba   :  { %v6452_v9 = vpop.f32.mrf.mxu1 }
 0x8bb   :  { %v5383_v16 = vmul.f32 -1.442695, %v4723_v57 }
 0x8bc   :  { %v6786_v12 = vpop.eup %6785  ;;  %v4718_v17 = vpop.f32.mrf.mxu1 }
 0x8bd   :  { %v4547_v0 = vmul.f32 %v6786_v12, %v7922_v44  ;;  %v6788_v53 = vpop.eup %6787  ;;  %6791 = vpow2.f32 %v5383_v16 }
 0x8be   :  { %v6453_v42 = vpop.f32.mrf.mxu1  ;;  %v4544_v4 = vadd.f32 1.0, %v6788_v53 }
 0x8bf   :  { %v8050_v59 = vadd.f32 %v4548_v19, %v4547_v0 }
 0x8c1   :  { %6793 = vtanh.f32 %v8050_v59 }
 0x8c2   :  { %v6790_v62 = vpop.eup %6789  ;;  %6795 = vrcp.f32 %v4544_v4 }
 0x8c3   :  { %6797 = vrcp.f32 %v4727_v35  ;;  %v4733_v29 = vadd.f32 1.0, %v6790_v62 }
 0x8c4   :  { %6799 = vtanh.f32 %v4680_v47 }
 0x8c5   :  { %6801 = vrcp.f32 %v4733_v29 }
 0x8ca   :  { %v6792_v43 = vpop.eup %6791 }
 0x8cb   :  { %v4740_v50 = vadd.f32 1.0, %v6792_v43 }
 0x8cd   :  { %6803 = vrcp.f32 %v4740_v50 }
 0x8ce   :  { %v6794_v44 = vpop.eup %6793 }
 0x8cf   :  { %v6796_v34 = vpop.eup %6795 }
 0x8d0   :  { %v6798_v36 = vpop.eup %6797  ;;  %v4551_v37 = vmul.f32 %v6796_v34, %v6794_v44 }
 0x8d1   :  { %v6800_v5 = vpop.eup %6799 }
 0x8d2   :  { %v6802_v6 = vpop.eup %6801  ;;  %v4749_v30 = vpack.c.bf16 %v4551_v37, %v4551_v37  ;;  %v4744_v51 = vmul.f32 %v6800_v5, %v6798_v36 }
 0x8d3   :  { %v4743_v11 = vmul.f32 %v6802_v6, %v7927_v28 }
 0x8d4   :  { %6459 = vmatmul.mubr.msk.bf16.vlgmr.msra.gmra.mxu0 %vm182_vm2, %v4749_v30 }
 0x8d5   :  { %v4745_v52 = vadd.f32 %v4744_v51, %v4743_v11  ;;  %6471 = vmatpush3.bf16.msra.mxu0 %v7773_v31  ;;  %6474 = vmatprep.mubr.msk.bf16.mxu0 %vm6928_vm1, %v6927_v8 }
 0x8d6   :  { %6472 = vmatprep.subr.bf16.mxu0 %v6927_v8 }
 0x8d7   :  { %6805 = vtanh.f32 %v4745_v52 }
 0x8d9   :  { %6473 = vmatpush3.bf16.msra.mxu0 %v7780_v40 }
 0x8da   :  { %6486 = vmatprep.subr.bf16.mxu0 %v6927_v8  ;;  %v6804_v31 = vpop.eup %6803 }
 0x8dc   :  { %6475 = vmatmul.mubr.msk.bf16.vlgmr.msra.gmra.mxu0 %vm182_vm2, %v4749_v30 }
 0x8dd   :  { %6487 = vmatpush3.bf16.msra.mxu0 %v7785_v61  ;;  %6490 = vmatprep.mubr.msk.bf16.mxu0 %vm6928_vm1, %v6927_v8 }
 0x8de   :  { %6488 = vmatprep.subr.bf16.mxu0 %v6927_v8 }
 0x8e1   :  { %6489 = vmatpush3.bf16.msra.mxu0 %v7791_v58  ;;  %v6565_v58 = vld [vmem:[%s8125_s7 + $0x8] sm:$0xff]  }
 0x8e2   :  { %6502 = vmatprep.subr.bf16.mxu0 %v6927_v8 }
 0x8e4   :  { %v6806_v28 = vpop.eup %6805  ;;  %6491 = vmatmul.mubr.msk.bf16.vlgmr.msra.gmra.mxu0 %vm182_vm2, %v4749_v30 }
 0x8e5   :  { %6503 = vmatpush3.bf16.msra.mxu0 %v7796_v10  ;;  %v4747_v40 = vmul.f32 %v6806_v28, %v6804_v31  ;;  %6506 = vmatprep.mubr.msk.bf16.mxu0 %vm6928_vm1, %v6927_v8  ;;  %v6566_v10 = vld [vmem:[%s8125_s7] sm:$0xff]  }
 0x8e6   :  { %6504 = vmatprep.subr.bf16.mxu0 %v6927_v8 }
 0x8e7   :  { %v4748_v61 = vpack.c.bf16 %v4747_v40, %v4747_v40  ;;  %v5395_v40 = vld [vmem:[%s8126_s8] ss:$0 sm:$0xff] }
 0x8e9   :  { %6505 = vmatpush3.bf16.msra.mxu0 %v7802_v13  ;;  %6467 = vmatmul.mubr.msk.bf16.vlgmr.msra.gmra.mxu1 %vm182_vm2, %v4748_v61 }
 0x8ea   :  { %6479 = vmatpush3.bf16.msra.mxu1 %v7950_v41  ;;  %6482 = vmatprep.mubr.msk.bf16.mxu1 %vm6928_vm1, %v6927_v8 }
 0x8eb   :  { %6480 = vmatprep.subr.bf16.mxu1 %v6927_v8  ;;  %6518 = vmatprep.subr.bf16.mxu0 %v6927_v8 }
 0x8ec   :  { %6507 = vmatmul.mubr.msk.bf16.vlgmr.msra.gmra.mxu0 %vm182_vm2, %v4749_v30 }
 0x8ed   :  { %6522 = vmatprep.mubr.msk.bf16.mxu0 %vm6928_vm1, %v6927_v8  ;;  %6519 = vmatpush3.bf16.msra.mxu0 %v6565_v58 }
 0x8ee   :  { %6481 = vmatpush3.bf16.msra.mxu1 %v7961_v32  ;;  %6520 = vmatprep.subr.bf16.mxu0 %v6927_v8 }
 0x8ef   :  { %6494 = vmatprep.subr.bf16.mxu1 %v6927_v8 }
 0x8f1   :  { %6483 = vmatmul.mubr.msk.bf16.vlgmr.msra.gmra.mxu1 %vm182_vm2, %v4748_v61  ;;  %6521 = vmatpush3.bf16.msra.mxu0 %v6566_v10 }
 0x8f2   :  { %6495 = vmatpush3.bf16.msra.mxu1 %v7968_v33  ;;  %6498 = vmatprep.mubr.msk.bf16.mxu1 %vm6928_vm1, %v6927_v8 }
 0x8f3   :  { %6496 = vmatprep.subr.bf16.mxu1 %v6927_v8 }
 0x8f6   :  { %6497 = vmatpush3.bf16.msra.mxu1 %v7979_v48 }
 0x8f7   :  { %6510 = vmatprep.subr.bf16.mxu1 %v6927_v8 }
 0x8f9   :  { %6499 = vmatmul.mubr.msk.bf16.vlgmr.msra.gmra.mxu1 %vm182_vm2, %v4748_v61 }
 0x8fa   :  { %6511 = vmatpush3.bf16.msra.mxu1 %v7986_v2  ;;  %6514 = vmatprep.mubr.msk.bf16.mxu1 %vm6928_vm1, %v6927_v8 }
 0x8fb   :  { %6512 = vmatprep.subr.bf16.mxu1 %v6927_v8 }
 0x8fe   :  { %6513 = vmatpush3.bf16.msra.mxu1 %v7997_v63 }
 0x901   :  { %6515 = vmatmul.mubr.msk.bf16.vlgmr.msra.gmra.mxu1 %vm182_vm2, %v4748_v61 }
 0x994   :  { %v4787_v13 = vpop.f32.mrf.mxu0 }
 0x996   :  { %v6460_v41 = vpop.f32.mrf.mxu0 }
 0x998   :  { %v4790_v32 = vpop.f32.mrf.mxu0 }
 0x99a   :  { %v6461_v33 = vpop.f32.mrf.mxu0 }
 0x99c   :  { %v4871_v48 = vpop.f32.mrf.mxu0 }
 0x99e   :  { %v6476_v2 = vpop.f32.mrf.mxu0 }
 0x9a0   :  { %v4874_v63 = vpop.f32.mrf.mxu0 }
 0x9a2   :  { %v6477_v25 = vpop.f32.mrf.mxu0 }
 0x9a4   :  { %v4952_v26 = vpop.f32.mrf.mxu0 }
 0x9a6   :  { %v6492_v14 = vpop.f32.mrf.mxu0 }
 0x9a8   :  { %v4955_v21 = vpop.f32.mrf.mxu0 }
 0x9a9   :  { %v4830_v54 = vpop.f32.mrf.mxu1 }
 0x9aa   :  { %v4831_v18 = vadd.f32 %v8028_v1, %v4830_v54  ;;  %v6493_v7 = vpop.f32.mrf.mxu0 }
 0x9ab   :  { %v6468_v60 = vpop.f32.mrf.mxu1 }
 0x9ac   :  { %v4836_v46 = vadd.f32 %v4831_v18, %v4787_v13  ;;  %v5033_v27 = vpop.f32.mrf.mxu0 }
 0x9ad   :  { %v4833_v8 = vpop.f32.mrf.mxu1 }
 0x9ae   :  { %v5392_v3 = vmul.f32 -1.442695, %v4836_v46  ;;  %v6508_v49 = vpop.f32.mrf.mxu0 }
 0x9af   :  { %v6469_v38 = vpop.f32.mrf.mxu1 }
 0x9b0   :  { %v5036_v39 = vpop.f32.mrf.mxu0  ;;  %6807 = vpow2.f32 %v5392_v3 }
 0x9b1   :  { %v4911_v24 = vpop.f32.mrf.mxu1 }
 0x9b2   :  { %v4912_v55 = vadd.f32 %v8034_v56, %v4911_v24  ;;  %v6509_v57 = vpop.f32.mrf.mxu0 }
 0x9b3   :  { %v6484_v22 = vpop.f32.mrf.mxu1 }
 0x9b4   :  { %v4917_v9 = vadd.f32 %v4912_v55, %v4871_v48 }
 0x9b5   :  { %v4914_v20 = vpop.f32.mrf.mxu1 }
 0x9b6   :  { %v5393_v12 = vmul.f32 -1.442695, %v4917_v9 }
 0x9b7   :  { %v6485_v16 = vpop.f32.mrf.mxu1 }
 0x9b8   :  { %6809 = vpow2.f32 %v5393_v12 }
 0x9b9   :  { %v4992_v1 = vpop.f32.mrf.mxu1 }
 0x9ba   :  { %v4993_v53 = vadd.f32 %v8040_v45, %v4992_v1 }
 0x9bb   :  { %v6500_v17 = vpop.f32.mrf.mxu1 }
 0x9bc   :  { %v4998_v47 = vadd.f32 %v4993_v53, %v4952_v26 }
 0x9bd   :  { %v4995_v0 = vpop.f32.mrf.mxu1  ;;  %v6808_v19 = vpop.eup %6807 }
 0x9be   :  { %v5083_v23 = vadd.f32 1.0, %v6808_v19 }
 0x9bf   :  { %v6501_v42 = vpop.f32.mrf.mxu1 }
 0x9c0   :  { %6811 = vrcp.f32 %v5083_v23 }
 0x9c1   :  { %v5073_v35 = vpop.f32.mrf.mxu1  ;;  %6813 = vtanh.f32 %v4998_v47 }
 0x9c2   :  { %v5074_v4 = vadd.f32 %v8046_v15, %v5073_v35 }
 0x9c3   :  { %v6516_v56 = vpop.f32.mrf.mxu1 }
 0x9c4   :  { %v5079_v62 = vadd.f32 %v5074_v4, %v5033_v27 }
 0x9c5   :  { %v6810_v29 = vpop.eup %6809  ;;  %v5076_v43 = vpop.f32.mrf.mxu1 }
 0x9c6   :  { %v5089_v44 = vadd.f32 1.0, %v6810_v29  ;;  %v5394_v34 = vmul.f32 -1.442695, %v5079_v62 }
 0x9c7   :  { %v6517_v36 = vpop.f32.mrf.mxu1 }
 0x9c8   :  { %6815 = vrcp.f32 %v5089_v44 }
 0x9c9   :  { %6817 = vpow2.f32 %v5394_v34 }
 0x9cd   :  { %v6812_v37 = vpop.eup %6811 }
 0x9ce   :  { %v6814_v5 = vpop.eup %6813 }
 0x9cf   :  { %v5100_v30 = vmul.f32 %v6814_v5, %v6812_v37 }
 0x9d5   :  { %v6816_v45 = vpop.eup %6815 }
 0x9d6   :  { %v6818_v6 = vpop.eup %6817  ;;  %v5099_v50 = vmul.f32 %v6816_v45, %v8050_v59 }
 0x9d7   :  { %v5096_v15 = vadd.f32 1.0, %v6818_v6 }
 0x9d8   :  { %v5101_v51 = vadd.f32 %v5100_v30, %v5099_v50 }
 0x9d9   :  { %6819 = vrcp.f32 %v5096_v15 }
 0x9da   :  { %6821 = vtanh.f32 %v5101_v51 }
 0x9e6   :  { %v6820_v11 = vpop.eup %6819 }
 0x9e7   :  { %v6822_v52 = vpop.eup %6821 }
 0x9e8   :  { %v5103_v31 = vmul.f32 %v6822_v52, %v6820_v11 }
 0x9ea   :  { %v5104_v28 = vpack.c.bf16 %v5103_v31, %v5103_v31 }
 0x9ec   :  { %6523 = vmatmul.mubr.msk.bf16.vlgmr.msra.gmra.mxu0 %vm182_vm2, %v5104_v28 }
 0xaac   :  { %v5165_v61 = vpop.f32.mrf.mxu0 }
 0xaad   :  { %v5166_v58 = vadd.f32 %v5395_v40, %v5165_v61 }
 0xaae   :  { %v6524_v10 = vpop.f32.mrf.mxu0 }
 0xaaf   :  { %5172 = vst.msk [vmem:[%s8127_s9] sm:$0xff] %vm5171_vm3, %v5166_v58 }
 0xab0   :  { %v5168_v59 = vpop.f32.mrf.mxu0 }
 0xab2   :  { %v6525_v13 = vpop.f32.mrf.mxu0 }
 0xab3   :  { %5177 = vsyncpa [#allocation7], 1 }
 0xab4   :  { %5178 = vsyncpa [#allocation9], 1 }

</bundles_post_ra>
